<compile_context>
chip_gen: v7x
topology: tpu7x:2x2x1
jax: 0.10.0
libtpu: 0.0.40
codegen_flags: <defaults>
</compile_context>

<pallas_src>
import functools

import jax
import jax.numpy as jnp
from jax.experimental import pallas as pl
from jax.experimental.pallas import tpu as pltpu


# -----------------------------------------------------------------------------
# Fused forward kernel.
#   refs = [ x (T*Bp, Din0) bf16,
#            per layer:
#              per direction: wi (Din_l, 3H) bf16, bi (1, 3H) f32   [b_i + b_h for r,z; b_in for n]
#              whf (DD, 3*DD) bf16  (block-diag over directions, gate-major cols)
#              bhn (1, DD) f32      (b_hn per direction, concatenated)
#            w_omega (D, A) bf16, u_omega (A, 1) bf16,
#            fc_w (D, C) bf16, fc_b (1, C) f32,
#            out (Bp, C) f32 ]
# -----------------------------------------------------------------------------
def _distillog_kernel(num_layers, num_dirs, T, Bp, H, *refs):
    per_layer = 2 * num_dirs + 2
    x_ref = refs[0]
    layer_refs = refs[1:1 + num_layers * per_layer]
    (w_om_ref, u_om_ref, fc_w_ref, fc_b_ref,
     out_ref) = refs[1 + num_layers * per_layer:]

    DD = num_dirs * H                       # per-layer output width

    Xb = x_ref[...]                         # bf16 layer input, (T*Bp, Din)
    Xf = None                               # f32 copy of last layer's output
    idx = 0
    for _layer in range(num_layers):
        # ---- hoisted input projections: one gate-fused matmul per direction ----
        gx = []
        for _d in range(num_dirs):
            wi = layer_refs[idx][...]       # (Din, 3H) bf16
            bi = layer_refs[idx + 1][...]   # (1, 3H)   f32
            idx += 2
            gx.append(jnp.dot(Xb, wi, preferred_element_type=jnp.float32) + bi)
        whf = layer_refs[idx][...]          # (DD, 3*DD) bf16, block-diag over dirs
        bhn = layer_refs[idx + 1][...]      # (1, DD) f32
        idx += 2
        bhn_b = jnp.broadcast_to(bhn, (Bp, DD))          # hoisted broadcast

        # ---- merge fwd(t) / bwd(T-1-t) pre-activations per gate, per step ------
        # (pure data rearrangement of precomputed gx: off the h-dependency chain)
        gxm_r, gxm_z, gxm_n = [], [], []
        for t in range(T):
            f = gx[0][t * Bp:(t + 1) * Bp, :]
            if num_dirs == 2:
                b = gx[1][(T - 1 - t) * Bp:(T - t) * Bp, :]
                gxm_r.append(jnp.concatenate([f[:, 0:H], b[:, 0:H]], axis=-1))
                gxm_z.append(jnp.concatenate([f[:, H:2 * H], b[:, H:2 * H]], axis=-1))
                gxm_n.append(jnp.concatenate([f[:, 2 * H:3 * H], b[:, 2 * H:3 * H]], axis=-1))
            else:
                gxm_r.append(f[:, 0:H])
                gxm_z.append(f[:, H:2 * H])
                gxm_n.append(f[:, 2 * H:3 * H])

        # ---- fused bidirectional recurrence: one matmul + one gate pass/step ---
        h = jnp.zeros((Bp, DD), jnp.float32)             # [h_fwd | h_bwd]
        hs = []
        for t in range(T):                               # static unroll, T small
            gh = jnp.dot(h.astype(jnp.bfloat16), whf,
                         preferred_element_type=jnp.float32)   # (Bp, 3*DD)
            gh_r = gh[:, 0:DD]
            gh_z = gh[:, DD:2 * DD]
            gh_n = gh[:, 2 * DD:3 * DD] + bhn_b
            r = jax.nn.sigmoid(gxm_r[t] + gh_r)
            z = jax.nn.sigmoid(gxm_z[t] + gh_z)
            n = jnp.tanh(gxm_n[t] + r * gh_n)
            h = (1.0 - z) * n + z * h
            hs.append(h)

        # ---- assemble layer output (undo time reversal of the bwd half) -------
        rows = []
        for t in range(T):
            if num_dirs == 2:
                rows.append(jnp.concatenate([hs[t][:, 0:H],
                                             hs[T - 1 - t][:, H:2 * H]], axis=-1))
            else:
                rows.append(hs[t])
        Xf = jnp.concatenate(rows, axis=0)               # (T*Bp, DD) f32
        Xb = Xf.astype(jnp.bfloat16)

    # -------------------- attention pooling + FC head (batched) ----------------
    attn_tanh = jnp.tanh(
        jnp.dot(Xb, w_om_ref[...], preferred_element_type=jnp.float32))  # (T*Bp, A)
    scores = jnp.dot(attn_tanh.astype(jnp.bfloat16), u_om_ref[...],
                     preferred_element_type=jnp.float32)                 # (T*Bp, 1)
    m = jnp.max(scores, axis=(0, 1), keepdims=True)      # global max (softmax-inv.)
    e = jnp.exp(scores - m)                              # (T*Bp, 1)

    xe = Xf * e                                          # (T*Bp, DD)
    num = jnp.zeros((Bp, DD), jnp.float32)
    den = jnp.zeros((Bp, 1), jnp.float32)
    for t in range(T):                                   # sublane-block reduce
        num = num + xe[t * Bp:(t + 1) * Bp, :]
        den = den + e[t * Bp:(t + 1) * Bp, :]
    attn_out = num * pl.reciprocal(den, approx=True)     # (Bp, DD)

    logits = jnp.dot(attn_out.astype(jnp.bfloat16), fc_w_ref[...],
                     preferred_element_type=jnp.float32) + fc_b_ref[...]
    out_ref[...] = logits.astype(out_ref.dtype)


# -----------------------------------------------------------------------------
# Wrapper: single pallas_call, everything resident in VMEM.
# -----------------------------------------------------------------------------
def distillog_forward(x, params):
    B, T, Din = x.shape
    gru = params["gru"]
    num_layers = len(gru)
    num_dirs = len(gru[0])
    H = gru[0][0]["wh"].shape[-1]
    DD = num_dirs * H
    C = params["fc_w"].shape[-1]
    Bp = ((B + 7) // 8) * 8                  # sublane-aligned batch rows

    # time-major, batch-padded activation slab: row = t*Bp + b  (pad rows = 0)
    xt = jnp.transpose(x, (1, 0, 2))                          # (T, B, Din)
    xt = jnp.pad(xt, ((0, 0), (0, Bp - B), (0, 0)))
    x2 = xt.reshape(T * Bp, Din).astype(jnp.bfloat16)

    # ---- weight packing (tiny, one-time-per-call parameter prep) --------------
    args = [x2]
    for layer in gru:
        for p in layer:
            wi = jnp.concatenate([p["wi"][0], p["wi"][1], p["wi"][2]], axis=-1)
            bi = jnp.concatenate([p["b"][0], p["b"][1], p["b"][2]], axis=-1)
            args += [wi.astype(jnp.bfloat16), bi.reshape(1, 3 * H).astype(jnp.float32)]
        whf = jnp.zeros((DD, 3 * DD), jnp.float32)   # block-diag over directions
        for d, p in enumerate(layer):
            for g in range(3):
                whf = whf.at[d * H:(d + 1) * H,
                             g * DD + d * H:g * DD + (d + 1) * H].set(p["wh"][g])
        bhn = jnp.concatenate([p["b"][3] for p in layer], axis=-1).reshape(1, DD)
        args += [whf.astype(jnp.bfloat16), bhn.astype(jnp.float32)]
    args += [params["w_omega"].astype(jnp.bfloat16),
             params["u_omega"].reshape(-1, 1).astype(jnp.bfloat16),
             params["fc_w"].astype(jnp.bfloat16),
             params["fc_b"].astype(jnp.float32)]

    vmem = pl.BlockSpec(memory_space=pltpu.MemorySpace.VMEM)
    kernel = functools.partial(_distillog_kernel, num_layers, num_dirs, T, Bp, H)
    # TODO(synk): for realistic batch sizes add a batch grid
    # (dimension_semantics=("parallel",)) so both v7x TensorCores are used; at
    # B=2 a grid would be a single block and is omitted.
    out = pl.pallas_call(
        kernel,
        out_shape=jax.ShapeDtypeStruct((Bp, C), jnp.float32),
        in_specs=[vmem] * len(args),
        out_specs=vmem,
    )(*args)
    logits = out[:B]
    return logits, logits


# -----------------------------------------------------------------------------
# Parameter construction (deterministic, synthetic — shapes follow __init__).
# Per (layer, direction): wi (3, Din, H), wh (3, H, H),
# b (4, H) = [b_ir+b_hr, b_iz+b_hz, b_in, b_hn].
# -----------------------------------------------------------------------------
def init_params(key, input_size, hidden_size, num_layers, num_classes,
                is_bidirectional=True):
    nd = 2 if is_bidirectional else 1
    H = hidden_size
    D = H * nd
    bound = 1.0 / float(H) ** 0.5           # PyTorch GRU default init scale
    keys = iter(jax.random.split(key, 4 * num_layers * nd + 4))
    gru = []
    for layer in range(num_layers):
        din = input_size if layer == 0 else D
        dirs = []
        for _ in range(nd):
            wi = jax.random.uniform(next(keys), (3, din, H), jnp.float32, -bound, bound)
            wh = jax.random.uniform(next(keys), (3, H, H), jnp.float32, -bound, bound)
            bi = jax.random.uniform(next(keys), (3, H), jnp.float32, -bound, bound)
            bh = jax.random.uniform(next(keys), (3, H), jnp.float32, -bound, bound)
            b = jnp.stack([bi[0] + bh[0], bi[1] + bh[1], bi[2], bh[2]], axis=0)
            dirs.append({"wi": wi, "wh": wh, "b": b})
        gru.append(dirs)
    # NOTE: the PyTorch __init__ zero-initializes w_omega / u_omega (attention
    # degenerates to a mean over time).  Small random values are used instead so
    # the attention math is actually exercised; the computation graph is identical.
    w_omega = 0.1 * jax.random.normal(next(keys), (D, H), jnp.float32)
    u_omega = 0.1 * jax.random.normal(next(keys), (1, H), jnp.float32)
    fb = 1.0 / float(D) ** 0.5
    fc_w = jax.random.uniform(next(keys), (D, num_classes), jnp.float32, -fb, fb)
    fc_b = jax.random.uniform(next(keys), (1, num_classes), jnp.float32, -fb, fb)
    return {"gru": gru, "w_omega": w_omega, "u_omega": u_omega,
            "fc_w": fc_w, "fc_b": fc_b}


# -----------------------------------------------------------------------------
# Pure-JAX f32 reference (PyTorch formulation: batch-major, explicit flips/concat).
# -----------------------------------------------------------------------------
def _reference_forward(x, params):
    B, T, _ = x.shape
    layer_in = x.astype(jnp.float32)
    for layer in params["gru"]:
        outs = []
        for d, p in enumerate(layer):
            wi, wh, b = p["wi"], p["wh"], p["b"]
            H = wh.shape[-1]
            xin = layer_in if d == 0 else jnp.flip(layer_in, axis=1)
            h = jnp.zeros((B, H), jnp.float32)
            hs = []
            for t in range(T):
                xt = xin[:, t, :]
                r = jax.nn.sigmoid(xt @ wi[0] + h @ wh[0] + b[0])
                z = jax.nn.sigmoid(xt @ wi[1] + h @ wh[1] + b[1])
                n = jnp.tanh(xt @ wi[2] + b[2] + r * (h @ wh[2] + b[3]))
                h = (1.0 - z) * n + z * h
                hs.append(h)
            hseq = jnp.stack(hs, axis=1)
            if d == 1:
                hseq = jnp.flip(hseq, axis=1)
            outs.append(hseq)
        layer_in = outs[0] if len(outs) == 1 else jnp.concatenate(outs, axis=-1)
        # TODO(synk): inter-layer dropout(p=0.1) skipped — inference/eval semantics.

    D = layer_in.shape[-1]
    g2 = layer_in.reshape(B * T, D)
    attn_tanh = jnp.tanh(g2 @ params["w_omega"])
    scores = jnp.sum(attn_tanh * params["u_omega"], axis=-1)
    exps = jnp.exp(scores).reshape(B, T)
    alphas = exps / jnp.sum(exps, axis=1, keepdims=True)
    attn_out = jnp.sum(layer_in * alphas[:, :, None], axis=1)
    return attn_out @ params["fc_w"] + params["fc_b"]


if __name__ == "__main__":
    input_size, hidden_size, num_layers, num_classes = 32, 32, 2, 2
    batch, seq_len = 2, 8

    key = jax.random.PRNGKey(0)
    pkey, xkey = jax.random.split(key)
    params = init_params(pkey, input_size, hidden_size, num_layers, num_classes,
                         is_bidirectional=True)
    x = jax.random.normal(xkey, (batch, seq_len, input_size), jnp.float32)

    fwd = jax.jit(distillog_forward)
    logits, logits_dup = fwd(x, params)
    (logits, logits_dup) = jax.block_until_ready((logits, logits_dup))

    ref = jax.block_until_ready(_reference_forward(x, params))

    assert logits.shape == (batch, num_classes)
    assert bool(jnp.allclose(logits, logits_dup))
    # bf16 MXU operands (native TPU path) + approx reciprocal vs. an exact f32
    # reference: observed diffs are ~1e-2; structural errors are >> this.
    assert bool(jnp.allclose(logits, ref, atol=4e-2, rtol=4e-2)), "mismatch vs reference"
    print("KERNEL_OK")
</pallas_src>

<mosaic_0001>
module attributes {stable_mosaic.version = 11 : i64} {
  func.func @_distillog_kernel(%arg0: memref<64x32xbf16, #tpu.memory_space<vmem>>, %arg1: memref<32x96xbf16, #tpu.memory_space<vmem>>, %arg2: memref<1x96xf32, #tpu.memory_space<vmem>>, %arg3: memref<32x96xbf16, #tpu.memory_space<vmem>>, %arg4: memref<1x96xf32, #tpu.memory_space<vmem>>, %arg5: memref<64x192xbf16, #tpu.memory_space<vmem>>, %arg6: memref<1x64xf32, #tpu.memory_space<vmem>>, %arg7: memref<64x96xbf16, #tpu.memory_space<vmem>>, %arg8: memref<1x96xf32, #tpu.memory_space<vmem>>, %arg9: memref<64x96xbf16, #tpu.memory_space<vmem>>, %arg10: memref<1x96xf32, #tpu.memory_space<vmem>>, %arg11: memref<64x192xbf16, #tpu.memory_space<vmem>>, %arg12: memref<1x64xf32, #tpu.memory_space<vmem>>, %arg13: memref<64x32xbf16, #tpu.memory_space<vmem>>, %arg14: memref<32x1xbf16, #tpu.memory_space<vmem>>, %arg15: memref<64x2xbf16, #tpu.memory_space<vmem>>, %arg16: memref<1x2xf32, #tpu.memory_space<vmem>>, %arg17: memref<8x2xf32, #tpu.memory_space<vmem>>) attributes {dimension_semantics = [], scalar_prefetch = 0 : i64, scratch_operands = 0 : i64, tpu.core_type = #tpu.core_type<tc>} {
    %c0 = arith.constant 0 : index
    %c0_0 = arith.constant 0 : index
    %0 = vector.load %arg0[%c0, %c0_0] : memref<64x32xbf16, #tpu.memory_space<vmem>>, vector<64x32xbf16>
    %c0_1 = arith.constant 0 : index
    %c0_2 = arith.constant 0 : index
    %1 = vector.load %arg1[%c0_1, %c0_2] : memref<32x96xbf16, #tpu.memory_space<vmem>>, vector<32x96xbf16>
    %c0_3 = arith.constant 0 : index
    %c0_4 = arith.constant 0 : index
    %2 = vector.load %arg2[%c0_3, %c0_4] : memref<1x96xf32, #tpu.memory_space<vmem>>, vector<1x96xf32>
    %cst = arith.constant dense<0.000000e+00> : vector<64x96xf32>
    %3 = tpu.matmul %0, %1, %cst {dimension_numbers = #tpu.dot_dimension_numbers<[1], [0], [0], [1], [0, 0, 1, 1], [], []>} : vector<64x32xbf16>, vector<32x96xbf16>, vector<64x96xf32> -> vector<64x96xf32>
    %4 = vector.broadcast %2 : vector<1x96xf32> to vector<64x96xf32>
    %5 = arith.addf %3, %4 : vector<64x96xf32>
    %c0_5 = arith.constant 0 : index
    %c0_6 = arith.constant 0 : index
    %6 = vector.load %arg3[%c0_5, %c0_6] : memref<32x96xbf16, #tpu.memory_space<vmem>>, vector<32x96xbf16>
    %c0_7 = arith.constant 0 : index
    %c0_8 = arith.constant 0 : index
    %7 = vector.load %arg4[%c0_7, %c0_8] : memref<1x96xf32, #tpu.memory_space<vmem>>, vector<1x96xf32>
    %cst_9 = arith.constant dense<0.000000e+00> : vector<64x96xf32>
    %8 = tpu.matmul %0, %6, %cst_9 {dimension_numbers = #tpu.dot_dimension_numbers<[1], [0], [0], [1], [0, 0, 1, 1], [], []>} : vector<64x32xbf16>, vector<32x96xbf16>, vector<64x96xf32> -> vector<64x96xf32>
    %9 = vector.broadcast %7 : vector<1x96xf32> to vector<64x96xf32>
    %10 = arith.addf %8, %9 : vector<64x96xf32>
    %c0_10 = arith.constant 0 : index
    %c0_11 = arith.constant 0 : index
    %11 = vector.load %arg5[%c0_10, %c0_11] : memref<64x192xbf16, #tpu.memory_space<vmem>>, vector<64x192xbf16>
    %c0_12 = arith.constant 0 : index
    %c0_13 = arith.constant 0 : index
    %12 = vector.load %arg6[%c0_12, %c0_13] : memref<1x64xf32, #tpu.memory_space<vmem>>, vector<1x64xf32>
    %13 = vector.shape_cast %12 : vector<1x64xf32> to vector<1x64xf32>
    %14 = vector.broadcast %13 : vector<1x64xf32> to vector<8x64xf32>
    %15 = vector.extract_strided_slice %5 {offsets = [0, 0], sizes = [8, 96], strides = [1, 1]} : vector<64x96xf32> to vector<8x96xf32>
    %16 = vector.extract_strided_slice %10 {offsets = [56, 0], sizes = [8, 96], strides = [1, 1]} : vector<64x96xf32> to vector<8x96xf32>
    %17 = vector.extract_strided_slice %15 {offsets = [0, 0], sizes = [8, 32], strides = [1, 1]} : vector<8x96xf32> to vector<8x32xf32>
    %18 = vector.extract_strided_slice %16 {offsets = [0, 0], sizes = [8, 32], strides = [1, 1]} : vector<8x96xf32> to vector<8x32xf32>
    %19 = tpu.concatenate %17, %18 in 1 : vector<8x32xf32>, vector<8x32xf32> -> vector<8x64xf32>
    %20 = vector.extract_strided_slice %15 {offsets = [0, 32], sizes = [8, 32], strides = [1, 1]} : vector<8x96xf32> to vector<8x32xf32>
    %21 = vector.extract_strided_slice %16 {offsets = [0, 32], sizes = [8, 32], strides = [1, 1]} : vector<8x96xf32> to vector<8x32xf32>
    %22 = tpu.concatenate %20, %21 in 1 : vector<8x32xf32>, vector<8x32xf32> -> vector<8x64xf32>
    %23 = vector.extract_strided_slice %15 {offsets = [0, 64], sizes = [8, 32], strides = [1, 1]} : vector<8x96xf32> to vector<8x32xf32>
    %24 = vector.extract_strided_slice %16 {offsets = [0, 64], sizes = [8, 32], strides = [1, 1]} : vector<8x96xf32> to vector<8x32xf32>
    %25 = tpu.concatenate %23, %24 in 1 : vector<8x32xf32>, vector<8x32xf32> -> vector<8x64xf32>
    %26 = vector.extract_strided_slice %5 {offsets = [8, 0], sizes = [8, 96], strides = [1, 1]} : vector<64x96xf32> to vector<8x96xf32>
    %27 = vector.extract_strided_slice %10 {offsets = [48, 0], sizes = [8, 96], strides = [1, 1]} : vector<64x96xf32> to vector<8x96xf32>
    %28 = vector.extract_strided_slice %26 {offsets = [0, 0], sizes = [8, 32], strides = [1, 1]} : vector<8x96xf32> to vector<8x32xf32>
    %29 = vector.extract_strided_slice %27 {offsets = [0, 0], sizes = [8, 32], strides = [1, 1]} : vector<8x96xf32> to vector<8x32xf32>
    %30 = tpu.concatenate %28, %29 in 1 : vector<8x32xf32>, vector<8x32xf32> -> vector<8x64xf32>
    %31 = vector.extract_strided_slice %26 {offsets = [0, 32], sizes = [8, 32], strides = [1, 1]} : vector<8x96xf32> to vector<8x32xf32>
    %32 = vector.extract_strided_slice %27 {offsets = [0, 32], sizes = [8, 32], strides = [1, 1]} : vector<8x96xf32> to vector<8x32xf32>
    %33 = tpu.concatenate %31, %32 in 1 : vector<8x32xf32>, vector<8x32xf32> -> vector<8x64xf32>
    %34 = vector.extract_strided_slice %26 {offsets = [0, 64], sizes = [8, 32], strides = [1, 1]} : vector<8x96xf32> to vector<8x32xf32>
    %35 = vector.extract_strided_slice %27 {offsets = [0, 64], sizes = [8, 32], strides = [1, 1]} : vector<8x96xf32> to vector<8x32xf32>
    %36 = tpu.concatenate %34, %35 in 1 : vector<8x32xf32>, vector<8x32xf32> -> vector<8x64xf32>
    %37 = vector.extract_strided_slice %5 {offsets = [16, 0], sizes = [8, 96], strides = [1, 1]} : vector<64x96xf32> to vector<8x96xf32>
    %38 = vector.extract_strided_slice %10 {offsets = [40, 0], sizes = [8, 96], strides = [1, 1]} : vector<64x96xf32> to vector<8x96xf32>
    %39 = vector.extract_strided_slice %37 {offsets = [0, 0], sizes = [8, 32], strides = [1, 1]} : vector<8x96xf32> to vector<8x32xf32>
    %40 = vector.extract_strided_slice %38 {offsets = [0, 0], sizes = [8, 32], strides = [1, 1]} : vector<8x96xf32> to vector<8x32xf32>
    %41 = tpu.concatenate %39, %40 in 1 : vector<8x32xf32>, vector<8x32xf32> -> vector<8x64xf32>
    %42 = vector.extract_strided_slice %37 {offsets = [0, 32], sizes = [8, 32], strides = [1, 1]} : vector<8x96xf32> to vector<8x32xf32>
    %43 = vector.extract_strided_slice %38 {offsets = [0, 32], sizes = [8, 32], strides = [1, 1]} : vector<8x96xf32> to vector<8x32xf32>
    %44 = tpu.concatenate %42, %43 in 1 : vector<8x32xf32>, vector<8x32xf32> -> vector<8x64xf32>
    %45 = vector.extract_strided_slice %37 {offsets = [0, 64], sizes = [8, 32], strides = [1, 1]} : vector<8x96xf32> to vector<8x32xf32>
    %46 = vector.extract_strided_slice %38 {offsets = [0, 64], sizes = [8, 32], strides = [1, 1]} : vector<8x96xf32> to vector<8x32xf32>
    %47 = tpu.concatenate %45, %46 in 1 : vector<8x32xf32>, vector<8x32xf32> -> vector<8x64xf32>
    %48 = vector.extract_strided_slice %5 {offsets = [24, 0], sizes = [8, 96], strides = [1, 1]} : vector<64x96xf32> to vector<8x96xf32>
    %49 = vector.extract_strided_slice %10 {offsets = [32, 0], sizes = [8, 96], strides = [1, 1]} : vector<64x96xf32> to vector<8x96xf32>
    %50 = vector.extract_strided_slice %48 {offsets = [0, 0], sizes = [8, 32], strides = [1, 1]} : vector<8x96xf32> to vector<8x32xf32>
    %51 = vector.extract_strided_slice %49 {offsets = [0, 0], sizes = [8, 32], strides = [1, 1]} : vector<8x96xf32> to vector<8x32xf32>
    %52 = tpu.concatenate %50, %51 in 1 : vector<8x32xf32>, vector<8x32xf32> -> vector<8x64xf32>
    %53 = vector.extract_strided_slice %48 {offsets = [0, 32], sizes = [8, 32], strides = [1, 1]} : vector<8x96xf32> to vector<8x32xf32>
    %54 = vector.extract_strided_slice %49 {offsets = [0, 32], sizes = [8, 32], strides = [1, 1]} : vector<8x96xf32> to vector<8x32xf32>
    %55 = tpu.concatenate %53, %54 in 1 : vector<8x32xf32>, vector<8x32xf32> -> vector<8x64xf32>
    %56 = vector.extract_strided_slice %48 {offsets = [0, 64], sizes = [8, 32], strides = [1, 1]} : vector<8x96xf32> to vector<8x32xf32>
    %57 = vector.extract_strided_slice %49 {offsets = [0, 64], sizes = [8, 32], strides = [1, 1]} : vector<8x96xf32> to vector<8x32xf32>
    %58 = tpu.concatenate %56, %57 in 1 : vector<8x32xf32>, vector<8x32xf32> -> vector<8x64xf32>
    %59 = vector.extract_strided_slice %5 {offsets = [32, 0], sizes = [8, 96], strides = [1, 1]} : vector<64x96xf32> to vector<8x96xf32>
    %60 = vector.extract_strided_slice %10 {offsets = [24, 0], sizes = [8, 96], strides = [1, 1]} : vector<64x96xf32> to vector<8x96xf32>
    %61 = vector.extract_strided_slice %59 {offsets = [0, 0], sizes = [8, 32], strides = [1, 1]} : vector<8x96xf32> to vector<8x32xf32>
    %62 = vector.extract_strided_slice %60 {offsets = [0, 0], sizes = [8, 32], strides = [1, 1]} : vector<8x96xf32> to vector<8x32xf32>
    %63 = tpu.concatenate %61, %62 in 1 : vector<8x32xf32>, vector<8x32xf32> -> vector<8x64xf32>
    %64 = vector.extract_strided_slice %59 {offsets = [0, 32], sizes = [8, 32], strides = [1, 1]} : vector<8x96xf32> to vector<8x32xf32>
    %65 = vector.extract_strided_slice %60 {offsets = [0, 32], sizes = [8, 32], strides = [1, 1]} : vector<8x96xf32> to vector<8x32xf32>
    %66 = tpu.concatenate %64, %65 in 1 : vector<8x32xf32>, vector<8x32xf32> -> vector<8x64xf32>
    %67 = vector.extract_strided_slice %59 {offsets = [0, 64], sizes = [8, 32], strides = [1, 1]} : vector<8x96xf32> to vector<8x32xf32>
    %68 = vector.extract_strided_slice %60 {offsets = [0, 64], sizes = [8, 32], strides = [1, 1]} : vector<8x96xf32> to vector<8x32xf32>
    %69 = tpu.concatenate %67, %68 in 1 : vector<8x32xf32>, vector<8x32xf32> -> vector<8x64xf32>
    %70 = vector.extract_strided_slice %5 {offsets = [40, 0], sizes = [8, 96], strides = [1, 1]} : vector<64x96xf32> to vector<8x96xf32>
    %71 = vector.extract_strided_slice %10 {offsets = [16, 0], sizes = [8, 96], strides = [1, 1]} : vector<64x96xf32> to vector<8x96xf32>
    %72 = vector.extract_strided_slice %70 {offsets = [0, 0], sizes = [8, 32], strides = [1, 1]} : vector<8x96xf32> to vector<8x32xf32>
    %73 = vector.extract_strided_slice %71 {offsets = [0, 0], sizes = [8, 32], strides = [1, 1]} : vector<8x96xf32> to vector<8x32xf32>
    %74 = tpu.concatenate %72, %73 in 1 : vector<8x32xf32>, vector<8x32xf32> -> vector<8x64xf32>
    %75 = vector.extract_strided_slice %70 {offsets = [0, 32], sizes = [8, 32], strides = [1, 1]} : vector<8x96xf32> to vector<8x32xf32>
    %76 = vector.extract_strided_slice %71 {offsets = [0, 32], sizes = [8, 32], strides = [1, 1]} : vector<8x96xf32> to vector<8x32xf32>
    %77 = tpu.concatenate %75, %76 in 1 : vector<8x32xf32>, vector<8x32xf32> -> vector<8x64xf32>
    %78 = vector.extract_strided_slice %70 {offsets = [0, 64], sizes = [8, 32], strides = [1, 1]} : vector<8x96xf32> to vector<8x32xf32>
    %79 = vector.extract_strided_slice %71 {offsets = [0, 64], sizes = [8, 32], strides = [1, 1]} : vector<8x96xf32> to vector<8x32xf32>
    %80 = tpu.concatenate %78, %79 in 1 : vector<8x32xf32>, vector<8x32xf32> -> vector<8x64xf32>
    %81 = vector.extract_strided_slice %5 {offsets = [48, 0], sizes = [8, 96], strides = [1, 1]} : vector<64x96xf32> to vector<8x96xf32>
    %82 = vector.extract_strided_slice %10 {offsets = [8, 0], sizes = [8, 96], strides = [1, 1]} : vector<64x96xf32> to vector<8x96xf32>
    %83 = vector.extract_strided_slice %81 {offsets = [0, 0], sizes = [8, 32], strides = [1, 1]} : vector<8x96xf32> to vector<8x32xf32>
    %84 = vector.extract_strided_slice %82 {offsets = [0, 0], sizes = [8, 32], strides = [1, 1]} : vector<8x96xf32> to vector<8x32xf32>
    %85 = tpu.concatenate %83, %84 in 1 : vector<8x32xf32>, vector<8x32xf32> -> vector<8x64xf32>
    %86 = vector.extract_strided_slice %81 {offsets = [0, 32], sizes = [8, 32], strides = [1, 1]} : vector<8x96xf32> to vector<8x32xf32>
    %87 = vector.extract_strided_slice %82 {offsets = [0, 32], sizes = [8, 32], strides = [1, 1]} : vector<8x96xf32> to vector<8x32xf32>
    %88 = tpu.concatenate %86, %87 in 1 : vector<8x32xf32>, vector<8x32xf32> -> vector<8x64xf32>
    %89 = vector.extract_strided_slice %81 {offsets = [0, 64], sizes = [8, 32], strides = [1, 1]} : vector<8x96xf32> to vector<8x32xf32>
    %90 = vector.extract_strided_slice %82 {offsets = [0, 64], sizes = [8, 32], strides = [1, 1]} : vector<8x96xf32> to vector<8x32xf32>
    %91 = tpu.concatenate %89, %90 in 1 : vector<8x32xf32>, vector<8x32xf32> -> vector<8x64xf32>
    %92 = vector.extract_strided_slice %5 {offsets = [56, 0], sizes = [8, 96], strides = [1, 1]} : vector<64x96xf32> to vector<8x96xf32>
    %93 = vector.extract_strided_slice %10 {offsets = [0, 0], sizes = [8, 96], strides = [1, 1]} : vector<64x96xf32> to vector<8x96xf32>
    %94 = vector.extract_strided_slice %92 {offsets = [0, 0], sizes = [8, 32], strides = [1, 1]} : vector<8x96xf32> to vector<8x32xf32>
    %95 = vector.extract_strided_slice %93 {offsets = [0, 0], sizes = [8, 32], strides = [1, 1]} : vector<8x96xf32> to vector<8x32xf32>
    %96 = tpu.concatenate %94, %95 in 1 : vector<8x32xf32>, vector<8x32xf32> -> vector<8x64xf32>
    %97 = vector.extract_strided_slice %92 {offsets = [0, 32], sizes = [8, 32], strides = [1, 1]} : vector<8x96xf32> to vector<8x32xf32>
    %98 = vector.extract_strided_slice %93 {offsets = [0, 32], sizes = [8, 32], strides = [1, 1]} : vector<8x96xf32> to vector<8x32xf32>
    %99 = tpu.concatenate %97, %98 in 1 : vector<8x32xf32>, vector<8x32xf32> -> vector<8x64xf32>
    %100 = vector.extract_strided_slice %92 {offsets = [0, 64], sizes = [8, 32], strides = [1, 1]} : vector<8x96xf32> to vector<8x32xf32>
    %101 = vector.extract_strided_slice %93 {offsets = [0, 64], sizes = [8, 32], strides = [1, 1]} : vector<8x96xf32> to vector<8x32xf32>
    %102 = tpu.concatenate %100, %101 in 1 : vector<8x32xf32>, vector<8x32xf32> -> vector<8x64xf32>
    %cst_14 = arith.constant 0.000000e+00 : f32
    %103 = vector.broadcast %cst_14 : f32 to vector<8x64xf32>
    %104 = arith.truncf %103 : vector<8x64xf32> to vector<8x64xbf16>
    %cst_15 = arith.constant dense<0.000000e+00> : vector<8x192xf32>
    %105 = tpu.matmul %104, %11, %cst_15 {dimension_numbers = #tpu.dot_dimension_numbers<[1], [0], [0], [1], [0, 0, 1, 1], [], []>} : vector<8x64xbf16>, vector<64x192xbf16>, vector<8x192xf32> -> vector<8x192xf32>
    %106 = vector.extract_strided_slice %105 {offsets = [0, 0], sizes = [8, 64], strides = [1, 1]} : vector<8x192xf32> to vector<8x64xf32>
    %107 = vector.extract_strided_slice %105 {offsets = [0, 64], sizes = [8, 64], strides = [1, 1]} : vector<8x192xf32> to vector<8x64xf32>
    %108 = vector.extract_strided_slice %105 {offsets = [0, 128], sizes = [8, 64], strides = [1, 1]} : vector<8x192xf32> to vector<8x64xf32>
    %109 = arith.addf %108, %14 : vector<8x64xf32>
    %110 = arith.addf %19, %106 : vector<8x64xf32>
    %111 = arith.negf %110 : vector<8x64xf32>
    %112 = math.exp %111 : vector<8x64xf32>
    %cst_16 = arith.constant 1.000000e+00 : f32
    %113 = vector.broadcast %cst_16 : f32 to vector<8x64xf32>
    %114 = arith.addf %113, %112 : vector<8x64xf32>
    %115 = arith.divf %113, %114 : vector<8x64xf32>
    %116 = arith.addf %22, %107 : vector<8x64xf32>
    %117 = arith.negf %116 : vector<8x64xf32>
    %118 = math.exp %117 : vector<8x64xf32>
    %cst_17 = arith.constant 1.000000e+00 : f32
    %119 = vector.broadcast %cst_17 : f32 to vector<8x64xf32>
    %120 = arith.addf %119, %118 : vector<8x64xf32>
    %121 = arith.divf %119, %120 : vector<8x64xf32>
    %122 = arith.mulf %115, %109 : vector<8x64xf32>
    %123 = arith.addf %25, %122 : vector<8x64xf32>
    %124 = math.tanh %123 : vector<8x64xf32>
    %cst_18 = arith.constant 1.000000e+00 : f32
    %125 = vector.broadcast %cst_18 : f32 to vector<8x64xf32>
    %126 = arith.subf %125, %121 : vector<8x64xf32>
    %127 = arith.mulf %126, %124 : vector<8x64xf32>
    %128 = arith.mulf %121, %103 : vector<8x64xf32>
    %129 = arith.addf %127, %128 : vector<8x64xf32>
    %130 = arith.truncf %129 : vector<8x64xf32> to vector<8x64xbf16>
    %cst_19 = arith.constant dense<0.000000e+00> : vector<8x192xf32>
    %131 = tpu.matmul %130, %11, %cst_19 {dimension_numbers = #tpu.dot_dimension_numbers<[1], [0], [0], [1], [0, 0, 1, 1], [], []>} : vector<8x64xbf16>, vector<64x192xbf16>, vector<8x192xf32> -> vector<8x192xf32>
    %132 = vector.extract_strided_slice %131 {offsets = [0, 0], sizes = [8, 64], strides = [1, 1]} : vector<8x192xf32> to vector<8x64xf32>
    %133 = vector.extract_strided_slice %131 {offsets = [0, 64], sizes = [8, 64], strides = [1, 1]} : vector<8x192xf32> to vector<8x64xf32>
    %134 = vector.extract_strided_slice %131 {offsets = [0, 128], sizes = [8, 64], strides = [1, 1]} : vector<8x192xf32> to vector<8x64xf32>
    %135 = arith.addf %134, %14 : vector<8x64xf32>
    %136 = arith.addf %30, %132 : vector<8x64xf32>
    %137 = arith.negf %136 : vector<8x64xf32>
    %138 = math.exp %137 : vector<8x64xf32>
    %cst_20 = arith.constant 1.000000e+00 : f32
    %139 = vector.broadcast %cst_20 : f32 to vector<8x64xf32>
    %140 = arith.addf %139, %138 : vector<8x64xf32>
    %141 = arith.divf %139, %140 : vector<8x64xf32>
    %142 = arith.addf %33, %133 : vector<8x64xf32>
    %143 = arith.negf %142 : vector<8x64xf32>
    %144 = math.exp %143 : vector<8x64xf32>
    %cst_21 = arith.constant 1.000000e+00 : f32
    %145 = vector.broadcast %cst_21 : f32 to vector<8x64xf32>
    %146 = arith.addf %145, %144 : vector<8x64xf32>
    %147 = arith.divf %145, %146 : vector<8x64xf32>
    %148 = arith.mulf %141, %135 : vector<8x64xf32>
    %149 = arith.addf %36, %148 : vector<8x64xf32>
    %150 = math.tanh %149 : vector<8x64xf32>
    %cst_22 = arith.constant 1.000000e+00 : f32
    %151 = vector.broadcast %cst_22 : f32 to vector<8x64xf32>
    %152 = arith.subf %151, %147 : vector<8x64xf32>
    %153 = arith.mulf %152, %150 : vector<8x64xf32>
    %154 = arith.mulf %147, %129 : vector<8x64xf32>
    %155 = arith.addf %153, %154 : vector<8x64xf32>
    %156 = arith.truncf %155 : vector<8x64xf32> to vector<8x64xbf16>
    %cst_23 = arith.constant dense<0.000000e+00> : vector<8x192xf32>
    %157 = tpu.matmul %156, %11, %cst_23 {dimension_numbers = #tpu.dot_dimension_numbers<[1], [0], [0], [1], [0, 0, 1, 1], [], []>} : vector<8x64xbf16>, vector<64x192xbf16>, vector<8x192xf32> -> vector<8x192xf32>
    %158 = vector.extract_strided_slice %157 {offsets = [0, 0], sizes = [8, 64], strides = [1, 1]} : vector<8x192xf32> to vector<8x64xf32>
    %159 = vector.extract_strided_slice %157 {offsets = [0, 64], sizes = [8, 64], strides = [1, 1]} : vector<8x192xf32> to vector<8x64xf32>
    %160 = vector.extract_strided_slice %157 {offsets = [0, 128], sizes = [8, 64], strides = [1, 1]} : vector<8x192xf32> to vector<8x64xf32>
    %161 = arith.addf %160, %14 : vector<8x64xf32>
    %162 = arith.addf %41, %158 : vector<8x64xf32>
    %163 = arith.negf %162 : vector<8x64xf32>
    %164 = math.exp %163 : vector<8x64xf32>
    %cst_24 = arith.constant 1.000000e+00 : f32
    %165 = vector.broadcast %cst_24 : f32 to vector<8x64xf32>
    %166 = arith.addf %165, %164 : vector<8x64xf32>
    %167 = arith.divf %165, %166 : vector<8x64xf32>
    %168 = arith.addf %44, %159 : vector<8x64xf32>
    %169 = arith.negf %168 : vector<8x64xf32>
    %170 = math.exp %169 : vector<8x64xf32>
    %cst_25 = arith.constant 1.000000e+00 : f32
    %171 = vector.broadcast %cst_25 : f32 to vector<8x64xf32>
    %172 = arith.addf %171, %170 : vector<8x64xf32>
    %173 = arith.divf %171, %172 : vector<8x64xf32>
    %174 = arith.mulf %167, %161 : vector<8x64xf32>
    %175 = arith.addf %47, %174 : vector<8x64xf32>
    %176 = math.tanh %175 : vector<8x64xf32>
    %cst_26 = arith.constant 1.000000e+00 : f32
    %177 = vector.broadcast %cst_26 : f32 to vector<8x64xf32>
    %178 = arith.subf %177, %173 : vector<8x64xf32>
    %179 = arith.mulf %178, %176 : vector<8x64xf32>
    %180 = arith.mulf %173, %155 : vector<8x64xf32>
    %181 = arith.addf %179, %180 : vector<8x64xf32>
    %182 = arith.truncf %181 : vector<8x64xf32> to vector<8x64xbf16>
    %cst_27 = arith.constant dense<0.000000e+00> : vector<8x192xf32>
    %183 = tpu.matmul %182, %11, %cst_27 {dimension_numbers = #tpu.dot_dimension_numbers<[1], [0], [0], [1], [0, 0, 1, 1], [], []>} : vector<8x64xbf16>, vector<64x192xbf16>, vector<8x192xf32> -> vector<8x192xf32>
    %184 = vector.extract_strided_slice %183 {offsets = [0, 0], sizes = [8, 64], strides = [1, 1]} : vector<8x192xf32> to vector<8x64xf32>
    %185 = vector.extract_strided_slice %183 {offsets = [0, 64], sizes = [8, 64], strides = [1, 1]} : vector<8x192xf32> to vector<8x64xf32>
    %186 = vector.extract_strided_slice %183 {offsets = [0, 128], sizes = [8, 64], strides = [1, 1]} : vector<8x192xf32> to vector<8x64xf32>
    %187 = arith.addf %186, %14 : vector<8x64xf32>
    %188 = arith.addf %52, %184 : vector<8x64xf32>
    %189 = arith.negf %188 : vector<8x64xf32>
    %190 = math.exp %189 : vector<8x64xf32>
    %cst_28 = arith.constant 1.000000e+00 : f32
    %191 = vector.broadcast %cst_28 : f32 to vector<8x64xf32>
    %192 = arith.addf %191, %190 : vector<8x64xf32>
    %193 = arith.divf %191, %192 : vector<8x64xf32>
    %194 = arith.addf %55, %185 : vector<8x64xf32>
    %195 = arith.negf %194 : vector<8x64xf32>
    %196 = math.exp %195 : vector<8x64xf32>
    %cst_29 = arith.constant 1.000000e+00 : f32
    %197 = vector.broadcast %cst_29 : f32 to vector<8x64xf32>
    %198 = arith.addf %197, %196 : vector<8x64xf32>
    %199 = arith.divf %197, %198 : vector<8x64xf32>
    %200 = arith.mulf %193, %187 : vector<8x64xf32>
    %201 = arith.addf %58, %200 : vector<8x64xf32>
    %202 = math.tanh %201 : vector<8x64xf32>
    %cst_30 = arith.constant 1.000000e+00 : f32
    %203 = vector.broadcast %cst_30 : f32 to vector<8x64xf32>
    %204 = arith.subf %203, %199 : vector<8x64xf32>
    %205 = arith.mulf %204, %202 : vector<8x64xf32>
    %206 = arith.mulf %199, %181 : vector<8x64xf32>
    %207 = arith.addf %205, %206 : vector<8x64xf32>
    %208 = arith.truncf %207 : vector<8x64xf32> to vector<8x64xbf16>
    %cst_31 = arith.constant dense<0.000000e+00> : vector<8x192xf32>
    %209 = tpu.matmul %208, %11, %cst_31 {dimension_numbers = #tpu.dot_dimension_numbers<[1], [0], [0], [1], [0, 0, 1, 1], [], []>} : vector<8x64xbf16>, vector<64x192xbf16>, vector<8x192xf32> -> vector<8x192xf32>
    %210 = vector.extract_strided_slice %209 {offsets = [0, 0], sizes = [8, 64], strides = [1, 1]} : vector<8x192xf32> to vector<8x64xf32>
    %211 = vector.extract_strided_slice %209 {offsets = [0, 64], sizes = [8, 64], strides = [1, 1]} : vector<8x192xf32> to vector<8x64xf32>
    %212 = vector.extract_strided_slice %209 {offsets = [0, 128], sizes = [8, 64], strides = [1, 1]} : vector<8x192xf32> to vector<8x64xf32>
    %213 = arith.addf %212, %14 : vector<8x64xf32>
    %214 = arith.addf %63, %210 : vector<8x64xf32>
    %215 = arith.negf %214 : vector<8x64xf32>
    %216 = math.exp %215 : vector<8x64xf32>
    %cst_32 = arith.constant 1.000000e+00 : f32
    %217 = vector.broadcast %cst_32 : f32 to vector<8x64xf32>
    %218 = arith.addf %217, %216 : vector<8x64xf32>
    %219 = arith.divf %217, %218 : vector<8x64xf32>
    %220 = arith.addf %66, %211 : vector<8x64xf32>
    %221 = arith.negf %220 : vector<8x64xf32>
    %222 = math.exp %221 : vector<8x64xf32>
    %cst_33 = arith.constant 1.000000e+00 : f32
    %223 = vector.broadcast %cst_33 : f32 to vector<8x64xf32>
    %224 = arith.addf %223, %222 : vector<8x64xf32>
    %225 = arith.divf %223, %224 : vector<8x64xf32>
    %226 = arith.mulf %219, %213 : vector<8x64xf32>
    %227 = arith.addf %69, %226 : vector<8x64xf32>
    %228 = math.tanh %227 : vector<8x64xf32>
    %cst_34 = arith.constant 1.000000e+00 : f32
    %229 = vector.broadcast %cst_34 : f32 to vector<8x64xf32>
    %230 = arith.subf %229, %225 : vector<8x64xf32>
    %231 = arith.mulf %230, %228 : vector<8x64xf32>
    %232 = arith.mulf %225, %207 : vector<8x64xf32>
    %233 = arith.addf %231, %232 : vector<8x64xf32>
    %234 = arith.truncf %233 : vector<8x64xf32> to vector<8x64xbf16>
    %cst_35 = arith.constant dense<0.000000e+00> : vector<8x192xf32>
    %235 = tpu.matmul %234, %11, %cst_35 {dimension_numbers = #tpu.dot_dimension_numbers<[1], [0], [0], [1], [0, 0, 1, 1], [], []>} : vector<8x64xbf16>, vector<64x192xbf16>, vector<8x192xf32> -> vector<8x192xf32>
    %236 = vector.extract_strided_slice %235 {offsets = [0, 0], sizes = [8, 64], strides = [1, 1]} : vector<8x192xf32> to vector<8x64xf32>
    %237 = vector.extract_strided_slice %235 {offsets = [0, 64], sizes = [8, 64], strides = [1, 1]} : vector<8x192xf32> to vector<8x64xf32>
    %238 = vector.extract_strided_slice %235 {offsets = [0, 128], sizes = [8, 64], strides = [1, 1]} : vector<8x192xf32> to vector<8x64xf32>
    %239 = arith.addf %238, %14 : vector<8x64xf32>
    %240 = arith.addf %74, %236 : vector<8x64xf32>
    %241 = arith.negf %240 : vector<8x64xf32>
    %242 = math.exp %241 : vector<8x64xf32>
    %cst_36 = arith.constant 1.000000e+00 : f32
    %243 = vector.broadcast %cst_36 : f32 to vector<8x64xf32>
    %244 = arith.addf %243, %242 : vector<8x64xf32>
    %245 = arith.divf %243, %244 : vector<8x64xf32>
    %246 = arith.addf %77, %237 : vector<8x64xf32>
    %247 = arith.negf %246 : vector<8x64xf32>
    %248 = math.exp %247 : vector<8x64xf32>
    %cst_37 = arith.constant 1.000000e+00 : f32
    %249 = vector.broadcast %cst_37 : f32 to vector<8x64xf32>
    %250 = arith.addf %249, %248 : vector<8x64xf32>
    %251 = arith.divf %249, %250 : vector<8x64xf32>
    %252 = arith.mulf %245, %239 : vector<8x64xf32>
    %253 = arith.addf %80, %252 : vector<8x64xf32>
    %254 = math.tanh %253 : vector<8x64xf32>
    %cst_38 = arith.constant 1.000000e+00 : f32
    %255 = vector.broadcast %cst_38 : f32 to vector<8x64xf32>
    %256 = arith.subf %255, %251 : vector<8x64xf32>
    %257 = arith.mulf %256, %254 : vector<8x64xf32>
    %258 = arith.mulf %251, %233 : vector<8x64xf32>
    %259 = arith.addf %257, %258 : vector<8x64xf32>
    %260 = arith.truncf %259 : vector<8x64xf32> to vector<8x64xbf16>
    %cst_39 = arith.constant dense<0.000000e+00> : vector<8x192xf32>
    %261 = tpu.matmul %260, %11, %cst_39 {dimension_numbers = #tpu.dot_dimension_numbers<[1], [0], [0], [1], [0, 0, 1, 1], [], []>} : vector<8x64xbf16>, vector<64x192xbf16>, vector<8x192xf32> -> vector<8x192xf32>
    %262 = vector.extract_strided_slice %261 {offsets = [0, 0], sizes = [8, 64], strides = [1, 1]} : vector<8x192xf32> to vector<8x64xf32>
    %263 = vector.extract_strided_slice %261 {offsets = [0, 64], sizes = [8, 64], strides = [1, 1]} : vector<8x192xf32> to vector<8x64xf32>
    %264 = vector.extract_strided_slice %261 {offsets = [0, 128], sizes = [8, 64], strides = [1, 1]} : vector<8x192xf32> to vector<8x64xf32>
    %265 = arith.addf %264, %14 : vector<8x64xf32>
    %266 = arith.addf %85, %262 : vector<8x64xf32>
    %267 = arith.negf %266 : vector<8x64xf32>
    %268 = math.exp %267 : vector<8x64xf32>
    %cst_40 = arith.constant 1.000000e+00 : f32
    %269 = vector.broadcast %cst_40 : f32 to vector<8x64xf32>
    %270 = arith.addf %269, %268 : vector<8x64xf32>
    %271 = arith.divf %269, %270 : vector<8x64xf32>
    %272 = arith.addf %88, %263 : vector<8x64xf32>
    %273 = arith.negf %272 : vector<8x64xf32>
    %274 = math.exp %273 : vector<8x64xf32>
    %cst_41 = arith.constant 1.000000e+00 : f32
    %275 = vector.broadcast %cst_41 : f32 to vector<8x64xf32>
    %276 = arith.addf %275, %274 : vector<8x64xf32>
    %277 = arith.divf %275, %276 : vector<8x64xf32>
    %278 = arith.mulf %271, %265 : vector<8x64xf32>
    %279 = arith.addf %91, %278 : vector<8x64xf32>
    %280 = math.tanh %279 : vector<8x64xf32>
    %cst_42 = arith.constant 1.000000e+00 : f32
    %281 = vector.broadcast %cst_42 : f32 to vector<8x64xf32>
    %282 = arith.subf %281, %277 : vector<8x64xf32>
    %283 = arith.mulf %282, %280 : vector<8x64xf32>
    %284 = arith.mulf %277, %259 : vector<8x64xf32>
    %285 = arith.addf %283, %284 : vector<8x64xf32>
    %286 = arith.truncf %285 : vector<8x64xf32> to vector<8x64xbf16>
    %cst_43 = arith.constant dense<0.000000e+00> : vector<8x192xf32>
    %287 = tpu.matmul %286, %11, %cst_43 {dimension_numbers = #tpu.dot_dimension_numbers<[1], [0], [0], [1], [0, 0, 1, 1], [], []>} : vector<8x64xbf16>, vector<64x192xbf16>, vector<8x192xf32> -> vector<8x192xf32>
    %288 = vector.extract_strided_slice %287 {offsets = [0, 0], sizes = [8, 64], strides = [1, 1]} : vector<8x192xf32> to vector<8x64xf32>
    %289 = vector.extract_strided_slice %287 {offsets = [0, 64], sizes = [8, 64], strides = [1, 1]} : vector<8x192xf32> to vector<8x64xf32>
    %290 = vector.extract_strided_slice %287 {offsets = [0, 128], sizes = [8, 64], strides = [1, 1]} : vector<8x192xf32> to vector<8x64xf32>
    %291 = arith.addf %290, %14 : vector<8x64xf32>
    %292 = arith.addf %96, %288 : vector<8x64xf32>
    %293 = arith.negf %292 : vector<8x64xf32>
    %294 = math.exp %293 : vector<8x64xf32>
    %cst_44 = arith.constant 1.000000e+00 : f32
    %295 = vector.broadcast %cst_44 : f32 to vector<8x64xf32>
    %296 = arith.addf %295, %294 : vector<8x64xf32>
    %297 = arith.divf %295, %296 : vector<8x64xf32>
    %298 = arith.addf %99, %289 : vector<8x64xf32>
    %299 = arith.negf %298 : vector<8x64xf32>
    %300 = math.exp %299 : vector<8x64xf32>
    %cst_45 = arith.constant 1.000000e+00 : f32
    %301 = vector.broadcast %cst_45 : f32 to vector<8x64xf32>
    %302 = arith.addf %301, %300 : vector<8x64xf32>
    %303 = arith.divf %301, %302 : vector<8x64xf32>
    %304 = arith.mulf %297, %291 : vector<8x64xf32>
    %305 = arith.addf %102, %304 : vector<8x64xf32>
    %306 = math.tanh %305 : vector<8x64xf32>
    %cst_46 = arith.constant 1.000000e+00 : f32
    %307 = vector.broadcast %cst_46 : f32 to vector<8x64xf32>
    %308 = arith.subf %307, %303 : vector<8x64xf32>
    %309 = arith.mulf %308, %306 : vector<8x64xf32>
    %310 = arith.mulf %303, %285 : vector<8x64xf32>
    %311 = arith.addf %309, %310 : vector<8x64xf32>
    %312 = vector.extract_strided_slice %129 {offsets = [0, 0], sizes = [8, 32], strides = [1, 1]} : vector<8x64xf32> to vector<8x32xf32>
    %313 = vector.extract_strided_slice %311 {offsets = [0, 32], sizes = [8, 32], strides = [1, 1]} : vector<8x64xf32> to vector<8x32xf32>
    %314 = tpu.concatenate %312, %313 in 1 : vector<8x32xf32>, vector<8x32xf32> -> vector<8x64xf32>
    %315 = vector.extract_strided_slice %155 {offsets = [0, 0], sizes = [8, 32], strides = [1, 1]} : vector<8x64xf32> to vector<8x32xf32>
    %316 = vector.extract_strided_slice %285 {offsets = [0, 32], sizes = [8, 32], strides = [1, 1]} : vector<8x64xf32> to vector<8x32xf32>
    %317 = tpu.concatenate %315, %316 in 1 : vector<8x32xf32>, vector<8x32xf32> -> vector<8x64xf32>
    %318 = vector.extract_strided_slice %181 {offsets = [0, 0], sizes = [8, 32], strides = [1, 1]} : vector<8x64xf32> to vector<8x32xf32>
    %319 = vector.extract_strided_slice %259 {offsets = [0, 32], sizes = [8, 32], strides = [1, 1]} : vector<8x64xf32> to vector<8x32xf32>
    %320 = tpu.concatenate %318, %319 in 1 : vector<8x32xf32>, vector<8x32xf32> -> vector<8x64xf32>
    %321 = vector.extract_strided_slice %207 {offsets = [0, 0], sizes = [8, 32], strides = [1, 1]} : vector<8x64xf32> to vector<8x32xf32>
    %322 = vector.extract_strided_slice %233 {offsets = [0, 32], sizes = [8, 32], strides = [1, 1]} : vector<8x64xf32> to vector<8x32xf32>
    %323 = tpu.concatenate %321, %322 in 1 : vector<8x32xf32>, vector<8x32xf32> -> vector<8x64xf32>
    %324 = vector.extract_strided_slice %233 {offsets = [0, 0], sizes = [8, 32], strides = [1, 1]} : vector<8x64xf32> to vector<8x32xf32>
    %325 = vector.extract_strided_slice %207 {offsets = [0, 32], sizes = [8, 32], strides = [1, 1]} : vector<8x64xf32> to vector<8x32xf32>
    %326 = tpu.concatenate %324, %325 in 1 : vector<8x32xf32>, vector<8x32xf32> -> vector<8x64xf32>
    %327 = vector.extract_strided_slice %259 {offsets = [0, 0], sizes = [8, 32], strides = [1, 1]} : vector<8x64xf32> to vector<8x32xf32>
    %328 = vector.extract_strided_slice %181 {offsets = [0, 32], sizes = [8, 32], strides = [1, 1]} : vector<8x64xf32> to vector<8x32xf32>
    %329 = tpu.concatenate %327, %328 in 1 : vector<8x32xf32>, vector<8x32xf32> -> vector<8x64xf32>
    %330 = vector.extract_strided_slice %285 {offsets = [0, 0], sizes = [8, 32], strides = [1, 1]} : vector<8x64xf32> to vector<8x32xf32>
    %331 = vector.extract_strided_slice %155 {offsets = [0, 32], sizes = [8, 32], strides = [1, 1]} : vector<8x64xf32> to vector<8x32xf32>
    %332 = tpu.concatenate %330, %331 in 1 : vector<8x32xf32>, vector<8x32xf32> -> vector<8x64xf32>
    %333 = vector.extract_strided_slice %311 {offsets = [0, 0], sizes = [8, 32], strides = [1, 1]} : vector<8x64xf32> to vector<8x32xf32>
    %334 = vector.extract_strided_slice %129 {offsets = [0, 32], sizes = [8, 32], strides = [1, 1]} : vector<8x64xf32> to vector<8x32xf32>
    %335 = tpu.concatenate %333, %334 in 1 : vector<8x32xf32>, vector<8x32xf32> -> vector<8x64xf32>
    %336 = tpu.concatenate %314, %317, %320, %323, %326, %329, %332, %335 in 0 : vector<8x64xf32>, vector<8x64xf32>, vector<8x64xf32>, vector<8x64xf32>, vector<8x64xf32>, vector<8x64xf32>, vector<8x64xf32>, vector<8x64xf32> -> vector<64x64xf32>
    %337 = arith.truncf %336 : vector<64x64xf32> to vector<64x64xbf16>
    %c0_47 = arith.constant 0 : index
    %c0_48 = arith.constant 0 : index
    %338 = vector.load %arg7[%c0_47, %c0_48] : memref<64x96xbf16, #tpu.memory_space<vmem>>, vector<64x96xbf16>
    %c0_49 = arith.constant 0 : index
    %c0_50 = arith.constant 0 : index
    %339 = vector.load %arg8[%c0_49, %c0_50] : memref<1x96xf32, #tpu.memory_space<vmem>>, vector<1x96xf32>
    %cst_51 = arith.constant dense<0.000000e+00> : vector<64x96xf32>
    %340 = tpu.matmul %337, %338, %cst_51 {dimension_numbers = #tpu.dot_dimension_numbers<[1], [0], [0], [1], [0, 0, 1, 1], [], []>} : vector<64x64xbf16>, vector<64x96xbf16>, vector<64x96xf32> -> vector<64x96xf32>
    %341 = vector.broadcast %339 : vector<1x96xf32> to vector<64x96xf32>
    %342 = arith.addf %340, %341 : vector<64x96xf32>
    %c0_52 = arith.constant 0 : index
    %c0_53 = arith.constant 0 : index
    %343 = vector.load %arg9[%c0_52, %c0_53] : memref<64x96xbf16, #tpu.memory_space<vmem>>, vector<64x96xbf16>
    %c0_54 = arith.constant 0 : index
    %c0_55 = arith.constant 0 : index
    %344 = vector.load %arg10[%c0_54, %c0_55] : memref<1x96xf32, #tpu.memory_space<vmem>>, vector<1x96xf32>
    %cst_56 = arith.constant dense<0.000000e+00> : vector<64x96xf32>
    %345 = tpu.matmul %337, %343, %cst_56 {dimension_numbers = #tpu.dot_dimension_numbers<[1], [0], [0], [1], [0, 0, 1, 1], [], []>} : vector<64x64xbf16>, vector<64x96xbf16>, vector<64x96xf32> -> vector<64x96xf32>
    %346 = vector.broadcast %344 : vector<1x96xf32> to vector<64x96xf32>
    %347 = arith.addf %345, %346 : vector<64x96xf32>
    %c0_57 = arith.constant 0 : index
    %c0_58 = arith.constant 0 : index
    %348 = vector.load %arg11[%c0_57, %c0_58] : memref<64x192xbf16, #tpu.memory_space<vmem>>, vector<64x192xbf16>
    %c0_59 = arith.constant 0 : index
    %c0_60 = arith.constant 0 : index
    %349 = vector.load %arg12[%c0_59, %c0_60] : memref<1x64xf32, #tpu.memory_space<vmem>>, vector<1x64xf32>
    %350 = vector.shape_cast %349 : vector<1x64xf32> to vector<1x64xf32>
    %351 = vector.broadcast %350 : vector<1x64xf32> to vector<8x64xf32>
    %352 = vector.extract_strided_slice %342 {offsets = [0, 0], sizes = [8, 96], strides = [1, 1]} : vector<64x96xf32> to vector<8x96xf32>
    %353 = vector.extract_strided_slice %347 {offsets = [56, 0], sizes = [8, 96], strides = [1, 1]} : vector<64x96xf32> to vector<8x96xf32>
    %354 = vector.extract_strided_slice %352 {offsets = [0, 0], sizes = [8, 32], strides = [1, 1]} : vector<8x96xf32> to vector<8x32xf32>
    %355 = vector.extract_strided_slice %353 {offsets = [0, 0], sizes = [8, 32], strides = [1, 1]} : vector<8x96xf32> to vector<8x32xf32>
    %356 = tpu.concatenate %354, %355 in 1 : vector<8x32xf32>, vector<8x32xf32> -> vector<8x64xf32>
    %357 = vector.extract_strided_slice %352 {offsets = [0, 32], sizes = [8, 32], strides = [1, 1]} : vector<8x96xf32> to vector<8x32xf32>
    %358 = vector.extract_strided_slice %353 {offsets = [0, 32], sizes = [8, 32], strides = [1, 1]} : vector<8x96xf32> to vector<8x32xf32>
    %359 = tpu.concatenate %357, %358 in 1 : vector<8x32xf32>, vector<8x32xf32> -> vector<8x64xf32>
    %360 = vector.extract_strided_slice %352 {offsets = [0, 64], sizes = [8, 32], strides = [1, 1]} : vector<8x96xf32> to vector<8x32xf32>
    %361 = vector.extract_strided_slice %353 {offsets = [0, 64], sizes = [8, 32], strides = [1, 1]} : vector<8x96xf32> to vector<8x32xf32>
    %362 = tpu.concatenate %360, %361 in 1 : vector<8x32xf32>, vector<8x32xf32> -> vector<8x64xf32>
    %363 = vector.extract_strided_slice %342 {offsets = [8, 0], sizes = [8, 96], strides = [1, 1]} : vector<64x96xf32> to vector<8x96xf32>
    %364 = vector.extract_strided_slice %347 {offsets = [48, 0], sizes = [8, 96], strides = [1, 1]} : vector<64x96xf32> to vector<8x96xf32>
    %365 = vector.extract_strided_slice %363 {offsets = [0, 0], sizes = [8, 32], strides = [1, 1]} : vector<8x96xf32> to vector<8x32xf32>
    %366 = vector.extract_strided_slice %364 {offsets = [0, 0], sizes = [8, 32], strides = [1, 1]} : vector<8x96xf32> to vector<8x32xf32>
    %367 = tpu.concatenate %365, %366 in 1 : vector<8x32xf32>, vector<8x32xf32> -> vector<8x64xf32>
    %368 = vector.extract_strided_slice %363 {offsets = [0, 32], sizes = [8, 32], strides = [1, 1]} : vector<8x96xf32> to vector<8x32xf32>
    %369 = vector.extract_strided_slice %364 {offsets = [0, 32], sizes = [8, 32], strides = [1, 1]} : vector<8x96xf32> to vector<8x32xf32>
    %370 = tpu.concatenate %368, %369 in 1 : vector<8x32xf32>, vector<8x32xf32> -> vector<8x64xf32>
    %371 = vector.extract_strided_slice %363 {offsets = [0, 64], sizes = [8, 32], strides = [1, 1]} : vector<8x96xf32> to vector<8x32xf32>
    %372 = vector.extract_strided_slice %364 {offsets = [0, 64], sizes = [8, 32], strides = [1, 1]} : vector<8x96xf32> to vector<8x32xf32>
    %373 = tpu.concatenate %371, %372 in 1 : vector<8x32xf32>, vector<8x32xf32> -> vector<8x64xf32>
    %374 = vector.extract_strided_slice %342 {offsets = [16, 0], sizes = [8, 96], strides = [1, 1]} : vector<64x96xf32> to vector<8x96xf32>
    %375 = vector.extract_strided_slice %347 {offsets = [40, 0], sizes = [8, 96], strides = [1, 1]} : vector<64x96xf32> to vector<8x96xf32>
    %376 = vector.extract_strided_slice %374 {offsets = [0, 0], sizes = [8, 32], strides = [1, 1]} : vector<8x96xf32> to vector<8x32xf32>
    %377 = vector.extract_strided_slice %375 {offsets = [0, 0], sizes = [8, 32], strides = [1, 1]} : vector<8x96xf32> to vector<8x32xf32>
    %378 = tpu.concatenate %376, %377 in 1 : vector<8x32xf32>, vector<8x32xf32> -> vector<8x64xf32>
    %379 = vector.extract_strided_slice %374 {offsets = [0, 32], sizes = [8, 32], strides = [1, 1]} : vector<8x96xf32> to vector<8x32xf32>
    %380 = vector.extract_strided_slice %375 {offsets = [0, 32], sizes = [8, 32], strides = [1, 1]} : vector<8x96xf32> to vector<8x32xf32>
    %381 = tpu.concatenate %379, %380 in 1 : vector<8x32xf32>, vector<8x32xf32> -> vector<8x64xf32>
    %382 = vector.extract_strided_slice %374 {offsets = [0, 64], sizes = [8, 32], strides = [1, 1]} : vector<8x96xf32> to vector<8x32xf32>
    %383 = vector.extract_strided_slice %375 {offsets = [0, 64], sizes = [8, 32], strides = [1, 1]} : vector<8x96xf32> to vector<8x32xf32>
    %384 = tpu.concatenate %382, %383 in 1 : vector<8x32xf32>, vector<8x32xf32> -> vector<8x64xf32>
    %385 = vector.extract_strided_slice %342 {offsets = [24, 0], sizes = [8, 96], strides = [1, 1]} : vector<64x96xf32> to vector<8x96xf32>
    %386 = vector.extract_strided_slice %347 {offsets = [32, 0], sizes = [8, 96], strides = [1, 1]} : vector<64x96xf32> to vector<8x96xf32>
    %387 = vector.extract_strided_slice %385 {offsets = [0, 0], sizes = [8, 32], strides = [1, 1]} : vector<8x96xf32> to vector<8x32xf32>
    %388 = vector.extract_strided_slice %386 {offsets = [0, 0], sizes = [8, 32], strides = [1, 1]} : vector<8x96xf32> to vector<8x32xf32>
    %389 = tpu.concatenate %387, %388 in 1 : vector<8x32xf32>, vector<8x32xf32> -> vector<8x64xf32>
    %390 = vector.extract_strided_slice %385 {offsets = [0, 32], sizes = [8, 32], strides = [1, 1]} : vector<8x96xf32> to vector<8x32xf32>
    %391 = vector.extract_strided_slice %386 {offsets = [0, 32], sizes = [8, 32], strides = [1, 1]} : vector<8x96xf32> to vector<8x32xf32>
    %392 = tpu.concatenate %390, %391 in 1 : vector<8x32xf32>, vector<8x32xf32> -> vector<8x64xf32>
    %393 = vector.extract_strided_slice %385 {offsets = [0, 64], sizes = [8, 32], strides = [1, 1]} : vector<8x96xf32> to vector<8x32xf32>
    %394 = vector.extract_strided_slice %386 {offsets = [0, 64], sizes = [8, 32], strides = [1, 1]} : vector<8x96xf32> to vector<8x32xf32>
    %395 = tpu.concatenate %393, %394 in 1 : vector<8x32xf32>, vector<8x32xf32> -> vector<8x64xf32>
    %396 = vector.extract_strided_slice %342 {offsets = [32, 0], sizes = [8, 96], strides = [1, 1]} : vector<64x96xf32> to vector<8x96xf32>
    %397 = vector.extract_strided_slice %347 {offsets = [24, 0], sizes = [8, 96], strides = [1, 1]} : vector<64x96xf32> to vector<8x96xf32>
    %398 = vector.extract_strided_slice %396 {offsets = [0, 0], sizes = [8, 32], strides = [1, 1]} : vector<8x96xf32> to vector<8x32xf32>
    %399 = vector.extract_strided_slice %397 {offsets = [0, 0], sizes = [8, 32], strides = [1, 1]} : vector<8x96xf32> to vector<8x32xf32>
    %400 = tpu.concatenate %398, %399 in 1 : vector<8x32xf32>, vector<8x32xf32> -> vector<8x64xf32>
    %401 = vector.extract_strided_slice %396 {offsets = [0, 32], sizes = [8, 32], strides = [1, 1]} : vector<8x96xf32> to vector<8x32xf32>
    %402 = vector.extract_strided_slice %397 {offsets = [0, 32], sizes = [8, 32], strides = [1, 1]} : vector<8x96xf32> to vector<8x32xf32>
    %403 = tpu.concatenate %401, %402 in 1 : vector<8x32xf32>, vector<8x32xf32> -> vector<8x64xf32>
    %404 = vector.extract_strided_slice %396 {offsets = [0, 64], sizes = [8, 32], strides = [1, 1]} : vector<8x96xf32> to vector<8x32xf32>
    %405 = vector.extract_strided_slice %397 {offsets = [0, 64], sizes = [8, 32], strides = [1, 1]} : vector<8x96xf32> to vector<8x32xf32>
    %406 = tpu.concatenate %404, %405 in 1 : vector<8x32xf32>, vector<8x32xf32> -> vector<8x64xf32>
    %407 = vector.extract_strided_slice %342 {offsets = [40, 0], sizes = [8, 96], strides = [1, 1]} : vector<64x96xf32> to vector<8x96xf32>
    %408 = vector.extract_strided_slice %347 {offsets = [16, 0], sizes = [8, 96], strides = [1, 1]} : vector<64x96xf32> to vector<8x96xf32>
    %409 = vector.extract_strided_slice %407 {offsets = [0, 0], sizes = [8, 32], strides = [1, 1]} : vector<8x96xf32> to vector<8x32xf32>
    %410 = vector.extract_strided_slice %408 {offsets = [0, 0], sizes = [8, 32], strides = [1, 1]} : vector<8x96xf32> to vector<8x32xf32>
    %411 = tpu.concatenate %409, %410 in 1 : vector<8x32xf32>, vector<8x32xf32> -> vector<8x64xf32>
    %412 = vector.extract_strided_slice %407 {offsets = [0, 32], sizes = [8, 32], strides = [1, 1]} : vector<8x96xf32> to vector<8x32xf32>
    %413 = vector.extract_strided_slice %408 {offsets = [0, 32], sizes = [8, 32], strides = [1, 1]} : vector<8x96xf32> to vector<8x32xf32>
    %414 = tpu.concatenate %412, %413 in 1 : vector<8x32xf32>, vector<8x32xf32> -> vector<8x64xf32>
    %415 = vector.extract_strided_slice %407 {offsets = [0, 64], sizes = [8, 32], strides = [1, 1]} : vector<8x96xf32> to vector<8x32xf32>
    %416 = vector.extract_strided_slice %408 {offsets = [0, 64], sizes = [8, 32], strides = [1, 1]} : vector<8x96xf32> to vector<8x32xf32>
    %417 = tpu.concatenate %415, %416 in 1 : vector<8x32xf32>, vector<8x32xf32> -> vector<8x64xf32>
    %418 = vector.extract_strided_slice %342 {offsets = [48, 0], sizes = [8, 96], strides = [1, 1]} : vector<64x96xf32> to vector<8x96xf32>
    %419 = vector.extract_strided_slice %347 {offsets = [8, 0], sizes = [8, 96], strides = [1, 1]} : vector<64x96xf32> to vector<8x96xf32>
    %420 = vector.extract_strided_slice %418 {offsets = [0, 0], sizes = [8, 32], strides = [1, 1]} : vector<8x96xf32> to vector<8x32xf32>
    %421 = vector.extract_strided_slice %419 {offsets = [0, 0], sizes = [8, 32], strides = [1, 1]} : vector<8x96xf32> to vector<8x32xf32>
    %422 = tpu.concatenate %420, %421 in 1 : vector<8x32xf32>, vector<8x32xf32> -> vector<8x64xf32>
    %423 = vector.extract_strided_slice %418 {offsets = [0, 32], sizes = [8, 32], strides = [1, 1]} : vector<8x96xf32> to vector<8x32xf32>
    %424 = vector.extract_strided_slice %419 {offsets = [0, 32], sizes = [8, 32], strides = [1, 1]} : vector<8x96xf32> to vector<8x32xf32>
    %425 = tpu.concatenate %423, %424 in 1 : vector<8x32xf32>, vector<8x32xf32> -> vector<8x64xf32>
    %426 = vector.extract_strided_slice %418 {offsets = [0, 64], sizes = [8, 32], strides = [1, 1]} : vector<8x96xf32> to vector<8x32xf32>
    %427 = vector.extract_strided_slice %419 {offsets = [0, 64], sizes = [8, 32], strides = [1, 1]} : vector<8x96xf32> to vector<8x32xf32>
    %428 = tpu.concatenate %426, %427 in 1 : vector<8x32xf32>, vector<8x32xf32> -> vector<8x64xf32>
    %429 = vector.extract_strided_slice %342 {offsets = [56, 0], sizes = [8, 96], strides = [1, 1]} : vector<64x96xf32> to vector<8x96xf32>
    %430 = vector.extract_strided_slice %347 {offsets = [0, 0], sizes = [8, 96], strides = [1, 1]} : vector<64x96xf32> to vector<8x96xf32>
    %431 = vector.extract_strided_slice %429 {offsets = [0, 0], sizes = [8, 32], strides = [1, 1]} : vector<8x96xf32> to vector<8x32xf32>
    %432 = vector.extract_strided_slice %430 {offsets = [0, 0], sizes = [8, 32], strides = [1, 1]} : vector<8x96xf32> to vector<8x32xf32>
    %433 = tpu.concatenate %431, %432 in 1 : vector<8x32xf32>, vector<8x32xf32> -> vector<8x64xf32>
    %434 = vector.extract_strided_slice %429 {offsets = [0, 32], sizes = [8, 32], strides = [1, 1]} : vector<8x96xf32> to vector<8x32xf32>
    %435 = vector.extract_strided_slice %430 {offsets = [0, 32], sizes = [8, 32], strides = [1, 1]} : vector<8x96xf32> to vector<8x32xf32>
    %436 = tpu.concatenate %434, %435 in 1 : vector<8x32xf32>, vector<8x32xf32> -> vector<8x64xf32>
    %437 = vector.extract_strided_slice %429 {offsets = [0, 64], sizes = [8, 32], strides = [1, 1]} : vector<8x96xf32> to vector<8x32xf32>
    %438 = vector.extract_strided_slice %430 {offsets = [0, 64], sizes = [8, 32], strides = [1, 1]} : vector<8x96xf32> to vector<8x32xf32>
    %439 = tpu.concatenate %437, %438 in 1 : vector<8x32xf32>, vector<8x32xf32> -> vector<8x64xf32>
    %cst_61 = arith.constant 0.000000e+00 : f32
    %440 = vector.broadcast %cst_61 : f32 to vector<8x64xf32>
    %441 = arith.truncf %440 : vector<8x64xf32> to vector<8x64xbf16>
    %cst_62 = arith.constant dense<0.000000e+00> : vector<8x192xf32>
    %442 = tpu.matmul %441, %348, %cst_62 {dimension_numbers = #tpu.dot_dimension_numbers<[1], [0], [0], [1], [0, 0, 1, 1], [], []>} : vector<8x64xbf16>, vector<64x192xbf16>, vector<8x192xf32> -> vector<8x192xf32>
    %443 = vector.extract_strided_slice %442 {offsets = [0, 0], sizes = [8, 64], strides = [1, 1]} : vector<8x192xf32> to vector<8x64xf32>
    %444 = vector.extract_strided_slice %442 {offsets = [0, 64], sizes = [8, 64], strides = [1, 1]} : vector<8x192xf32> to vector<8x64xf32>
    %445 = vector.extract_strided_slice %442 {offsets = [0, 128], sizes = [8, 64], strides = [1, 1]} : vector<8x192xf32> to vector<8x64xf32>
    %446 = arith.addf %445, %351 : vector<8x64xf32>
    %447 = arith.addf %356, %443 : vector<8x64xf32>
    %448 = arith.negf %447 : vector<8x64xf32>
    %449 = math.exp %448 : vector<8x64xf32>
    %cst_63 = arith.constant 1.000000e+00 : f32
    %450 = vector.broadcast %cst_63 : f32 to vector<8x64xf32>
    %451 = arith.addf %450, %449 : vector<8x64xf32>
    %452 = arith.divf %450, %451 : vector<8x64xf32>
    %453 = arith.addf %359, %444 : vector<8x64xf32>
    %454 = arith.negf %453 : vector<8x64xf32>
    %455 = math.exp %454 : vector<8x64xf32>
    %cst_64 = arith.constant 1.000000e+00 : f32
    %456 = vector.broadcast %cst_64 : f32 to vector<8x64xf32>
    %457 = arith.addf %456, %455 : vector<8x64xf32>
    %458 = arith.divf %456, %457 : vector<8x64xf32>
    %459 = arith.mulf %452, %446 : vector<8x64xf32>
    %460 = arith.addf %362, %459 : vector<8x64xf32>
    %461 = math.tanh %460 : vector<8x64xf32>
    %cst_65 = arith.constant 1.000000e+00 : f32
    %462 = vector.broadcast %cst_65 : f32 to vector<8x64xf32>
    %463 = arith.subf %462, %458 : vector<8x64xf32>
    %464 = arith.mulf %463, %461 : vector<8x64xf32>
    %465 = arith.mulf %458, %440 : vector<8x64xf32>
    %466 = arith.addf %464, %465 : vector<8x64xf32>
    %467 = arith.truncf %466 : vector<8x64xf32> to vector<8x64xbf16>
    %cst_66 = arith.constant dense<0.000000e+00> : vector<8x192xf32>
    %468 = tpu.matmul %467, %348, %cst_66 {dimension_numbers = #tpu.dot_dimension_numbers<[1], [0], [0], [1], [0, 0, 1, 1], [], []>} : vector<8x64xbf16>, vector<64x192xbf16>, vector<8x192xf32> -> vector<8x192xf32>
    %469 = vector.extract_strided_slice %468 {offsets = [0, 0], sizes = [8, 64], strides = [1, 1]} : vector<8x192xf32> to vector<8x64xf32>
    %470 = vector.extract_strided_slice %468 {offsets = [0, 64], sizes = [8, 64], strides = [1, 1]} : vector<8x192xf32> to vector<8x64xf32>
    %471 = vector.extract_strided_slice %468 {offsets = [0, 128], sizes = [8, 64], strides = [1, 1]} : vector<8x192xf32> to vector<8x64xf32>
    %472 = arith.addf %471, %351 : vector<8x64xf32>
    %473 = arith.addf %367, %469 : vector<8x64xf32>
    %474 = arith.negf %473 : vector<8x64xf32>
    %475 = math.exp %474 : vector<8x64xf32>
    %cst_67 = arith.constant 1.000000e+00 : f32
    %476 = vector.broadcast %cst_67 : f32 to vector<8x64xf32>
    %477 = arith.addf %476, %475 : vector<8x64xf32>
    %478 = arith.divf %476, %477 : vector<8x64xf32>
    %479 = arith.addf %370, %470 : vector<8x64xf32>
    %480 = arith.negf %479 : vector<8x64xf32>
    %481 = math.exp %480 : vector<8x64xf32>
    %cst_68 = arith.constant 1.000000e+00 : f32
    %482 = vector.broadcast %cst_68 : f32 to vector<8x64xf32>
    %483 = arith.addf %482, %481 : vector<8x64xf32>
    %484 = arith.divf %482, %483 : vector<8x64xf32>
    %485 = arith.mulf %478, %472 : vector<8x64xf32>
    %486 = arith.addf %373, %485 : vector<8x64xf32>
    %487 = math.tanh %486 : vector<8x64xf32>
    %cst_69 = arith.constant 1.000000e+00 : f32
    %488 = vector.broadcast %cst_69 : f32 to vector<8x64xf32>
    %489 = arith.subf %488, %484 : vector<8x64xf32>
    %490 = arith.mulf %489, %487 : vector<8x64xf32>
    %491 = arith.mulf %484, %466 : vector<8x64xf32>
    %492 = arith.addf %490, %491 : vector<8x64xf32>
    %493 = arith.truncf %492 : vector<8x64xf32> to vector<8x64xbf16>
    %cst_70 = arith.constant dense<0.000000e+00> : vector<8x192xf32>
    %494 = tpu.matmul %493, %348, %cst_70 {dimension_numbers = #tpu.dot_dimension_numbers<[1], [0], [0], [1], [0, 0, 1, 1], [], []>} : vector<8x64xbf16>, vector<64x192xbf16>, vector<8x192xf32> -> vector<8x192xf32>
    %495 = vector.extract_strided_slice %494 {offsets = [0, 0], sizes = [8, 64], strides = [1, 1]} : vector<8x192xf32> to vector<8x64xf32>
    %496 = vector.extract_strided_slice %494 {offsets = [0, 64], sizes = [8, 64], strides = [1, 1]} : vector<8x192xf32> to vector<8x64xf32>
    %497 = vector.extract_strided_slice %494 {offsets = [0, 128], sizes = [8, 64], strides = [1, 1]} : vector<8x192xf32> to vector<8x64xf32>
    %498 = arith.addf %497, %351 : vector<8x64xf32>
    %499 = arith.addf %378, %495 : vector<8x64xf32>
    %500 = arith.negf %499 : vector<8x64xf32>
    %501 = math.exp %500 : vector<8x64xf32>
    %cst_71 = arith.constant 1.000000e+00 : f32
    %502 = vector.broadcast %cst_71 : f32 to vector<8x64xf32>
    %503 = arith.addf %502, %501 : vector<8x64xf32>
    %504 = arith.divf %502, %503 : vector<8x64xf32>
    %505 = arith.addf %381, %496 : vector<8x64xf32>
    %506 = arith.negf %505 : vector<8x64xf32>
    %507 = math.exp %506 : vector<8x64xf32>
    %cst_72 = arith.constant 1.000000e+00 : f32
    %508 = vector.broadcast %cst_72 : f32 to vector<8x64xf32>
    %509 = arith.addf %508, %507 : vector<8x64xf32>
    %510 = arith.divf %508, %509 : vector<8x64xf32>
    %511 = arith.mulf %504, %498 : vector<8x64xf32>
    %512 = arith.addf %384, %511 : vector<8x64xf32>
    %513 = math.tanh %512 : vector<8x64xf32>
    %cst_73 = arith.constant 1.000000e+00 : f32
    %514 = vector.broadcast %cst_73 : f32 to vector<8x64xf32>
    %515 = arith.subf %514, %510 : vector<8x64xf32>
    %516 = arith.mulf %515, %513 : vector<8x64xf32>
    %517 = arith.mulf %510, %492 : vector<8x64xf32>
    %518 = arith.addf %516, %517 : vector<8x64xf32>
    %519 = arith.truncf %518 : vector<8x64xf32> to vector<8x64xbf16>
    %cst_74 = arith.constant dense<0.000000e+00> : vector<8x192xf32>
    %520 = tpu.matmul %519, %348, %cst_74 {dimension_numbers = #tpu.dot_dimension_numbers<[1], [0], [0], [1], [0, 0, 1, 1], [], []>} : vector<8x64xbf16>, vector<64x192xbf16>, vector<8x192xf32> -> vector<8x192xf32>
    %521 = vector.extract_strided_slice %520 {offsets = [0, 0], sizes = [8, 64], strides = [1, 1]} : vector<8x192xf32> to vector<8x64xf32>
    %522 = vector.extract_strided_slice %520 {offsets = [0, 64], sizes = [8, 64], strides = [1, 1]} : vector<8x192xf32> to vector<8x64xf32>
    %523 = vector.extract_strided_slice %520 {offsets = [0, 128], sizes = [8, 64], strides = [1, 1]} : vector<8x192xf32> to vector<8x64xf32>
    %524 = arith.addf %523, %351 : vector<8x64xf32>
    %525 = arith.addf %389, %521 : vector<8x64xf32>
    %526 = arith.negf %525 : vector<8x64xf32>
    %527 = math.exp %526 : vector<8x64xf32>
    %cst_75 = arith.constant 1.000000e+00 : f32
    %528 = vector.broadcast %cst_75 : f32 to vector<8x64xf32>
    %529 = arith.addf %528, %527 : vector<8x64xf32>
    %530 = arith.divf %528, %529 : vector<8x64xf32>
    %531 = arith.addf %392, %522 : vector<8x64xf32>
    %532 = arith.negf %531 : vector<8x64xf32>
    %533 = math.exp %532 : vector<8x64xf32>
    %cst_76 = arith.constant 1.000000e+00 : f32
    %534 = vector.broadcast %cst_76 : f32 to vector<8x64xf32>
    %535 = arith.addf %534, %533 : vector<8x64xf32>
    %536 = arith.divf %534, %535 : vector<8x64xf32>
    %537 = arith.mulf %530, %524 : vector<8x64xf32>
    %538 = arith.addf %395, %537 : vector<8x64xf32>
    %539 = math.tanh %538 : vector<8x64xf32>
    %cst_77 = arith.constant 1.000000e+00 : f32
    %540 = vector.broadcast %cst_77 : f32 to vector<8x64xf32>
    %541 = arith.subf %540, %536 : vector<8x64xf32>
    %542 = arith.mulf %541, %539 : vector<8x64xf32>
    %543 = arith.mulf %536, %518 : vector<8x64xf32>
    %544 = arith.addf %542, %543 : vector<8x64xf32>
    %545 = arith.truncf %544 : vector<8x64xf32> to vector<8x64xbf16>
    %cst_78 = arith.constant dense<0.000000e+00> : vector<8x192xf32>
    %546 = tpu.matmul %545, %348, %cst_78 {dimension_numbers = #tpu.dot_dimension_numbers<[1], [0], [0], [1], [0, 0, 1, 1], [], []>} : vector<8x64xbf16>, vector<64x192xbf16>, vector<8x192xf32> -> vector<8x192xf32>
    %547 = vector.extract_strided_slice %546 {offsets = [0, 0], sizes = [8, 64], strides = [1, 1]} : vector<8x192xf32> to vector<8x64xf32>
    %548 = vector.extract_strided_slice %546 {offsets = [0, 64], sizes = [8, 64], strides = [1, 1]} : vector<8x192xf32> to vector<8x64xf32>
    %549 = vector.extract_strided_slice %546 {offsets = [0, 128], sizes = [8, 64], strides = [1, 1]} : vector<8x192xf32> to vector<8x64xf32>
    %550 = arith.addf %549, %351 : vector<8x64xf32>
    %551 = arith.addf %400, %547 : vector<8x64xf32>
    %552 = arith.negf %551 : vector<8x64xf32>
    %553 = math.exp %552 : vector<8x64xf32>
    %cst_79 = arith.constant 1.000000e+00 : f32
    %554 = vector.broadcast %cst_79 : f32 to vector<8x64xf32>
    %555 = arith.addf %554, %553 : vector<8x64xf32>
    %556 = arith.divf %554, %555 : vector<8x64xf32>
    %557 = arith.addf %403, %548 : vector<8x64xf32>
    %558 = arith.negf %557 : vector<8x64xf32>
    %559 = math.exp %558 : vector<8x64xf32>
    %cst_80 = arith.constant 1.000000e+00 : f32
    %560 = vector.broadcast %cst_80 : f32 to vector<8x64xf32>
    %561 = arith.addf %560, %559 : vector<8x64xf32>
    %562 = arith.divf %560, %561 : vector<8x64xf32>
    %563 = arith.mulf %556, %550 : vector<8x64xf32>
    %564 = arith.addf %406, %563 : vector<8x64xf32>
    %565 = math.tanh %564 : vector<8x64xf32>
    %cst_81 = arith.constant 1.000000e+00 : f32
    %566 = vector.broadcast %cst_81 : f32 to vector<8x64xf32>
    %567 = arith.subf %566, %562 : vector<8x64xf32>
    %568 = arith.mulf %567, %565 : vector<8x64xf32>
    %569 = arith.mulf %562, %544 : vector<8x64xf32>
    %570 = arith.addf %568, %569 : vector<8x64xf32>
    %571 = arith.truncf %570 : vector<8x64xf32> to vector<8x64xbf16>
    %cst_82 = arith.constant dense<0.000000e+00> : vector<8x192xf32>
    %572 = tpu.matmul %571, %348, %cst_82 {dimension_numbers = #tpu.dot_dimension_numbers<[1], [0], [0], [1], [0, 0, 1, 1], [], []>} : vector<8x64xbf16>, vector<64x192xbf16>, vector<8x192xf32> -> vector<8x192xf32>
    %573 = vector.extract_strided_slice %572 {offsets = [0, 0], sizes = [8, 64], strides = [1, 1]} : vector<8x192xf32> to vector<8x64xf32>
    %574 = vector.extract_strided_slice %572 {offsets = [0, 64], sizes = [8, 64], strides = [1, 1]} : vector<8x192xf32> to vector<8x64xf32>
    %575 = vector.extract_strided_slice %572 {offsets = [0, 128], sizes = [8, 64], strides = [1, 1]} : vector<8x192xf32> to vector<8x64xf32>
    %576 = arith.addf %575, %351 : vector<8x64xf32>
    %577 = arith.addf %411, %573 : vector<8x64xf32>
    %578 = arith.negf %577 : vector<8x64xf32>
    %579 = math.exp %578 : vector<8x64xf32>
    %cst_83 = arith.constant 1.000000e+00 : f32
    %580 = vector.broadcast %cst_83 : f32 to vector<8x64xf32>
    %581 = arith.addf %580, %579 : vector<8x64xf32>
    %582 = arith.divf %580, %581 : vector<8x64xf32>
    %583 = arith.addf %414, %574 : vector<8x64xf32>
    %584 = arith.negf %583 : vector<8x64xf32>
    %585 = math.exp %584 : vector<8x64xf32>
    %cst_84 = arith.constant 1.000000e+00 : f32
    %586 = vector.broadcast %cst_84 : f32 to vector<8x64xf32>
    %587 = arith.addf %586, %585 : vector<8x64xf32>
    %588 = arith.divf %586, %587 : vector<8x64xf32>
    %589 = arith.mulf %582, %576 : vector<8x64xf32>
    %590 = arith.addf %417, %589 : vector<8x64xf32>
    %591 = math.tanh %590 : vector<8x64xf32>
    %cst_85 = arith.constant 1.000000e+00 : f32
    %592 = vector.broadcast %cst_85 : f32 to vector<8x64xf32>
    %593 = arith.subf %592, %588 : vector<8x64xf32>
    %594 = arith.mulf %593, %591 : vector<8x64xf32>
    %595 = arith.mulf %588, %570 : vector<8x64xf32>
    %596 = arith.addf %594, %595 : vector<8x64xf32>
    %597 = arith.truncf %596 : vector<8x64xf32> to vector<8x64xbf16>
    %cst_86 = arith.constant dense<0.000000e+00> : vector<8x192xf32>
    %598 = tpu.matmul %597, %348, %cst_86 {dimension_numbers = #tpu.dot_dimension_numbers<[1], [0], [0], [1], [0, 0, 1, 1], [], []>} : vector<8x64xbf16>, vector<64x192xbf16>, vector<8x192xf32> -> vector<8x192xf32>
    %599 = vector.extract_strided_slice %598 {offsets = [0, 0], sizes = [8, 64], strides = [1, 1]} : vector<8x192xf32> to vector<8x64xf32>
    %600 = vector.extract_strided_slice %598 {offsets = [0, 64], sizes = [8, 64], strides = [1, 1]} : vector<8x192xf32> to vector<8x64xf32>
    %601 = vector.extract_strided_slice %598 {offsets = [0, 128], sizes = [8, 64], strides = [1, 1]} : vector<8x192xf32> to vector<8x64xf32>
    %602 = arith.addf %601, %351 : vector<8x64xf32>
    %603 = arith.addf %422, %599 : vector<8x64xf32>
    %604 = arith.negf %603 : vector<8x64xf32>
    %605 = math.exp %604 : vector<8x64xf32>
    %cst_87 = arith.constant 1.000000e+00 : f32
    %606 = vector.broadcast %cst_87 : f32 to vector<8x64xf32>
    %607 = arith.addf %606, %605 : vector<8x64xf32>
    %608 = arith.divf %606, %607 : vector<8x64xf32>
    %609 = arith.addf %425, %600 : vector<8x64xf32>
    %610 = arith.negf %609 : vector<8x64xf32>
    %611 = math.exp %610 : vector<8x64xf32>
    %cst_88 = arith.constant 1.000000e+00 : f32
    %612 = vector.broadcast %cst_88 : f32 to vector<8x64xf32>
    %613 = arith.addf %612, %611 : vector<8x64xf32>
    %614 = arith.divf %612, %613 : vector<8x64xf32>
    %615 = arith.mulf %608, %602 : vector<8x64xf32>
    %616 = arith.addf %428, %615 : vector<8x64xf32>
    %617 = math.tanh %616 : vector<8x64xf32>
    %cst_89 = arith.constant 1.000000e+00 : f32
    %618 = vector.broadcast %cst_89 : f32 to vector<8x64xf32>
    %619 = arith.subf %618, %614 : vector<8x64xf32>
    %620 = arith.mulf %619, %617 : vector<8x64xf32>
    %621 = arith.mulf %614, %596 : vector<8x64xf32>
    %622 = arith.addf %620, %621 : vector<8x64xf32>
    %623 = arith.truncf %622 : vector<8x64xf32> to vector<8x64xbf16>
    %cst_90 = arith.constant dense<0.000000e+00> : vector<8x192xf32>
    %624 = tpu.matmul %623, %348, %cst_90 {dimension_numbers = #tpu.dot_dimension_numbers<[1], [0], [0], [1], [0, 0, 1, 1], [], []>} : vector<8x64xbf16>, vector<64x192xbf16>, vector<8x192xf32> -> vector<8x192xf32>
    %625 = vector.extract_strided_slice %624 {offsets = [0, 0], sizes = [8, 64], strides = [1, 1]} : vector<8x192xf32> to vector<8x64xf32>
    %626 = vector.extract_strided_slice %624 {offsets = [0, 64], sizes = [8, 64], strides = [1, 1]} : vector<8x192xf32> to vector<8x64xf32>
    %627 = vector.extract_strided_slice %624 {offsets = [0, 128], sizes = [8, 64], strides = [1, 1]} : vector<8x192xf32> to vector<8x64xf32>
    %628 = arith.addf %627, %351 : vector<8x64xf32>
    %629 = arith.addf %433, %625 : vector<8x64xf32>
    %630 = arith.negf %629 : vector<8x64xf32>
    %631 = math.exp %630 : vector<8x64xf32>
    %cst_91 = arith.constant 1.000000e+00 : f32
    %632 = vector.broadcast %cst_91 : f32 to vector<8x64xf32>
    %633 = arith.addf %632, %631 : vector<8x64xf32>
    %634 = arith.divf %632, %633 : vector<8x64xf32>
    %635 = arith.addf %436, %626 : vector<8x64xf32>
    %636 = arith.negf %635 : vector<8x64xf32>
    %637 = math.exp %636 : vector<8x64xf32>
    %cst_92 = arith.constant 1.000000e+00 : f32
    %638 = vector.broadcast %cst_92 : f32 to vector<8x64xf32>
    %639 = arith.addf %638, %637 : vector<8x64xf32>
    %640 = arith.divf %638, %639 : vector<8x64xf32>
    %641 = arith.mulf %634, %628 : vector<8x64xf32>
    %642 = arith.addf %439, %641 : vector<8x64xf32>
    %643 = math.tanh %642 : vector<8x64xf32>
    %cst_93 = arith.constant 1.000000e+00 : f32
    %644 = vector.broadcast %cst_93 : f32 to vector<8x64xf32>
    %645 = arith.subf %644, %640 : vector<8x64xf32>
    %646 = arith.mulf %645, %643 : vector<8x64xf32>
    %647 = arith.mulf %640, %622 : vector<8x64xf32>
    %648 = arith.addf %646, %647 : vector<8x64xf32>
    %649 = vector.extract_strided_slice %466 {offsets = [0, 0], sizes = [8, 32], strides = [1, 1]} : vector<8x64xf32> to vector<8x32xf32>
    %650 = vector.extract_strided_slice %648 {offsets = [0, 32], sizes = [8, 32], strides = [1, 1]} : vector<8x64xf32> to vector<8x32xf32>
    %651 = tpu.concatenate %649, %650 in 1 : vector<8x32xf32>, vector<8x32xf32> -> vector<8x64xf32>
    %652 = vector.extract_strided_slice %492 {offsets = [0, 0], sizes = [8, 32], strides = [1, 1]} : vector<8x64xf32> to vector<8x32xf32>
    %653 = vector.extract_strided_slice %622 {offsets = [0, 32], sizes = [8, 32], strides = [1, 1]} : vector<8x64xf32> to vector<8x32xf32>
    %654 = tpu.concatenate %652, %653 in 1 : vector<8x32xf32>, vector<8x32xf32> -> vector<8x64xf32>
    %655 = vector.extract_strided_slice %518 {offsets = [0, 0], sizes = [8, 32], strides = [1, 1]} : vector<8x64xf32> to vector<8x32xf32>
    %656 = vector.extract_strided_slice %596 {offsets = [0, 32], sizes = [8, 32], strides = [1, 1]} : vector<8x64xf32> to vector<8x32xf32>
    %657 = tpu.concatenate %655, %656 in 1 : vector<8x32xf32>, vector<8x32xf32> -> vector<8x64xf32>
    %658 = vector.extract_strided_slice %544 {offsets = [0, 0], sizes = [8, 32], strides = [1, 1]} : vector<8x64xf32> to vector<8x32xf32>
    %659 = vector.extract_strided_slice %570 {offsets = [0, 32], sizes = [8, 32], strides = [1, 1]} : vector<8x64xf32> to vector<8x32xf32>
    %660 = tpu.concatenate %658, %659 in 1 : vector<8x32xf32>, vector<8x32xf32> -> vector<8x64xf32>
    %661 = vector.extract_strided_slice %570 {offsets = [0, 0], sizes = [8, 32], strides = [1, 1]} : vector<8x64xf32> to vector<8x32xf32>
    %662 = vector.extract_strided_slice %544 {offsets = [0, 32], sizes = [8, 32], strides = [1, 1]} : vector<8x64xf32> to vector<8x32xf32>
    %663 = tpu.concatenate %661, %662 in 1 : vector<8x32xf32>, vector<8x32xf32> -> vector<8x64xf32>
    %664 = vector.extract_strided_slice %596 {offsets = [0, 0], sizes = [8, 32], strides = [1, 1]} : vector<8x64xf32> to vector<8x32xf32>
    %665 = vector.extract_strided_slice %518 {offsets = [0, 32], sizes = [8, 32], strides = [1, 1]} : vector<8x64xf32> to vector<8x32xf32>
    %666 = tpu.concatenate %664, %665 in 1 : vector<8x32xf32>, vector<8x32xf32> -> vector<8x64xf32>
    %667 = vector.extract_strided_slice %622 {offsets = [0, 0], sizes = [8, 32], strides = [1, 1]} : vector<8x64xf32> to vector<8x32xf32>
    %668 = vector.extract_strided_slice %492 {offsets = [0, 32], sizes = [8, 32], strides = [1, 1]} : vector<8x64xf32> to vector<8x32xf32>
    %669 = tpu.concatenate %667, %668 in 1 : vector<8x32xf32>, vector<8x32xf32> -> vector<8x64xf32>
    %670 = vector.extract_strided_slice %648 {offsets = [0, 0], sizes = [8, 32], strides = [1, 1]} : vector<8x64xf32> to vector<8x32xf32>
    %671 = vector.extract_strided_slice %466 {offsets = [0, 32], sizes = [8, 32], strides = [1, 1]} : vector<8x64xf32> to vector<8x32xf32>
    %672 = tpu.concatenate %670, %671 in 1 : vector<8x32xf32>, vector<8x32xf32> -> vector<8x64xf32>
    %673 = tpu.concatenate %651, %654, %657, %660, %663, %666, %669, %672 in 0 : vector<8x64xf32>, vector<8x64xf32>, vector<8x64xf32>, vector<8x64xf32>, vector<8x64xf32>, vector<8x64xf32>, vector<8x64xf32>, vector<8x64xf32> -> vector<64x64xf32>
    %674 = arith.truncf %673 : vector<64x64xf32> to vector<64x64xbf16>
    %c0_94 = arith.constant 0 : index
    %c0_95 = arith.constant 0 : index
    %675 = vector.load %arg13[%c0_94, %c0_95] : memref<64x32xbf16, #tpu.memory_space<vmem>>, vector<64x32xbf16>
    %cst_96 = arith.constant dense<0.000000e+00> : vector<64x32xf32>
    %676 = tpu.matmul %674, %675, %cst_96 {dimension_numbers = #tpu.dot_dimension_numbers<[1], [0], [0], [1], [0, 0, 1, 1], [], []>} : vector<64x64xbf16>, vector<64x32xbf16>, vector<64x32xf32> -> vector<64x32xf32>
    %677 = math.tanh %676 : vector<64x32xf32>
    %678 = arith.truncf %677 : vector<64x32xf32> to vector<64x32xbf16>
    %c0_97 = arith.constant 0 : index
    %c0_98 = arith.constant 0 : index
    %679 = vector.load %arg14[%c0_97, %c0_98] : memref<32x1xbf16, #tpu.memory_space<vmem>>, vector<32x1xbf16>
    %cst_99 = arith.constant dense<0.000000e+00> : vector<64x1xf32>
    %680 = tpu.matmul %678, %679, %cst_99 {dimension_numbers = #tpu.dot_dimension_numbers<[1], [0], [0], [1], [0, 0, 1, 1], [], []>} : vector<64x32xbf16>, vector<32x1xbf16>, vector<64x1xf32> -> vector<64x1xf32>
    %681 = vector.shape_cast %680 : vector<64x1xf32> to vector<1x64x1xf32>
    %cst_100 = arith.constant dense<0xFF800000> : vector<1xf32>
    %682 = vector.multi_reduction <maximumf>, %681, %cst_100 [1, 2] : vector<1x64x1xf32> to vector<1xf32>
    %683 = vector.shape_cast %682 : vector<1xf32> to vector<1x1x1xf32>
    %684 = vector.extract %683[0, 0, 0] : f32 from vector<1x1x1xf32>
    %685 = vector.broadcast %684 : f32 to vector<1x1xf32>
    %686 = vector.broadcast %685 : vector<1x1xf32> to vector<64x1xf32>
    %687 = arith.subf %680, %686 : vector<64x1xf32>
    %688 = math.exp %687 : vector<64x1xf32>
    %689 = vector.broadcast %688 : vector<64x1xf32> to vector<64x64xf32>
    %690 = arith.mulf %673, %689 : vector<64x64xf32>
    %cst_101 = arith.constant 0.000000e+00 : f32
    %691 = vector.broadcast %cst_101 : f32 to vector<8x64xf32>
    %cst_102 = arith.constant 0.000000e+00 : f32
    %692 = vector.broadcast %cst_102 : f32 to vector<8x1xf32>
    %693 = vector.extract_strided_slice %690 {offsets = [0, 0], sizes = [8, 64], strides = [1, 1]} : vector<64x64xf32> to vector<8x64xf32>
    %694 = arith.addf %691, %693 : vector<8x64xf32>
    %695 = vector.extract_strided_slice %688 {offsets = [0, 0], sizes = [8, 1], strides = [1, 1]} : vector<64x1xf32> to vector<8x1xf32>
    %696 = arith.addf %692, %695 : vector<8x1xf32>
    %697 = vector.extract_strided_slice %690 {offsets = [8, 0], sizes = [8, 64], strides = [1, 1]} : vector<64x64xf32> to vector<8x64xf32>
    %698 = arith.addf %694, %697 : vector<8x64xf32>
    %699 = vector.extract_strided_slice %688 {offsets = [8, 0], sizes = [8, 1], strides = [1, 1]} : vector<64x1xf32> to vector<8x1xf32>
    %700 = arith.addf %696, %699 : vector<8x1xf32>
    %701 = vector.extract_strided_slice %690 {offsets = [16, 0], sizes = [8, 64], strides = [1, 1]} : vector<64x64xf32> to vector<8x64xf32>
    %702 = arith.addf %698, %701 : vector<8x64xf32>
    %703 = vector.extract_strided_slice %688 {offsets = [16, 0], sizes = [8, 1], strides = [1, 1]} : vector<64x1xf32> to vector<8x1xf32>
    %704 = arith.addf %700, %703 : vector<8x1xf32>
    %705 = vector.extract_strided_slice %690 {offsets = [24, 0], sizes = [8, 64], strides = [1, 1]} : vector<64x64xf32> to vector<8x64xf32>
    %706 = arith.addf %702, %705 : vector<8x64xf32>
    %707 = vector.extract_strided_slice %688 {offsets = [24, 0], sizes = [8, 1], strides = [1, 1]} : vector<64x1xf32> to vector<8x1xf32>
    %708 = arith.addf %704, %707 : vector<8x1xf32>
    %709 = vector.extract_strided_slice %690 {offsets = [32, 0], sizes = [8, 64], strides = [1, 1]} : vector<64x64xf32> to vector<8x64xf32>
    %710 = arith.addf %706, %709 : vector<8x64xf32>
    %711 = vector.extract_strided_slice %688 {offsets = [32, 0], sizes = [8, 1], strides = [1, 1]} : vector<64x1xf32> to vector<8x1xf32>
    %712 = arith.addf %708, %711 : vector<8x1xf32>
    %713 = vector.extract_strided_slice %690 {offsets = [40, 0], sizes = [8, 64], strides = [1, 1]} : vector<64x64xf32> to vector<8x64xf32>
    %714 = arith.addf %710, %713 : vector<8x64xf32>
    %715 = vector.extract_strided_slice %688 {offsets = [40, 0], sizes = [8, 1], strides = [1, 1]} : vector<64x1xf32> to vector<8x1xf32>
    %716 = arith.addf %712, %715 : vector<8x1xf32>
    %717 = vector.extract_strided_slice %690 {offsets = [48, 0], sizes = [8, 64], strides = [1, 1]} : vector<64x64xf32> to vector<8x64xf32>
    %718 = arith.addf %714, %717 : vector<8x64xf32>
    %719 = vector.extract_strided_slice %688 {offsets = [48, 0], sizes = [8, 1], strides = [1, 1]} : vector<64x1xf32> to vector<8x1xf32>
    %720 = arith.addf %716, %719 : vector<8x1xf32>
    %721 = vector.extract_strided_slice %690 {offsets = [56, 0], sizes = [8, 64], strides = [1, 1]} : vector<64x64xf32> to vector<8x64xf32>
    %722 = arith.addf %718, %721 : vector<8x64xf32>
    %723 = vector.extract_strided_slice %688 {offsets = [56, 0], sizes = [8, 1], strides = [1, 1]} : vector<64x1xf32> to vector<8x1xf32>
    %724 = arith.addf %720, %723 : vector<8x1xf32>
    %725 = tpu.reciprocal %724 {approx = true} : vector<8x1xf32> -> vector<8x1xf32>
    %726 = vector.broadcast %725 : vector<8x1xf32> to vector<8x64xf32>
    %727 = arith.mulf %722, %726 : vector<8x64xf32>
    %728 = arith.truncf %727 : vector<8x64xf32> to vector<8x64xbf16>
    %c0_103 = arith.constant 0 : index
    %c0_104 = arith.constant 0 : index
    %729 = vector.load %arg15[%c0_103, %c0_104] : memref<64x2xbf16, #tpu.memory_space<vmem>>, vector<64x2xbf16>
    %cst_105 = arith.constant dense<0.000000e+00> : vector<8x2xf32>
    %730 = tpu.matmul %728, %729, %cst_105 {dimension_numbers = #tpu.dot_dimension_numbers<[1], [0], [0], [1], [0, 0, 1, 1], [], []>} : vector<8x64xbf16>, vector<64x2xbf16>, vector<8x2xf32> -> vector<8x2xf32>
    %c0_106 = arith.constant 0 : index
    %c0_107 = arith.constant 0 : index
    %731 = vector.load %arg16[%c0_106, %c0_107] : memref<1x2xf32, #tpu.memory_space<vmem>>, vector<1x2xf32>
    %732 = vector.broadcast %731 : vector<1x2xf32> to vector<8x2xf32>
    %733 = arith.addf %730, %732 : vector<8x2xf32>
    %c0_108 = arith.constant 0 : index
    %c0_109 = arith.constant 0 : index
    %734 = vector.load %arg17[%c0_108, %c0_109] : memref<8x2xf32, #tpu.memory_space<vmem>>, vector<8x2xf32>
    tpu.vector_store %arg17[%c0_108, %c0_109], %733 {strides = array<i32>} : memref<8x2xf32, #tpu.memory_space<vmem>>, vector<8x2xf32>,
    return
  }
}

</mosaic_0001>

<bundles_post_ra>
// kernel: distillog_forward.1
= control target key start
LH: loop header
LB: loop body
LE: loop exit
PB: predicated region body
PF: predicated region fallthrough
CT: control target
= control target key end

     0   :  { %v2973_v1 = vmov 0   ;;  %vm108_vm0 = vcmask 261120   ;;  %vm465_vm1 = vcmask 523264   ;;  %vm2246_vm2 = vcmask 7168   ;;  %s3862_s1 = inlined_call_operand.vmem [shape: bf16[32,96], index: 1, kind: input, shape index: {}]   ;;  %s3863_s3 = inlined_call_operand.vmem [shape: bf16[32,96], index: 3, kind: input, shape index: {}]   ;;  %s3864_s0 = inlined_call_operand.vmem [shape: bf16[64,32], index: 0, kind: input, shape index: {}]   ;;  %s3865_s5 = inlined_call_operand.vmem [shape: bf16[64,192], index: 5, kind: input, shape index: {}]   ;;  %s3866_s2 = inlined_call_operand.vmem [shape: f32[1,96], index: 2, kind: input, shape index: {}]   ;;  %s3867_s4 = inlined_call_operand.vmem [shape: f32[1,96], index: 4, kind: input, shape index: {}]   ;;  %s3868_s6 = inlined_call_operand.vmem [shape: f32[1,64], index: 6, kind: input, shape index: {}]   ;;  %s3869_s7 = inlined_call_operand.vmem [shape: bf16[64,96], index: 7, kind: input, shape index: {}]   ;;  %s3870_s9 = inlined_call_operand.vmem [shape: bf16[64,96], index: 9, kind: input, shape index: {}]   ;;  %s3871_s11 = inlined_call_operand.vmem [shape: bf16[64,192], index: 11, kind: input, shape index: {}]   ;;  %s3872_s8 = inlined_call_operand.vmem [shape: f32[1,96], index: 8, kind: input, shape index: {}]   ;;  %s3873_s10 = inlined_call_operand.vmem [shape: f32[1,96], index: 10, kind: input, shape index: {}]   ;;  %s3874_s12 = inlined_call_operand.vmem [shape: f32[1,64], index: 12, kind: input, shape index: {}]   ;;  %s3875_s13 = inlined_call_operand.vmem [shape: bf16[64,32], index: 13, kind: input, shape index: {}]   ;;  %s3876_s14 = inlined_call_operand.vmem [shape: bf16[32,1], index: 14, kind: input, shape index: {}]   ;;  %s3877_s15 = inlined_call_operand.vmem [shape: bf16[64,2], index: 15, kind: input, shape index: {}]   ;;  %s3878_s16 = inlined_call_operand.vmem [shape: f32[1,2], index: 16, kind: input, shape index: {}]   ;;  %s3879_s17 = inlined_call_operand.vmem [shape: f32[8,2], index: 17, kind: output, shape index: {}]  }
   0x1   :  { %3882 = sst [smem:[#allocation2_spill]] %s3862_s1  ;;  %2727 = vset.pattern.permute.xlu1 %v2973_v1  ;;  %2728 = vset.pattern.permute.xlu0 %v2973_v1  ;;  %v2733_v5 = vld [vmem:[%s3864_s0] sm:$0xff]   ;;  %v2734_v6 = vld [vmem:[%s3864_s0 + $0x8] sm:$0xff]   ;;  %v3105_v9 = vld [vmem:[%s3865_s5 + $0x14] ss:$8 sps:$4 sm:$0xff]   ;;  %s2976_s1 = smov 96  }
   0x2   :  { %3883 = sst [smem:[#allocation3_spill]] %s3863_s3  ;;  %s3884_s26 = sld [smem:[#allocation2_spill]]  ;;  %2627 = vmatprep.mubr.msk.bf16.mxu0 %vm108_vm0, %v2733_v5  ;;  %2639 = vmatprep.mubr.msk.bf16.mxu1 %vm108_vm0, %v2733_v5  ;;  %v3094_v7 = vld [vmem:[%s3865_s5 + $0x4] ss:$8 sps:$4 sm:$0xff]   ;;  %v3099_v8 = vld [vmem:[%s3865_s5] ss:$8 sps:$4 sm:$0xff]  }
   0x3   :  { %s3885_s29 = sld [smem:[#allocation3_spill]]  ;;  %v2741_v10 = vld [vmem:[%s3864_s0 + $0x10] sm:$0xff]   ;;  %v3124_v12 = vld [vmem:[%s3865_s5 + $0x24] ss:$8 sps:$4 sm:$0xff]   ;;  %v2742_v13 = vld [vmem:[%s3864_s0 + $0x18] sm:$0xff]   ;;  %vm2978_vm3 = vmmov 0  }
   0x4   :  { %v3117_v11 = vld [vmem:[%s3865_s5 + $0x10] ss:$8 sps:$4 sm:$0xff]   ;;  %v3136_v14 = vld [vmem:[%s3865_s5 + $0x20] ss:$8 sps:$4 sm:$0xff]   ;;  %v3142_v15 = vld [vmem:[%s3865_s5 + $0x34] ss:$8 sps:$4 sm:$0xff]  }
   0x5   :  { %v3152_v16 = vld [vmem:[%s3865_s5 + $0x30] ss:$8 sps:$4 sm:$0xff]   ;;  %v2456_v17 = vld [vmem:[%s3866_s2] ss:$0 sm:$0xff]  ;;  %s2974_s2 = smov 32   ;;  %vm2450_vm4 = vcmask 15360  }
   0x6   :  { %v2467_v18 = vld [vmem:[%s3867_s4] ss:$0 sm:$0xff]  ;;  %s2975_s4 = smov 64  }
   0x8   :  { %v2729_v0 = vld [vmem:[%s3884_s26] sm:$0xff]   ;;  %v2731_v3 = vld [vmem:[%s3884_s26 + $0x8] sm:$0xff]  }
   0x9   :  { %v2730_v2 = vld [vmem:[%s3885_s29] sm:$0xff]   ;;  %2623 = vmatprep.subr.bf16.mxu0 %v2729_v0  ;;  %v2732_v4 = vld [vmem:[%s3885_s29 + $0x8] sm:$0xff]  }
   0xa   :  { %2635 = vmatprep.subr.bf16.mxu1 %v2730_v2  ;;  %2624 = vmatpush3.bf16.msra.mxu0 %v2729_v0 }
   0xb   :  { %2636 = vmatpush3.bf16.msra.mxu1 %v2730_v2  ;;  %2625 = vmatprep.subr.bf16.mxu0 %v2731_v3 }
   0xc   :  { %2637 = vmatprep.subr.bf16.mxu1 %v2732_v4 }
   0xe   :  { %2626 = vmatpush3.bf16.msra.mxu0 %v2731_v3 }
   0xf   :  { %2638 = vmatpush3.bf16.msra.mxu1 %v2732_v4  ;;  %469 = vmatprep.subr.bf16.mxu0 %v3094_v7  ;;  %v3221_v4 = vld [vmem:[%s3868_s6] ss:$0 sm:$0xff] }
  0x10   :  { %540 = vmatprep.subr.bf16.mxu1 %v3094_v7 }
  0x11   :  { %2628 = vmatmul.mubr.msk.bf16.vlgmr.msra.gmra.mrb[0].mxu0 %vm108_vm0, %v2734_v6 }
  0x12   :  { %2640 = vmatmul.mubr.msk.bf16.vlgmr.msra.gmra.mrb[0].mxu1 %vm108_vm0, %v2734_v6  ;;  %470 = vmatpush1.bf16.msra.mxu0 %v3099_v8 }
  0x13   :  { %471 = vmatprep.subr.bf16.mxu0 %v3105_v9  ;;  %2631 = vmatprep.mubr.msk.bf16.mxu0 %vm108_vm0, %v2741_v10 }
  0x14   :  { %2643 = vmatprep.mubr.msk.bf16.mxu1 %vm108_vm0, %v2741_v10  ;;  %541 = vmatpush1.bf16.msra.mxu1 %v3099_v8 }
  0x15   :  { %542 = vmatprep.subr.bf16.mxu1 %v3105_v9 }
  0x16   :  { %472 = vmatpush1.bf16.msra.mxu0 %v3117_v11 }
  0x17   :  { %473 = vmatprep.subr.bf16.mxu0 %v3124_v12 }
  0x18   :  { %543 = vmatpush1.bf16.msra.mxu1 %v3117_v11 }
  0x19   :  { %2632 = vmatmul.mubr.msk.bf16.gmra.mrb[4].mxu0 %vm108_vm0, %v2742_v13  ;;  %544 = vmatprep.subr.bf16.mxu1 %v3124_v12 }
  0x1a   :  { %2644 = vmatmul.mubr.msk.bf16.gmra.mrb[4].mxu1 %vm108_vm0, %v2742_v13  ;;  %474 = vmatpush1.bf16.msra.mxu0 %v3136_v14 }
  0x1b   :  { %475 = vmatprep.subr.bf16.mxu0 %v3142_v15  ;;  %501 = vmatprep.mubr.bf16.mxu0 %v2973_v1 }
  0x1c   :  { %545 = vmatpush1.bf16.msra.mxu1 %v3136_v14  ;;  %572 = vmatprep.mubr.bf16.mxu1 %v2973_v1 }
  0x1d   :  { %546 = vmatprep.subr.bf16.mxu1 %v3142_v15 }
  0x1e   :  { %476 = vmatpush1.bf16.msra.mxu0 %v3152_v16 }
  0x1f   :  { %611 = vmatprep.subr.bf16.mxu0 %v3094_v7 }
  0x20   :  { %547 = vmatpush1.bf16.msra.mxu1 %v3152_v16 }
  0x21   :  { %502 = vmatmul.mubr.bf16.vlgmr.msra.gmra.mrb[8].mxu0 %v2973_v1  ;;  %682 = vmatprep.subr.bf16.mxu1 %v3094_v7 }
  0x22   :  { %612 = vmatpush1.bf16.msra.mxu0 %v3099_v8  ;;  %643 = vmatprep.mubr.bf16.mxu0 %v2973_v1 }
  0x23   :  { %613 = vmatprep.subr.bf16.mxu0 %v3105_v9 }
  0x26   :  { %614 = vmatpush1.bf16.msra.mxu0 %v3117_v11 }
  0x27   :  { %615 = vmatprep.subr.bf16.mxu0 %v3124_v12 }
  0x2a   :  { %616 = vmatpush1.bf16.msra.mxu0 %v3136_v14 }
  0x2b   :  { %617 = vmatprep.subr.bf16.mxu0 %v3142_v15 }
  0x2e   :  { %618 = vmatpush1.bf16.msra.mxu0 %v3152_v16 }
  0x2f   :  { %753 = vmatprep.subr.bf16.mxu0 %v3094_v7 }
  0xe4   :  { %v2629_v19 = vpop.f32.mrb[0].mxu0 }
  0xe5   :  { %v2641_v20 = vpop.f32.mrb[0].mxu1  ;;  %v3179_v21 = vadd.f32 %v2629_v19, %v2456_v17  ;;  %v155_v22 = vpop.f32.mrb[1].mxu0 }
  0xe6   :  { %v3181_v23 = vadd.f32 %v2641_v20, %v2467_v18  ;;  %v243_v24 = vpop.f32.mrb[1].mxu1  ;;  %v2630_v25 = vpop.f32.mrb[2].mxu0  ;;  %v156_v47 = vadd.f32 %v2456_v17, %v155_v22 }
  0xe7   :  { %v3183_v26 = vadd.f32 %v2467_v18, %v243_v24  ;;  %v2642_v27 = vpop.f32.mrb[2].mxu1  ;;  %v3185_v28 = vadd.f32 %v2630_v25, %v2456_v17  ;;  %v158_v29 = vpop.f32.mrb[3].mxu0 }
  0xe8   :  { %v3187_v30 = vadd.f32 %v2642_v27, %v2467_v18  ;;  %v246_v31 = vpop.f32.mrb[3].mxu1  ;;  %v159_v53 = vadd.f32 %v2456_v17, %v158_v29 }
  0xe9   :  { %v3189_v32 = vadd.f32 %v2467_v18, %v246_v31 }
  0xec   :  { %v2633_v33 = vpop.f32.mrb[4].mxu0 }
  0xed   :  { %v2645_v34 = vpop.f32.mrb[4].mxu1  ;;  %v3191_v35 = vadd.f32 %v2633_v33, %v2456_v17  ;;  %v171_v36 = vpop.f32.mrb[5].mxu0 }
  0xee   :  { %v259_v37 = vpop.f32.mrb[5].mxu1  ;;  %v3193_v38 = vadd.f32 %v2456_v17, %v171_v36  ;;  %v2634_v39 = vpop.f32.mrb[6].mxu0  ;;  %v3206_v52 = vadd.f32 %v2645_v34, %v2467_v18 }
  0xef   :  { %v3195_v40 = vadd.f32 %v2467_v18, %v259_v37  ;;  %v2646_v41 = vpop.f32.mrb[6].mxu1  ;;  %v3197_v42 = vadd.f32 %v2634_v39, %v2456_v17  ;;  %v174_v43 = vpop.f32.mrb[7].mxu0 }
  0xf0   :  { %v271_v44 = vadd.f32 %v2646_v41, %v2467_v18  ;;  %v262_v45 = vpop.f32.mrb[7].mxu1  ;;  %v3199_v46 = vadd.f32 %v2456_v17, %v174_v43 }
  0xf1   :  { %v3212_v54 = vadd.f32 %v2467_v18, %v262_v45 }
  0xf2   :  { %290 = vrot.lane.b32.xlu0 %v271_v44, %s2974_s2 }
  0xf4   :  { %v503_v48 = vpop.f32.mrb[8].mxu0 }
  0xf5   :  { %519 = vrot.lane.b32.xlu1 %v503_v48, %s2975_s4  ;;  %v505_v49 = vpop.f32.mrb[9].mxu0 }
  0xf6   :  { %295 = vrot.lane.b32.xlu0 %v156_v47, %s2976_s1  ;;  %v507_v50 = vpop.f32.mrb[10].mxu0  ;;  %v510_v6 = vadd.f32 %v3221_v4, %v505_v49 }
  0xf7   :  { %v508_v51 = vpop.f32.mrb[11].mxu0 }
  0xf9   :  { %299 = vrot.lane.b32.xlu1 %v156_v47, %s2975_s4 }
  0xfa   :  { %302 = vrot.lane.b32.xlu0 %v271_v44, %s2976_s1 }
  0xfd   :  { %307 = vrot.lane.b32.xlu1 %v3206_v52, %s2974_s2 }
  0xfe   :  { %312 = vrot.lane.b32.xlu0 %v159_v53, %s2976_s1 }
 0x102   :  { %316 = vrot.lane.b32.xlu0 %v159_v53, %s2975_s4 }
 0x106   :  { %324 = vrot.lane.b32.xlu0 %v3212_v54, %s2974_s2 }
 0x164   :  { %v291_v55 = vpop.permute.xlu0 %290 }
 0x165   :  { %v293_v56 = vsel %vm108_vm0, %v156_v47, %v291_v55 }
 0x166   :  { %v511_v57 = vadd.f32 %v503_v48, %v293_v56 }
 0x167   :  { %v520_v58 = vpop.permute.xlu1 %519 }
 0x168   :  { %v2483_v59 = vmul.f32 -1.442695, %v511_v57  ;;  %v296_v60 = vpop.permute.xlu0 %295 }
 0x169   :  { %v298_v61 = vsel %vm108_vm0, %v296_v60, %v271_v44 }
 0x16a   :  { %2779 = vpow2.f32 %v2483_v59  ;;  %v522_v62 = vadd.f32 %v520_v58, %v298_v61 }
 0x16b   :  { %v300_v10 = vpop.permute.xlu1 %299 }
 0x16c   :  { %v2484_v63 = vmul.f32 -1.442695, %v522_v62  ;;  %v303_v13 = vpop.permute.xlu0 %302 }
 0x16d   :  { %v305_v19 = vsel %vm108_vm0, %v300_v10, %v303_v13 }
 0x16e   :  { %2781 = vpow2.f32 %v2484_v63 }
 0x16f   :  { %v308_v34 = vpop.permute.xlu1 %307 }
 0x170   :  { %v310_v36 = vsel %vm108_vm0, %v159_v53, %v308_v34  ;;  %v313_v53 = vpop.permute.xlu0 %312 }
 0x171   :  { %v315_v55 = vsel %vm108_vm0, %v313_v53, %v3206_v52 }
 0x174   :  { %v2780_v0 = vpop.eup %2779  ;;  %v317_v60 = vpop.permute.xlu0 %316 }
 0x175   :  { %v515_v2 = vadd.f32 1.0, %v2780_v0 }
 0x177   :  { %2783 = vrcp.f32 %v515_v2 }
 0x178   :  { %v2782_v3 = vpop.eup %2781 }
 0x179   :  { %v526_v5 = vadd.f32 1.0, %v2782_v3 }
 0x17b   :  { %2785 = vrcp.f32 %v526_v5 }
 0x181   :  { %v2784_v17 = vpop.eup %2783 }
 0x182   :  { %v529_v18 = vmul.f32 %v2784_v17, %v510_v6  ;;  %v325_v17 = vpop.permute.xlu0 %324 }
 0x184   :  { %v530_v20 = vadd.f32 %v529_v18, %v305_v19  ;;  %v327_v18 = vsel %vm108_vm0, %v3179_v21, %v325_v17 }
 0x185   :  { %v2786_v22 = vpop.eup %2785 }
 0x186   :  { %2787 = vtanh.f32 %v530_v20  ;;  %v532_v24 = vsub.f32 1.0, %v2786_v22  ;;  %v534_v27 = vmul.f32 0.0, %v2786_v22 }
 0x190   :  { %v2788_v25 = vpop.eup %2787 }
 0x191   :  { %v533_v29 = vmul.f32 %v2788_v25, %v532_v24 }
 0x193   :  { %v3225_v31 = vadd.f32 %v534_v27, %v533_v29 }
 0x195   :  { %v536_v33 = vpack.c.bf16 %v3225_v31, %v3225_v31 }
 0x197   :  { %2485 = vmatmul.mubr.msk.bf16.vlgmr.msra.gmra.mrb[8].mxu1 %vm465_vm1, %v536_v33 }
 0x198   :  { %683 = vmatpush1.bf16.msra.mxu1 %v3099_v8  ;;  %714 = vmatprep.mubr.bf16.mxu1 %v2973_v1 }
 0x199   :  { %684 = vmatprep.subr.bf16.mxu1 %v3105_v9 }
 0x19c   :  { %685 = vmatpush1.bf16.msra.mxu1 %v3117_v11 }
 0x19d   :  { %686 = vmatprep.subr.bf16.mxu1 %v3124_v12 }
 0x1a0   :  { %687 = vmatpush1.bf16.msra.mxu1 %v3136_v14 }
 0x1a1   :  { %688 = vmatprep.subr.bf16.mxu1 %v3142_v15 }
 0x1a4   :  { %689 = vmatpush1.bf16.msra.mxu1 %v3152_v16 }
 0x1a5   :  { %824 = vmatprep.subr.bf16.mxu1 %v3094_v7 }
 0x26a   :  { %v574_v37 = vpop.f32.mrb[8].mxu1 }
 0x26b   :  { %v582_v39 = vadd.f32 %v574_v37, %v310_v36  ;;  %590 = vrot.lane.b32.xlu1 %v574_v37, %s2975_s4  ;;  %v576_v41 = vpop.f32.mrb[9].mxu1 }
 0x26c   :  { %v578_v43 = vpop.f32.mrb[10].mxu1  ;;  %v581_v49 = vadd.f32 %v3221_v4, %v576_v41 }
 0x26d   :  { %v2486_v44 = vmul.f32 -1.442695, %v582_v39  ;;  %v579_v45 = vpop.f32.mrb[11].mxu1 }
 0x26f   :  { %2789 = vpow2.f32 %v2486_v44  ;;  %319 = vrot.lane.b32.xlu1 %v3206_v52, %s2976_s1 }
 0x273   :  { %329 = vrot.lane.b32.xlu1 %v3179_v21, %s2976_s1 }
 0x277   :  { %333 = vrot.lane.b32.xlu1 %v3179_v21, %s2975_s4 }
 0x279   :  { %v2790_v47 = vpop.eup %2789 }
 0x27a   :  { %v586_v48 = vadd.f32 1.0, %v2790_v47 }
 0x27b   :  { %341 = vrot.lane.b32.xlu1 %v3195_v40, %s2974_s2 }
 0x27c   :  { %2791 = vrcp.f32 %v586_v48 }
 0x286   :  { %v2792_v50 = vpop.eup %2791 }
 0x287   :  { %v600_v51 = vmul.f32 %v2792_v50, %v581_v49 }
 0x2dd   :  { %v591_v56 = vpop.permute.xlu1 %590 }
 0x2de   :  { %v593_v57 = vadd.f32 %v591_v56, %v315_v55 }
 0x2e0   :  { %v2487_v58 = vmul.f32 -1.442695, %v593_v57 }
 0x2e1   :  { %v320_v59 = vpop.permute.xlu1 %319 }
 0x2e2   :  { %2793 = vpow2.f32 %v2487_v58  ;;  %v322_v61 = vsel %vm108_vm0, %v317_v60, %v320_v59 }
 0x2e3   :  { %v601_v0 = vadd.f32 %v600_v51, %v322_v61 }
 0x2e5   :  { %v330_v37 = vpop.permute.xlu1 %329 }
 0x2e6   :  { %v332_v39 = vsel %vm108_vm0, %v330_v37, %v3212_v54 }
 0x2e9   :  { %v334_v47 = vpop.permute.xlu1 %333 }
 0x2ec   :  { %v2794_v62 = vpop.eup %2793 }
 0x2ed   :  { %v597_v63 = vadd.f32 1.0, %v2794_v62  ;;  %v342_v60 = vpop.permute.xlu1 %341 }
 0x2ee   :  { %v344_v61 = vsel %vm108_vm0, %v3185_v28, %v342_v60 }
 0x2ef   :  { %2795 = vrcp.f32 %v597_v63 }
 0x2f0   :  { %2797 = vtanh.f32 %v601_v0 }
 0x2f9   :  { %v2796_v2 = vpop.eup %2795 }
 0x2fa   :  { %v603_v3 = vsub.f32 1.0, %v2796_v2  ;;  %v2798_v5 = vpop.eup %2797  ;;  %v605_v6 = vmul.f32 %v2796_v2, %v3225_v31 }
 0x2fc   :  { %v604_v10 = vmul.f32 %v2798_v5, %v603_v3 }
 0x2fe   :  { %v3254_v52 = vadd.f32 %v605_v6, %v604_v10 }
 0x300   :  { %v607_v13 = vpack.c.bf16 %v3254_v52, %v3254_v52 }
 0x302   :  { %2488 = vmatmul.mubr.msk.bf16.vlgmr.msra.gmra.mrb[12].mxu0 %vm465_vm1, %v607_v13 }
 0x303   :  { %754 = vmatpush1.bf16.msra.mxu0 %v3099_v8  ;;  %785 = vmatprep.mubr.bf16.mxu0 %v2973_v1 }
 0x304   :  { %755 = vmatprep.subr.bf16.mxu0 %v3105_v9 }
 0x307   :  { %756 = vmatpush1.bf16.msra.mxu0 %v3117_v11 }
 0x308   :  { %757 = vmatprep.subr.bf16.mxu0 %v3124_v12 }
 0x30b   :  { %758 = vmatpush1.bf16.msra.mxu0 %v3136_v14 }
 0x30c   :  { %759 = vmatprep.subr.bf16.mxu0 %v3142_v15 }
 0x30f   :  { %760 = vmatpush1.bf16.msra.mxu0 %v3152_v16 }
 0x310   :  { %895 = vmatprep.subr.bf16.mxu0 %v3094_v7 }
 0x3d5   :  { %v645_v19 = vpop.f32.mrb[12].mxu0 }
 0x3d6   :  { %v653_v20 = vadd.f32 %v645_v19, %v327_v18  ;;  %661 = vrot.lane.b32.xlu0 %v645_v19, %s2975_s4  ;;  %v647_v22 = vpop.f32.mrb[13].mxu0 }
 0x3d7   :  { %v649_v24 = vpop.f32.mrb[14].mxu0  ;;  %v652_v33 = vadd.f32 %v3221_v4, %v647_v22 }
 0x3d8   :  { %v2489_v25 = vmul.f32 -1.442695, %v653_v20  ;;  %v650_v27 = vpop.f32.mrb[15].mxu0 }
 0x3da   :  { %2799 = vpow2.f32 %v2489_v25  ;;  %336 = vrot.lane.b32.xlu0 %v3212_v54, %s2976_s1 }
 0x3de   :  { %346 = vrot.lane.b32.xlu0 %v3185_v28, %s2976_s1 }
 0x3e2   :  { %350 = vrot.lane.b32.xlu0 %v3185_v28, %s2975_s4 }
 0x3e4   :  { %v2800_v29 = vpop.eup %2799 }
 0x3e5   :  { %v657_v21 = vadd.f32 1.0, %v2800_v29 }
 0x3e6   :  { %358 = vrot.lane.b32.xlu0 %v3187_v30, %s2974_s2 }
 0x3e7   :  { %2801 = vrcp.f32 %v657_v21 }
 0x3f1   :  { %v2802_v34 = vpop.eup %2801 }
 0x3f2   :  { %v671_v36 = vmul.f32 %v2802_v34, %v652_v33 }
 0x448   :  { %v662_v41 = vpop.permute.xlu0 %661 }
 0x449   :  { %v664_v43 = vadd.f32 %v662_v41, %v332_v39 }
 0x44b   :  { %v2490_v44 = vmul.f32 -1.442695, %v664_v43 }
 0x44c   :  { %v337_v45 = vpop.permute.xlu0 %336 }
 0x44d   :  { %2803 = vpow2.f32 %v2490_v44  ;;  %v339_v48 = vsel %vm108_vm0, %v334_v47, %v337_v45 }
 0x44e   :  { %v672_v51 = vadd.f32 %v671_v36, %v339_v48 }
 0x450   :  { %v347_v17 = vpop.permute.xlu0 %346 }
 0x451   :  { %v349_v18 = vsel %vm108_vm0, %v347_v17, %v3195_v40 }
 0x454   :  { %v351_v25 = vpop.permute.xlu0 %350 }
 0x457   :  { %v2804_v49 = vpop.eup %2803 }
 0x458   :  { %v668_v50 = vadd.f32 1.0, %v2804_v49  ;;  %v359_v44 = vpop.permute.xlu0 %358 }
 0x459   :  { %v361_v45 = vsel %vm108_vm0, %v3193_v38, %v359_v44 }
 0x45a   :  { %2805 = vrcp.f32 %v668_v50 }
 0x45b   :  { %2807 = vtanh.f32 %v672_v51 }
 0x464   :  { %v2806_v53 = vpop.eup %2805 }
 0x465   :  { %v674_v55 = vsub.f32 1.0, %v2806_v53  ;;  %v2808_v56 = vpop.eup %2807  ;;  %v676_v57 = vmul.f32 %v2806_v53, %v3254_v52 }
 0x467   :  { %v675_v58 = vmul.f32 %v2808_v56, %v674_v55 }
 0x469   :  { %v3284_v54 = vadd.f32 %v676_v57, %v675_v58 }
 0x46b   :  { %v678_v59 = vpack.c.bf16 %v3284_v54, %v3284_v54 }
 0x46d   :  { %2491 = vmatmul.mubr.msk.bf16.vlgmr.msra.gmra.mrb[12].mxu1 %vm465_vm1, %v678_v59 }
 0x46e   :  { %825 = vmatpush1.bf16.msra.mxu1 %v3099_v8  ;;  %856 = vmatprep.mubr.bf16.mxu1 %v2973_v1 }
 0x46f   :  { %826 = vmatprep.subr.bf16.mxu1 %v3105_v9 }
 0x472   :  { %827 = vmatpush1.bf16.msra.mxu1 %v3117_v11 }
 0x473   :  { %828 = vmatprep.subr.bf16.mxu1 %v3124_v12 }
 0x476   :  { %829 = vmatpush1.bf16.msra.mxu1 %v3136_v14 }
 0x477   :  { %830 = vmatprep.subr.bf16.mxu1 %v3142_v15 }
 0x47a   :  { %831 = vmatpush1.bf16.msra.mxu1 %v3152_v16 }
 0x47b   :  { %966 = vmatprep.subr.bf16.mxu1 %v3094_v7 }
 0x540   :  { %v716_v62 = vpop.f32.mrb[12].mxu1 }
 0x541   :  { %v724_v63 = vadd.f32 %v716_v62, %v344_v61  ;;  %732 = vrot.lane.b32.xlu1 %v716_v62, %s2975_s4  ;;  %v718_v0 = vpop.f32.mrb[13].mxu1 }
 0x542   :  { %v720_v2 = vpop.f32.mrb[14].mxu1  ;;  %v723_v6 = vadd.f32 %v3221_v4, %v718_v0 }
 0x543   :  { %v2492_v3 = vmul.f32 -1.442695, %v724_v63  ;;  %v721_v5 = vpop.f32.mrb[15].mxu1 }
 0x545   :  { %2809 = vpow2.f32 %v2492_v3  ;;  %353 = vrot.lane.b32.xlu1 %v3195_v40, %s2976_s1 }
 0x549   :  { %363 = vrot.lane.b32.xlu1 %v3193_v38, %s2976_s1 }
 0x54d   :  { %367 = vrot.lane.b32.xlu1 %v3193_v38, %s2975_s4 }
 0x54f   :  { %v2810_v7 = vpop.eup %2809 }
 0x550   :  { %v728_v28 = vadd.f32 1.0, %v2810_v7 }
 0x551   :  { %375 = vrot.lane.b32.xlu1 %v3181_v23, %s2974_s2 }
 0x552   :  { %2811 = vrcp.f32 %v728_v28 }
 0x55c   :  { %v2812_v10 = vpop.eup %2811 }
 0x55d   :  { %v742_v13 = vmul.f32 %v2812_v10, %v723_v6 }
 0x5b3   :  { %v733_v19 = vpop.permute.xlu1 %732 }
 0x5b4   :  { %v735_v20 = vadd.f32 %v733_v19, %v349_v18 }
 0x5b6   :  { %v2493_v22 = vmul.f32 -1.442695, %v735_v20 }
 0x5b7   :  { %v354_v24 = vpop.permute.xlu1 %353 }
 0x5b8   :  { %2813 = vpow2.f32 %v2493_v22  ;;  %v356_v27 = vsel %vm108_vm0, %v351_v25, %v354_v24 }
 0x5b9   :  { %v743_v33 = vadd.f32 %v742_v13, %v356_v27 }
 0x5bb   :  { %v364_v59 = vpop.permute.xlu1 %363 }
 0x5bc   :  { %v366_v60 = vsel %vm108_vm0, %v364_v59, %v3187_v30 }
 0x5bf   :  { %v368_v2 = vpop.permute.xlu1 %367 }
 0x5c2   :  { %v2814_v29 = vpop.eup %2813 }
 0x5c3   :  { %v739_v21 = vadd.f32 1.0, %v2814_v29  ;;  %v376_v20 = vpop.permute.xlu1 %375 }
 0x5c4   :  { %v378_v22 = vsel %vm108_vm0, %v3199_v46, %v376_v20 }
 0x5c5   :  { %2815 = vrcp.f32 %v739_v21 }
 0x5c6   :  { %2817 = vtanh.f32 %v743_v33 }
 0x5cf   :  { %v2816_v34 = vpop.eup %2815 }
 0x5d0   :  { %v745_v36 = vsub.f32 1.0, %v2816_v34  ;;  %v2818_v37 = vpop.eup %2817  ;;  %v747_v39 = vmul.f32 %v2816_v34, %v3284_v54 }
 0x5d2   :  { %v746_v41 = vmul.f32 %v2818_v37, %v745_v36 }
 0x5d4   :  { %v3314_v40 = vadd.f32 %v747_v39, %v746_v41 }
 0x5d6   :  { %v749_v43 = vpack.c.bf16 %v3314_v40, %v3314_v40 }
 0x5d8   :  { %2494 = vmatmul.mubr.msk.bf16.vlgmr.msra.gmra.mrb[16].mxu0 %vm465_vm1, %v749_v43 }
 0x5d9   :  { %896 = vmatpush1.bf16.msra.mxu0 %v3099_v8  ;;  %927 = vmatprep.mubr.bf16.mxu0 %v2973_v1 }
 0x5da   :  { %897 = vmatprep.subr.bf16.mxu0 %v3105_v9 }
 0x5dd   :  { %898 = vmatpush1.bf16.msra.mxu0 %v3117_v11 }
 0x5de   :  { %899 = vmatprep.subr.bf16.mxu0 %v3124_v12 }
 0x5e1   :  { %900 = vmatpush1.bf16.msra.mxu0 %v3136_v14 }
 0x5e2   :  { %901 = vmatprep.subr.bf16.mxu0 %v3142_v15 }
 0x5e5   :  { %902 = vmatpush1.bf16.msra.mxu0 %v3152_v16 }
 0x6ab   :  { %v787_v47 = vpop.f32.mrb[16].mxu0 }
 0x6ac   :  { %v795_v48 = vadd.f32 %v787_v47, %v361_v45  ;;  %803 = vrot.lane.b32.xlu0 %v787_v47, %s2975_s4  ;;  %v789_v49 = vpop.f32.mrb[17].mxu0 }
 0x6ad   :  { %v791_v50 = vpop.f32.mrb[18].mxu0  ;;  %v794_v56 = vadd.f32 %v3221_v4, %v789_v49 }
 0x6ae   :  { %v2495_v51 = vmul.f32 -1.442695, %v795_v48  ;;  %v792_v53 = vpop.f32.mrb[19].mxu0 }
 0x6b0   :  { %2819 = vpow2.f32 %v2495_v51  ;;  %370 = vrot.lane.b32.xlu0 %v3187_v30, %s2976_s1 }
 0x6b4   :  { %380 = vrot.lane.b32.xlu0 %v3199_v46, %s2976_s1 }
 0x6b8   :  { %384 = vrot.lane.b32.xlu0 %v3199_v46, %s2975_s4 }
 0x6ba   :  { %v2820_v55 = vpop.eup %2819 }
 0x6bb   :  { %v799_v38 = vadd.f32 1.0, %v2820_v55 }
 0x6bc   :  { %392 = vrot.lane.b32.xlu0 %v3189_v32, %s2974_s2 }
 0x6bd   :  { %2821 = vrcp.f32 %v799_v38 }
 0x6c7   :  { %v2822_v57 = vpop.eup %2821 }
 0x6c8   :  { %v813_v58 = vmul.f32 %v2822_v57, %v794_v56 }
 0x71e   :  { %v804_v61 = vpop.permute.xlu0 %803 }
 0x71f   :  { %v806_v62 = vadd.f32 %v804_v61, %v366_v60 }
 0x721   :  { %v2496_v63 = vmul.f32 -1.442695, %v806_v62 }
 0x722   :  { %v371_v0 = vpop.permute.xlu0 %370 }
 0x723   :  { %2823 = vpow2.f32 %v2496_v63  ;;  %v373_v3 = vsel %vm108_vm0, %v368_v2, %v371_v0 }
 0x724   :  { %v814_v28 = vadd.f32 %v813_v58, %v373_v3 }
 0x726   :  { %v381_v29 = vpop.permute.xlu0 %380 }
 0x727   :  { %v383_v21 = vsel %vm108_vm0, %v381_v29, %v3181_v23 }
 0x72a   :  { %v385_v39 = vpop.permute.xlu0 %384 }
 0x72d   :  { %v2824_v5 = vpop.eup %2823 }
 0x72e   :  { %v810_v7 = vadd.f32 1.0, %v2824_v5  ;;  %v393_v55 = vpop.permute.xlu0 %392 }
 0x72f   :  { %v395_v38 = vsel %vm108_vm0, %v3191_v35, %v393_v55 }
 0x730   :  { %2825 = vrcp.f32 %v810_v7 }
 0x731   :  { %2827 = vtanh.f32 %v814_v28 }
 0x73a   :  { %v2826_v6 = vpop.eup %2825 }
 0x73b   :  { %v816_v10 = vsub.f32 1.0, %v2826_v6  ;;  %v2828_v13 = vpop.eup %2827  ;;  %v818_v17 = vmul.f32 %v2826_v6, %v3314_v40 }
 0x73d   :  { %v817_v18 = vmul.f32 %v2828_v13, %v816_v10 }
 0x73f   :  { %v3343_v30 = vadd.f32 %v818_v17, %v817_v18 }
 0x741   :  { %v820_v19 = vpack.c.bf16 %v3343_v30, %v3343_v30 }
 0x743   :  { %2497 = vmatmul.mubr.msk.bf16.vlgmr.msra.gmra.mrb[16].mxu1 %vm465_vm1, %v820_v19 }
 0x744   :  { %967 = vmatpush1.bf16.msra.mxu1 %v3099_v8  ;;  %998 = vmatprep.mubr.bf16.mxu1 %v2973_v1 }
 0x745   :  { %968 = vmatprep.subr.bf16.mxu1 %v3105_v9 }
 0x748   :  { %969 = vmatpush1.bf16.msra.mxu1 %v3117_v11 }
 0x749   :  { %970 = vmatprep.subr.bf16.mxu1 %v3124_v12 }
 0x74c   :  { %971 = vmatpush1.bf16.msra.mxu1 %v3136_v14 }
 0x74d   :  { %972 = vmatprep.subr.bf16.mxu1 %v3142_v15 }
 0x750   :  { %973 = vmatpush1.bf16.msra.mxu1 %v3152_v16 }
 0x816   :  { %v858_v24 = vpop.f32.mrb[16].mxu1 }
 0x817   :  { %v866_v8 = vadd.f32 %v858_v24, %v378_v22  ;;  %874 = vrot.lane.b32.xlu1 %v858_v24, %s2975_s4  ;;  %v860_v25 = vpop.f32.mrb[17].mxu1 }
 0x818   :  { %v862_v9 = vpop.f32.mrb[18].mxu1  ;;  %v865_v15 = vadd.f32 %v3221_v4, %v860_v25 }
 0x819   :  { %v2498_v27 = vmul.f32 -1.442695, %v866_v8  ;;  %v863_v11 = vpop.f32.mrb[19].mxu1 }
 0x81b   :  { %2829 = vpow2.f32 %v2498_v27  ;;  %387 = vrot.lane.b32.xlu1 %v3181_v23, %s2976_s1 }
 0x81f   :  { %397 = vrot.lane.b32.xlu1 %v3191_v35, %s2976_s1 }
 0x823   :  { %401 = vrot.lane.b32.xlu1 %v3191_v35, %s2975_s4 }
 0x825   :  { %v2830_v12 = vpop.eup %2829 }
 0x826   :  { %v870_v14 = vadd.f32 1.0, %v2830_v12 }
 0x827   :  { %409 = vrot.lane.b32.xlu1 %v3183_v26, %s2974_s2 }
 0x828   :  { %2831 = vrcp.f32 %v870_v14 }
 0x832   :  { %v2832_v16 = vpop.eup %2831 }
 0x833   :  { %v884_v46 = vmul.f32 %v2832_v16, %v865_v15 }
 0x889   :  { %v875_v33 = vpop.permute.xlu1 %874 }
 0x88a   :  { %v877_v34 = vadd.f32 %v875_v33, %v383_v21  ;;  %v2749_v33 = vld [vmem:[%s3869_s7] sm:$0xff]  }
 0x88b   :  { %2647 = vmatprep.subr.bf16.mxu0 %v2749_v33 }
 0x88c   :  { %v2499_v36 = vmul.f32 -1.442695, %v877_v34  ;;  %v2751_v34 = vld [vmem:[%s3869_s7 + $0x8] sm:$0xff]  }
 0x88d   :  { %v388_v37 = vpop.permute.xlu1 %387 }
 0x88e   :  { %2833 = vpow2.f32 %v2499_v36  ;;  %v390_v41 = vsel %vm108_vm0, %v385_v39, %v388_v37  ;;  %v2752_v36 = vld [vmem:[%s3870_s9 + $0x8] sm:$0xff]  }
 0x88f   :  { %v885_v45 = vadd.f32 %v884_v46, %v390_v41  ;;  %v2753_v41 = vld [vmem:[%s3869_s7 + $0x10] sm:$0xff]  }
 0x891   :  { %v398_v3 = vpop.permute.xlu1 %397 }
 0x892   :  { %v400_v5 = vsel %vm108_vm0, %v398_v3, %v3189_v32 }
 0x895   :  { %v402_v13 = vpop.permute.xlu1 %401 }
 0x898   :  { %v2834_v43 = vpop.eup %2833 }
 0x899   :  { %v881_v44 = vadd.f32 1.0, %v2834_v43  ;;  %v410_v11 = vpop.permute.xlu1 %409  ;;  %v2754_v43 = vld [vmem:[%s3870_s9 + $0x10] sm:$0xff]  }
 0x89a   :  { %v412_v12 = vsel %vm108_vm0, %v3197_v42, %v410_v11 }
 0x89b   :  { %2835 = vrcp.f32 %v881_v44  ;;  %v2755_v44 = vld [vmem:[%s3869_s7 + $0x18] sm:$0xff]  }
 0x89c   :  { %2837 = vtanh.f32 %v885_v45  ;;  %v2756_v45 = vld [vmem:[%s3870_s9 + $0x18] sm:$0xff]  }
 0x8a5   :  { %v2836_v47 = vpop.eup %2835 }
 0x8a6   :  { %v887_v48 = vsub.f32 1.0, %v2836_v47  ;;  %v2838_v49 = vpop.eup %2837  ;;  %v889_v50 = vmul.f32 %v2836_v47, %v3343_v30  ;;  %v3428_v47 = vld [vmem:[%s3871_s11 + $0x4] ss:$8 sps:$4 sm:$0xff]  }
 0x8a8   :  { %v888_v51 = vmul.f32 %v2838_v49, %v887_v48 }
 0x8aa   :  { %v3372_v23 = vadd.f32 %v889_v50, %v888_v51 }
 0x8ac   :  { %v891_v53 = vpack.c.bf16 %v3372_v23, %v3372_v23  ;;  %v1035_v3 = vsel %vm108_vm0, %v3284_v54, %v3372_v23 }
 0x8ae   :  { %2500 = vmatmul.mubr.msk.bf16.vlgmr.msra.gmra.mrb[20].mxu0 %vm465_vm1, %v891_v53 }
 0x8af   :  { %2648 = vmatpush3.bf16.msra.mxu0 %v2749_v33 }
 0x8b0   :  { %2649 = vmatprep.subr.bf16.mxu0 %v2751_v34 }
 0x8b3   :  { %2650 = vmatpush3.bf16.msra.mxu0 %v2751_v34 }
 0x8b4   :  { %2651 = vmatprep.subr.bf16.mxu0 %v2753_v41 }
 0x8b7   :  { %2652 = vmatpush3.bf16.msra.mxu0 %v2753_v41 }
 0x8b8   :  { %2653 = vmatprep.subr.bf16.mxu0 %v2755_v44 }
 0x8bb   :  { %2654 = vmatpush3.bf16.msra.mxu0 %v2755_v44 }
 0x8bc   :  { %1456 = vmatprep.subr.bf16.mxu0 %v3428_v47 }
 0x981   :  { %v929_v56 = vpop.f32.mrb[20].mxu0 }
 0x982   :  { %v937_v57 = vadd.f32 %v929_v56, %v395_v38  ;;  %945 = vrot.lane.b32.xlu0 %v929_v56, %s2975_s4  ;;  %v931_v58 = vpop.f32.mrb[21].mxu0 }
 0x983   :  { %v933_v59 = vpop.f32.mrb[22].mxu0  ;;  %v936_v63 = vadd.f32 %v3221_v4, %v931_v58 }
 0x984   :  { %v2501_v60 = vmul.f32 -1.442695, %v937_v57  ;;  %v934_v61 = vpop.f32.mrb[23].mxu0 }
 0x986   :  { %2839 = vpow2.f32 %v2501_v60  ;;  %404 = vrot.lane.b32.xlu0 %v3189_v32, %s2976_s1 }
 0x98a   :  { %414 = vrot.lane.b32.xlu0 %v3197_v42, %s2976_s1 }
 0x98e   :  { %418 = vrot.lane.b32.xlu0 %v3197_v42, %s2975_s4  ;;  %v2750_v42 = vld [vmem:[%s3870_s9] sm:$0xff]  }
 0x98f   :  { %2663 = vmatprep.subr.bf16.mxu1 %v2750_v42 }
 0x990   :  { %v2840_v62 = vpop.eup %2839 }
 0x991   :  { %v941_v35 = vadd.f32 1.0, %v2840_v62 }
 0x993   :  { %2841 = vrcp.f32 %v941_v35 }
 0x99d   :  { %v2842_v0 = vpop.eup %2841 }
 0x99e   :  { %v955_v2 = vmul.f32 %v2842_v0, %v936_v63 }
 0x9f4   :  { %v946_v7 = vpop.permute.xlu0 %945 }
 0x9f5   :  { %v948_v28 = vadd.f32 %v946_v7, %v400_v5 }
 0x9f7   :  { %v2502_v6 = vmul.f32 -1.442695, %v948_v28  ;;  %v1038_v28 = vsel %vm108_vm0, %v3372_v23, %v3284_v54 }
 0x9f8   :  { %v405_v10 = vpop.permute.xlu0 %404 }
 0x9f9   :  { %2843 = vpow2.f32 %v2502_v6  ;;  %v407_v17 = vsel %vm108_vm0, %v402_v13, %v405_v10  ;;  %v1036_v10 = vsel %vm108_vm0, %v3314_v40, %v3343_v30 }
 0x9fa   :  { %v956_v20 = vadd.f32 %v955_v2, %v407_v17  ;;  %v1042_v13 = vpack.c.bf16 %v1036_v10, %v1035_v3  ;;  %v1037_v17 = vsel %vm108_vm0, %v3343_v30, %v3314_v40  ;;  %v3474_v40 = vld [vmem:[%s3871_s11 + $0x10] ss:$8 sps:$4 sm:$0xff]  }
 0x9fb   :  { %v1043_v54 = vpack.c.bf16 %v1038_v28, %v1037_v17  ;;  %v3578_v17 = vld [vmem:[%s3874_s12] ss:$0 sm:$0xff] }
 0x9fc   :  { %v415_v51 = vpop.permute.xlu0 %414 }
 0x9fd   :  { %v417_v53 = vsel %vm108_vm0, %v415_v51, %v3183_v26 }
 0xa00   :  { %v419_v58 = vpop.permute.xlu0 %418 }
 0xa03   :  { %v2844_v18 = vpop.eup %2843 }
 0xa04   :  { %v952_v19 = vadd.f32 1.0, %v2844_v18  ;;  %v3457_v18 = vld [vmem:[%s3871_s11] ss:$8 sps:$4 sm:$0xff]  }
 0xa06   :  { %2845 = vrcp.f32 %v952_v19  ;;  %v3483_v19 = vld [vmem:[%s3871_s11 + $0x24] ss:$8 sps:$4 sm:$0xff]  }
 0xa07   :  { %2847 = vtanh.f32 %v956_v20 }
 0xa10   :  { %v2846_v22 = vpop.eup %2845 }
 0xa11   :  { %v958_v24 = vsub.f32 1.0, %v2846_v22  ;;  %v2848_v8 = vpop.eup %2847  ;;  %v960_v25 = vmul.f32 %v2846_v22, %v3372_v23  ;;  %v3464_v23 = vld [vmem:[%s3871_s11 + $0x14] ss:$8 sps:$4 sm:$0xff]  }
 0xa13   :  { %v959_v9 = vmul.f32 %v2848_v8, %v958_v24  ;;  %v3493_v24 = vld [vmem:[%s3871_s11 + $0x20] ss:$8 sps:$4 sm:$0xff]  }
 0xa14   :  { %v2506_v8 = vld [vmem:[%s3872_s8] ss:$0 sm:$0xff] }
 0xa15   :  { %v3391_v32 = vadd.f32 %v960_v25, %v959_v9  ;;  %v2515_v25 = vld [vmem:[%s3873_s10] ss:$0 sm:$0xff] }
 0xa17   :  { %v962_v27 = vpack.c.bf16 %v3391_v32, %v3391_v32  ;;  %v1034_v7 = vsel %vm108_vm0, %v3254_v52, %v3391_v32  ;;  %v1039_v20 = vsel %vm108_vm0, %v3391_v32, %v3254_v52  ;;  %v3511_v52 = vld [vmem:[%s3871_s11 + $0x30] ss:$8 sps:$4 sm:$0xff]  }
 0xa19   :  { %2503 = vmatmul.mubr.msk.bf16.vlgmr.msra.gmra.mrb[20].mxu1 %vm465_vm1, %v962_v27 }
 0xa1a   :  { %2664 = vmatpush3.bf16.msra.mxu1 %v2750_v42 }
 0xa1b   :  { %2665 = vmatprep.subr.bf16.mxu1 %v2752_v36 }
 0xa1e   :  { %2666 = vmatpush3.bf16.msra.mxu1 %v2752_v36 }
 0xa1f   :  { %2667 = vmatprep.subr.bf16.mxu1 %v2754_v43 }
 0xa22   :  { %2668 = vmatpush3.bf16.msra.mxu1 %v2754_v43 }
 0xa23   :  { %2669 = vmatprep.subr.bf16.mxu1 %v2756_v45 }
 0xa26   :  { %2670 = vmatpush3.bf16.msra.mxu1 %v2756_v45 }
 0xa27   :  { %1527 = vmatprep.subr.bf16.mxu1 %v3428_v47 }
 0xaec   :  { %v1000_v14 = vpop.f32.mrb[20].mxu1 }
 0xaed   :  { %v1008_v15 = vadd.f32 %v1000_v14, %v412_v12  ;;  %1016 = vrot.lane.b32.xlu1 %v1000_v14, %s2975_s4  ;;  %v1002_v16 = vpop.f32.mrb[21].mxu1 }
 0xaee   :  { %v1004_v46 = vpop.f32.mrb[22].mxu1  ;;  %v1007_v48 = vadd.f32 %v3221_v4, %v1002_v16 }
 0xaef   :  { %v2504_v29 = vmul.f32 -1.442695, %v1008_v15  ;;  %v1005_v21 = vpop.f32.mrb[23].mxu1 }
 0xaf1   :  { %2849 = vpow2.f32 %v2504_v29  ;;  %421 = vrot.lane.b32.xlu1 %v3183_v26, %s2976_s1 }
 0xafb   :  { %v2850_v37 = vpop.eup %2849 }
 0xafc   :  { %v1012_v39 = vadd.f32 1.0, %v2850_v37 }
 0xafe   :  { %2851 = vrcp.f32 %v1012_v39 }
 0xb08   :  { %v2852_v49 = vpop.eup %2851 }
 0xb09   :  { %v1026_v50 = vmul.f32 %v2852_v49, %v1007_v48 }
 0xb5f   :  { %v1017_v55 = vpop.permute.xlu1 %1016 }
 0xb60   :  { %v1019_v38 = vadd.f32 %v1017_v55, %v417_v53 }
 0xb62   :  { %v2505_v56 = vmul.f32 -1.442695, %v1019_v38 }
 0xb63   :  { %v422_v57 = vpop.permute.xlu1 %421 }
 0xb64   :  { %2853 = vpow2.f32 %v2505_v56  ;;  %v424_v59 = vsel %vm108_vm0, %v419_v58, %v422_v57 }
 0xb65   :  { %v1027_v62 = vadd.f32 %v1026_v50, %v424_v59 }
 0xb6e   :  { %v2854_v60 = vpop.eup %2853 }
 0xb6f   :  { %v1023_v61 = vadd.f32 1.0, %v2854_v60 }
 0xb71   :  { %2855 = vrcp.f32 %v1023_v61 }
 0xb72   :  { %2857 = vtanh.f32 %v1027_v62 }
 0xb7b   :  { %v2856_v4 = vpop.eup %2855 }
 0xb7c   :  { %v1029_v35 = vsub.f32 1.0, %v2856_v4  ;;  %v2858_v63 = vpop.eup %2857  ;;  %v1031_v2 = vmul.f32 %v2856_v4, %v3391_v32 }
 0xb7e   :  { %v1030_v0 = vmul.f32 %v2858_v63, %v1029_v35 }
 0xb80   :  { %v1032_v26 = vadd.f32 %v1031_v2, %v1030_v0 }
 0xb82   :  { %v1033_v5 = vsel %vm108_vm0, %v3225_v31, %v1032_v26  ;;  %v1040_v30 = vsel %vm108_vm0, %v1032_v26, %v3225_v31  ;;  %v3500_v31 = vld [vmem:[%s3871_s11 + $0x34] ss:$8 sps:$4 sm:$0xff]  }
 0xb83   :  { %v1041_v6 = vpack.c.bf16 %v1034_v7, %v1033_v5  ;;  %v1044_v22 = vpack.c.bf16 %v1040_v30, %v1039_v20 }
 0xb85   :  { %2655 = vmatprep.mubr.msk.bf16.mxu0 %vm465_vm1, %v1041_v6  ;;  %2671 = vmatprep.mubr.msk.bf16.mxu1 %vm465_vm1, %v1041_v6 }
 0xb86   :  { %2656 = vmatmul.mubr.msk.bf16.vlgmr.msra.gmra.mrb[24].mxu0 %vm465_vm1, %v1042_v13  ;;  %2672 = vmatmul.mubr.msk.bf16.vlgmr.msra.gmra.mrb[24].mxu1 %vm465_vm1, %v1042_v13 }
 0xb87   :  { %2659 = vmatprep.mubr.msk.bf16.mxu0 %vm465_vm1, %v1043_v54  ;;  %2675 = vmatprep.mubr.msk.bf16.mxu1 %vm465_vm1, %v1043_v54 }
 0xb88   :  { %1457 = vmatpush1.bf16.msra.mxu0 %v3457_v18  ;;  %1528 = vmatpush1.bf16.msra.mxu1 %v3457_v18 }
 0xb89   :  { %1458 = vmatprep.subr.bf16.mxu0 %v3464_v23  ;;  %1529 = vmatprep.subr.bf16.mxu1 %v3464_v23 }
 0xb8c   :  { %1459 = vmatpush1.bf16.msra.mxu0 %v3474_v40  ;;  %1530 = vmatpush1.bf16.msra.mxu1 %v3474_v40 }
 0xb8d   :  { %1460 = vmatprep.subr.bf16.mxu0 %v3483_v19  ;;  %1531 = vmatprep.subr.bf16.mxu1 %v3483_v19 }
 0xb8e   :  { %2660 = vmatmul.mubr.msk.bf16.gmra.mrb[28].mxu0 %vm465_vm1, %v1044_v22  ;;  %2676 = vmatmul.mubr.msk.bf16.gmra.mrb[28].mxu1 %vm465_vm1, %v1044_v22 }
 0xb8f   :  { %1488 = vmatprep.mubr.bf16.mxu0 %v2973_v1  ;;  %1559 = vmatprep.mubr.bf16.mxu1 %v2973_v1 }
 0xb90   :  { %1461 = vmatpush1.bf16.msra.mxu0 %v3493_v24  ;;  %1532 = vmatpush1.bf16.msra.mxu1 %v3493_v24 }
 0xb91   :  { %1462 = vmatprep.subr.bf16.mxu0 %v3500_v31  ;;  %1533 = vmatprep.subr.bf16.mxu1 %v3500_v31 }
 0xb94   :  { %1463 = vmatpush1.bf16.msra.mxu0 %v3511_v52  ;;  %1534 = vmatpush1.bf16.msra.mxu1 %v3511_v52 }
 0xb95   :  { %1598 = vmatprep.subr.bf16.mxu0 %v3428_v47  ;;  %1669 = vmatprep.subr.bf16.mxu1 %v3428_v47 }
 0xb97   :  { %1489 = vmatmul.mubr.bf16.vlgmr.msra.gmra.mrb[32].mxu0 %v2973_v1 }
 0xb98   :  { %1599 = vmatpush1.bf16.msra.mxu0 %v3457_v18  ;;  %1630 = vmatprep.mubr.bf16.mxu0 %v2973_v1 }
 0xb99   :  { %1600 = vmatprep.subr.bf16.mxu0 %v3464_v23 }
 0xb9c   :  { %1601 = vmatpush1.bf16.msra.mxu0 %v3474_v40 }
 0xb9d   :  { %1602 = vmatprep.subr.bf16.mxu0 %v3483_v19 }
 0xba0   :  { %1603 = vmatpush1.bf16.msra.mxu0 %v3493_v24 }
 0xba1   :  { %1604 = vmatprep.subr.bf16.mxu0 %v3500_v31 }
 0xba4   :  { %1605 = vmatpush1.bf16.msra.mxu0 %v3511_v52 }
 0xba5   :  { %1740 = vmatprep.subr.bf16.mxu0 %v3428_v47 }
 0xc59   :  { %v2657_v9 = vpop.f32.mrb[24].mxu0  ;;  %v2673_v32 = vpop.f32.mrb[24].mxu1 }
 0xc5a   :  { %v3536_v27 = vadd.f32 %v2657_v9, %v2506_v8  ;;  %v3538_v11 = vadd.f32 %v2673_v32, %v2515_v25  ;;  %v1130_v12 = vpop.f32.mrb[25].mxu0  ;;  %v1234_v14 = vpop.f32.mrb[25].mxu1 }
 0xc5b   :  { %v1131_v15 = vadd.f32 %v2506_v8, %v1130_v12  ;;  %v3540_v16 = vadd.f32 %v2515_v25, %v1234_v14  ;;  %v2658_v46 = vpop.f32.mrb[26].mxu0  ;;  %v2674_v29 = vpop.f32.mrb[26].mxu1 }
 0xc5c   :  { %v3542_v21 = vadd.f32 %v2658_v46, %v2506_v8  ;;  %v3544_v33 = vadd.f32 %v2674_v29, %v2515_v25  ;;  %v1133_v42 = vpop.f32.mrb[27].mxu0  ;;  %v1237_v34 = vpop.f32.mrb[27].mxu1 }
 0xc5d   :  { %v3546_v36 = vadd.f32 %v2515_v25, %v1237_v34  ;;  %1286 = vrot.lane.b32.xlu1 %v1131_v15, %s2976_s1  ;;  %v1134_v62 = vadd.f32 %v2506_v8, %v1133_v42 }
 0xc61   :  { %v2661_v37 = vpop.f32.mrb[28].mxu0  ;;  %1290 = vrot.lane.b32.xlu1 %v1131_v15, %s2975_s4  ;;  %v2677_v39 = vpop.f32.mrb[28].mxu1 }
 0xc62   :  { %v3550_v41 = vadd.f32 %v2661_v37, %v2506_v8  ;;  %v3552_v43 = vadd.f32 %v2677_v39, %v2515_v25  ;;  %v1146_v44 = vpop.f32.mrb[29].mxu0  ;;  %v1250_v45 = vpop.f32.mrb[29].mxu1 }
 0xc63   :  { %v3554_v48 = vadd.f32 %v2506_v8, %v1146_v44  ;;  %v3556_v49 = vadd.f32 %v2515_v25, %v1250_v45  ;;  %v2662_v50 = vpop.f32.mrb[30].mxu0  ;;  %v2678_v51 = vpop.f32.mrb[30].mxu1 }
 0xc64   :  { %v3558_v53 = vadd.f32 %v2662_v50, %v2506_v8  ;;  %v1262_v55 = vadd.f32 %v2678_v51, %v2515_v25  ;;  %v1149_v38 = vpop.f32.mrb[31].mxu0  ;;  %v1253_v56 = vpop.f32.mrb[31].mxu1 }
 0xc65   :  { %v3560_v57 = vadd.f32 %v2506_v8, %v1149_v38  ;;  %1298 = vrot.lane.b32.xlu1 %v3552_v43, %s2974_s2  ;;  %v3569_v4 = vadd.f32 %v2515_v25, %v1253_v56 }
 0xc66   :  { %1281 = vrot.lane.b32.xlu0 %v1262_v55, %s2974_s2 }
 0xc6a   :  { %v1490_v58 = vpop.f32.mrb[32].mxu0 }
 0xc6b   :  { %1506 = vrot.lane.b32.xlu0 %v1490_v58, %s2975_s4  ;;  %v1492_v59 = vpop.f32.mrb[33].mxu0 }
 0xc6c   :  { %v1494_v60 = vpop.f32.mrb[34].mxu0  ;;  %v1497_v30 = vadd.f32 %v3578_v17, %v1492_v59 }
 0xc6d   :  { %v1495_v61 = vpop.f32.mrb[35].mxu0 }
 0xc6f   :  { %1293 = vrot.lane.b32.xlu0 %v1262_v55, %s2976_s1 }
 0xc73   :  { %1303 = vrot.lane.b32.xlu0 %v1134_v62, %s2976_s1 }
 0xc77   :  { %1307 = vrot.lane.b32.xlu0 %v1134_v62, %s2975_s4 }
 0xc7b   :  { %1315 = vrot.lane.b32.xlu0 %v3569_v4, %s2974_s2 }
 0xccf   :  { %v1287_v0 = vpop.permute.xlu1 %1286 }
 0xcd0   :  { %v1289_v5 = vsel %vm108_vm0, %v1287_v0, %v1262_v55 }
 0xcd3   :  { %v1291_v8 = vpop.permute.xlu1 %1290 }
 0xcd7   :  { %v1299_v37 = vpop.permute.xlu1 %1298 }
 0xcd8   :  { %v1282_v35 = vpop.permute.xlu0 %1281  ;;  %v1301_v39 = vsel %vm108_vm0, %v1134_v62, %v1299_v37 }
 0xcd9   :  { %v1284_v63 = vsel %vm108_vm0, %v1131_v15, %v1282_v35 }
 0xcda   :  { %v1498_v2 = vadd.f32 %v1490_v58, %v1284_v63 }
 0xcdc   :  { %v2533_v26 = vmul.f32 -1.442695, %v1498_v2 }
 0xcdd   :  { %v1507_v3 = vpop.permute.xlu0 %1506 }
 0xcde   :  { %2859 = vpow2.f32 %v2533_v26  ;;  %v1509_v7 = vadd.f32 %v1507_v3, %v1289_v5 }
 0xce0   :  { %v2534_v28 = vmul.f32 -1.442695, %v1509_v7 }
 0xce1   :  { %v1294_v20 = vpop.permute.xlu0 %1293 }
 0xce2   :  { %2861 = vpow2.f32 %v2534_v28  ;;  %v1296_v9 = vsel %vm108_vm0, %v1291_v8, %v1294_v20 }
 0xce5   :  { %v1304_v62 = vpop.permute.xlu0 %1303 }
 0xce6   :  { %v1306_v35 = vsel %vm108_vm0, %v1304_v62, %v3552_v43 }
 0xce8   :  { %v2860_v6 = vpop.eup %2859 }
 0xce9   :  { %v1502_v10 = vadd.f32 1.0, %v2860_v6  ;;  %v1308_v3 = vpop.permute.xlu0 %1307 }
 0xceb   :  { %2863 = vrcp.f32 %v1502_v10 }
 0xcec   :  { %v2862_v13 = vpop.eup %2861 }
 0xced   :  { %v1513_v54 = vadd.f32 1.0, %v2862_v13  ;;  %v1316_v8 = vpop.permute.xlu0 %1315 }
 0xcef   :  { %2865 = vrcp.f32 %v1513_v54 }
 0xcf5   :  { %v2864_v22 = vpop.eup %2863 }
 0xcf6   :  { %v1516_v25 = vmul.f32 %v2864_v22, %v1497_v30 }
 0xcf8   :  { %v1517_v32 = vadd.f32 %v1516_v25, %v1296_v9  ;;  %v1318_v25 = vsel %vm108_vm0, %v3536_v27, %v1316_v8 }
 0xcf9   :  { %v2866_v12 = vpop.eup %2865 }
 0xcfa   :  { %2867 = vtanh.f32 %v1517_v32  ;;  %v1519_v14 = vsub.f32 1.0, %v2866_v12  ;;  %v1521_v46 = vmul.f32 0.0, %v2866_v12 }
 0xd04   :  { %v2868_v15 = vpop.eup %2867 }
 0xd05   :  { %v1520_v29 = vmul.f32 %v2868_v15, %v1519_v14 }
 0xd07   :  { %v3582_v42 = vadd.f32 %v1521_v46, %v1520_v29 }
 0xd09   :  { %v1523_v34 = vpack.c.bf16 %v3582_v42, %v3582_v42 }
 0xd0b   :  { %2535 = vmatmul.mubr.msk.bf16.vlgmr.msra.gmra.mrb[32].mxu1 %vm465_vm1, %v1523_v34 }
 0xd0c   :  { %1670 = vmatpush1.bf16.msra.mxu1 %v3457_v18  ;;  %1701 = vmatprep.mubr.bf16.mxu1 %v2973_v1 }
 0xd0d   :  { %1671 = vmatprep.subr.bf16.mxu1 %v3464_v23 }
 0xd10   :  { %1672 = vmatpush1.bf16.msra.mxu1 %v3474_v40 }
 0xd11   :  { %1673 = vmatprep.subr.bf16.mxu1 %v3483_v19 }
 0xd14   :  { %1674 = vmatpush1.bf16.msra.mxu1 %v3493_v24 }
 0xd15   :  { %1675 = vmatprep.subr.bf16.mxu1 %v3500_v31 }
 0xd18   :  { %1676 = vmatpush1.bf16.msra.mxu1 %v3511_v52 }
 0xd19   :  { %1811 = vmatprep.subr.bf16.mxu1 %v3428_v47 }
 0xdde   :  { %v1561_v44 = vpop.f32.mrb[32].mxu1 }
 0xddf   :  { %v1569_v45 = vadd.f32 %v1561_v44, %v1301_v39  ;;  %1577 = vrot.lane.b32.xlu1 %v1561_v44, %s2975_s4  ;;  %v1563_v50 = vpop.f32.mrb[33].mxu1 }
 0xde0   :  { %v1565_v51 = vpop.f32.mrb[34].mxu1  ;;  %v1568_v59 = vadd.f32 %v3578_v17, %v1563_v50 }
 0xde1   :  { %v2536_v55 = vmul.f32 -1.442695, %v1569_v45  ;;  %v1566_v38 = vpop.f32.mrb[35].mxu1 }
 0xde3   :  { %2869 = vpow2.f32 %v2536_v55  ;;  %1310 = vrot.lane.b32.xlu1 %v3552_v43, %s2976_s1 }
 0xde7   :  { %1320 = vrot.lane.b32.xlu1 %v3536_v27, %s2976_s1 }
 0xdeb   :  { %1324 = vrot.lane.b32.xlu1 %v3536_v27, %s2975_s4 }
 0xded   :  { %v2870_v56 = vpop.eup %2869 }
 0xdee   :  { %v1573_v58 = vadd.f32 1.0, %v2870_v56 }
 0xdef   :  { %1332 = vrot.lane.b32.xlu1 %v3556_v49, %s2974_s2 }
 0xdf0   :  { %2871 = vrcp.f32 %v1573_v58 }
 0xdfa   :  { %v2872_v60 = vpop.eup %2871 }
 0xdfb   :  { %v1587_v61 = vmul.f32 %v2872_v60, %v1568_v59 }
 0xe51   :  { %v1578_v63 = vpop.permute.xlu1 %1577 }
 0xe52   :  { %v1580_v0 = vadd.f32 %v1578_v63, %v1306_v35 }
 0xe54   :  { %v2537_v2 = vmul.f32 -1.442695, %v1580_v0 }
 0xe55   :  { %v1311_v26 = vpop.permute.xlu1 %1310 }
 0xe56   :  { %2873 = vpow2.f32 %v2537_v2  ;;  %v1313_v5 = vsel %vm108_vm0, %v1308_v3, %v1311_v26 }
 0xe57   :  { %v1588_v6 = vadd.f32 %v1587_v61, %v1313_v5 }
 0xe59   :  { %v1321_v44 = vpop.permute.xlu1 %1320 }
 0xe5a   :  { %v1323_v50 = vsel %vm108_vm0, %v1321_v44, %v3569_v4 }
 0xe5d   :  { %v1325_v56 = vpop.permute.xlu1 %1324 }
 0xe60   :  { %v2874_v7 = vpop.eup %2873 }
 0xe61   :  { %v1584_v28 = vadd.f32 1.0, %v2874_v7  ;;  %v1333_v3 = vpop.permute.xlu1 %1332 }
 0xe62   :  { %v1335_v5 = vsel %vm108_vm0, %v3542_v21, %v1333_v3 }
 0xe63   :  { %2875 = vrcp.f32 %v1584_v28 }
 0xe64   :  { %2877 = vtanh.f32 %v1588_v6 }
 0xe6d   :  { %v2876_v10 = vpop.eup %2875 }
 0xe6e   :  { %v1590_v13 = vsub.f32 1.0, %v2876_v10  ;;  %v2878_v54 = vpop.eup %2877  ;;  %v1592_v30 = vmul.f32 %v2876_v10, %v3582_v42 }
 0xe70   :  { %v1591_v20 = vmul.f32 %v2878_v54, %v1590_v13 }
 0xe72   :  { %v3611_v43 = vadd.f32 %v1592_v30, %v1591_v20 }
 0xe74   :  { %v1594_v22 = vpack.c.bf16 %v3611_v43, %v3611_v43 }
 0xe76   :  { %2538 = vmatmul.mubr.msk.bf16.vlgmr.msra.gmra.mrb[36].mxu0 %vm465_vm1, %v1594_v22 }
 0xe77   :  { %1741 = vmatpush1.bf16.msra.mxu0 %v3457_v18  ;;  %1772 = vmatprep.mubr.bf16.mxu0 %v2973_v1 }
 0xe78   :  { %1742 = vmatprep.subr.bf16.mxu0 %v3464_v23 }
 0xe7b   :  { %1743 = vmatpush1.bf16.msra.mxu0 %v3474_v40 }
 0xe7c   :  { %1744 = vmatprep.subr.bf16.mxu0 %v3483_v19 }
 0xe7f   :  { %1745 = vmatpush1.bf16.msra.mxu0 %v3493_v24 }
 0xe80   :  { %1746 = vmatprep.subr.bf16.mxu0 %v3500_v31 }
 0xe83   :  { %1747 = vmatpush1.bf16.msra.mxu0 %v3511_v52 }
 0xe84   :  { %1882 = vmatprep.subr.bf16.mxu0 %v3428_v47 }
 0xf49   :  { %v1632_v9 = vpop.f32.mrb[36].mxu0 }
 0xf4a   :  { %v1640_v32 = vadd.f32 %v1632_v9, %v1318_v25  ;;  %v1634_v12 = vpop.f32.mrb[37].mxu0  ;;  %1648 = vrot.lane.b32.xlu0 %v1632_v9, %s2975_s4 }
 0xf4b   :  { %v1636_v14 = vpop.f32.mrb[38].mxu0  ;;  %v1639_v34 = vadd.f32 %v3578_v17, %v1634_v12 }
 0xf4c   :  { %v2539_v15 = vmul.f32 -1.442695, %v1640_v32  ;;  %v1637_v46 = vpop.f32.mrb[39].mxu0 }
 0xf4e   :  { %2879 = vpow2.f32 %v2539_v15  ;;  %1327 = vrot.lane.b32.xlu0 %v3569_v4, %s2976_s1 }
 0xf52   :  { %1337 = vrot.lane.b32.xlu0 %v3542_v21, %s2976_s1 }
 0xf56   :  { %1341 = vrot.lane.b32.xlu0 %v3542_v21, %s2975_s4 }
 0xf58   :  { %v2880_v29 = vpop.eup %2879 }
 0xf59   :  { %v1644_v27 = vadd.f32 1.0, %v2880_v29 }
 0xf5a   :  { %1349 = vrot.lane.b32.xlu0 %v3544_v33, %s2974_s2 }
 0xf5b   :  { %2881 = vrcp.f32 %v1644_v27 }
 0xf65   :  { %v2882_v37 = vpop.eup %2881 }
 0xf66   :  { %v1658_v39 = vmul.f32 %v2882_v37, %v1639_v34 }
 0xfbc   :  { %v1649_v45 = vpop.permute.xlu0 %1648 }
 0xfbd   :  { %v1651_v51 = vadd.f32 %v1649_v45, %v1323_v50 }
 0xfbf   :  { %v2540_v55 = vmul.f32 -1.442695, %v1651_v51 }
 0xfc0   :  { %v1328_v38 = vpop.permute.xlu0 %1327 }
 0xfc1   :  { %2883 = vpow2.f32 %v2540_v55  ;;  %v1330_v58 = vsel %vm108_vm0, %v1325_v56, %v1328_v38 }
 0xfc2   :  { %v1659_v61 = vadd.f32 %v1658_v39, %v1330_v58 }
 0xfc4   :  { %v1338_v8 = vpop.permute.xlu0 %1337 }
 0xfc5   :  { %v1340_v9 = vsel %vm108_vm0, %v1338_v8, %v3556_v49 }
 0xfc8   :  { %v1342_v15 = vpop.permute.xlu0 %1341 }
 0xfcb   :  { %v2884_v59 = vpop.eup %2883 }
 0xfcc   :  { %v1655_v60 = vadd.f32 1.0, %v2884_v59  ;;  %v1350_v55 = vpop.permute.xlu0 %1349 }
 0xfcd   :  { %v1352_v38 = vsel %vm108_vm0, %v3554_v48, %v1350_v55 }
 0xfce   :  { %2885 = vrcp.f32 %v1655_v60 }
 0xfcf   :  { %2887 = vtanh.f32 %v1659_v61 }
 0xfd8   :  { %v2886_v62 = vpop.eup %2885 }
 0xfd9   :  { %v1661_v35 = vsub.f32 1.0, %v2886_v62  ;;  %v2888_v63 = vpop.eup %2887  ;;  %v1663_v0 = vmul.f32 %v2886_v62, %v3611_v43 }
 0xfdb   :  { %v1662_v2 = vmul.f32 %v2888_v63, %v1661_v35 }
 0xfdd   :  { %v3641_v26 = vadd.f32 %v1663_v0, %v1662_v2 }
 0xfdf   :  { %v1665_v4 = vpack.c.bf16 %v3641_v26, %v3641_v26 }
 0xfe1   :  { %2541 = vmatmul.mubr.msk.bf16.vlgmr.msra.gmra.mrb[36].mxu1 %vm465_vm1, %v1665_v4 }
 0xfe2   :  { %1812 = vmatpush1.bf16.msra.mxu1 %v3457_v18  ;;  %1843 = vmatprep.mubr.bf16.mxu1 %v2973_v1 }
 0xfe3   :  { %1813 = vmatprep.subr.bf16.mxu1 %v3464_v23 }
 0xfe6   :  { %1814 = vmatpush1.bf16.msra.mxu1 %v3474_v40 }
 0xfe7   :  { %1815 = vmatprep.subr.bf16.mxu1 %v3483_v19 }
 0xfea   :  { %1816 = vmatpush1.bf16.msra.mxu1 %v3493_v24 }
 0xfeb   :  { %1817 = vmatprep.subr.bf16.mxu1 %v3500_v31 }
 0xfee   :  { %1818 = vmatpush1.bf16.msra.mxu1 %v3511_v52 }
 0xfef   :  { %1953 = vmatprep.subr.bf16.mxu1 %v3428_v47 }
0x10b4   :  { %v1703_v7 = vpop.f32.mrb[36].mxu1 }
0x10b5   :  { %v1711_v28 = vadd.f32 %v1703_v7, %v1335_v5  ;;  %v1705_v6 = vpop.f32.mrb[37].mxu1  ;;  %1719 = vrot.lane.b32.xlu1 %v1703_v7, %s2975_s4 }
0x10b6   :  { %v1707_v10 = vpop.f32.mrb[38].mxu1  ;;  %v1710_v30 = vadd.f32 %v3578_v17, %v1705_v6 }
0x10b7   :  { %v2542_v13 = vmul.f32 -1.442695, %v1711_v28  ;;  %v1708_v54 = vpop.f32.mrb[39].mxu1 }
0x10b9   :  { %2889 = vpow2.f32 %v2542_v13  ;;  %1344 = vrot.lane.b32.xlu1 %v3556_v49, %s2976_s1 }
0x10bd   :  { %1354 = vrot.lane.b32.xlu1 %v3554_v48, %s2976_s1 }
0x10c1   :  { %1358 = vrot.lane.b32.xlu1 %v3554_v48, %s2975_s4 }
0x10c3   :  { %v2890_v47 = vpop.eup %2889 }
0x10c4   :  { %v1715_v21 = vadd.f32 1.0, %v2890_v47 }
0x10c5   :  { %1366 = vrot.lane.b32.xlu1 %v3538_v11, %s2974_s2 }
0x10c6   :  { %2891 = vrcp.f32 %v1715_v21 }
0x10d0   :  { %v2892_v20 = vpop.eup %2891 }
0x10d1   :  { %v1729_v22 = vmul.f32 %v2892_v20, %v1710_v30 }
0x1127   :  { %v1720_v25 = vpop.permute.xlu1 %1719 }
0x1128   :  { %v1722_v32 = vadd.f32 %v1720_v25, %v1340_v9 }
0x112a   :  { %v2543_v12 = vmul.f32 -1.442695, %v1722_v32 }
0x112b   :  { %v1345_v14 = vpop.permute.xlu1 %1344 }
0x112c   :  { %2893 = vpow2.f32 %v2543_v12  ;;  %v1347_v46 = vsel %vm108_vm0, %v1342_v15, %v1345_v14 }
0x112d   :  { %v1730_v34 = vadd.f32 %v1729_v22, %v1347_v46 }
0x112f   :  { %v1355_v4 = vpop.permute.xlu1 %1354 }
0x1130   :  { %v1357_v3 = vsel %vm108_vm0, %v1355_v4, %v3544_v33 }
0x1133   :  { %v1359_v10 = vpop.permute.xlu1 %1358 }
0x1136   :  { %v2894_v29 = vpop.eup %2893 }
0x1137   :  { %v1726_v27 = vadd.f32 1.0, %v2894_v29  ;;  %v1367_v32 = vpop.permute.xlu1 %1366 }
0x1138   :  { %v1369_v12 = vsel %vm108_vm0, %v3560_v57, %v1367_v32 }
0x1139   :  { %2895 = vrcp.f32 %v1726_v27 }
0x113a   :  { %2897 = vtanh.f32 %v1730_v34 }
0x1143   :  { %v2896_v37 = vpop.eup %2895 }
0x1144   :  { %v1732_v39 = vsub.f32 1.0, %v2896_v37  ;;  %v2898_v44 = vpop.eup %2897  ;;  %v1734_v45 = vmul.f32 %v2896_v37, %v3641_v26 }
0x1146   :  { %v1733_v50 = vmul.f32 %v2898_v44, %v1732_v39 }
0x1148   :  { %v3671_v51 = vadd.f32 %v1734_v45, %v1733_v50 }
0x114a   :  { %v1736_v49 = vpack.c.bf16 %v3671_v51, %v3671_v51 }
0x114c   :  { %2544 = vmatmul.mubr.msk.bf16.vlgmr.msra.gmra.mrb[40].mxu0 %vm465_vm1, %v1736_v49 }
0x114d   :  { %1883 = vmatpush1.bf16.msra.mxu0 %v3457_v18  ;;  %1914 = vmatprep.mubr.bf16.mxu0 %v2973_v1 }
0x114e   :  { %1884 = vmatprep.subr.bf16.mxu0 %v3464_v23 }
0x1151   :  { %1885 = vmatpush1.bf16.msra.mxu0 %v3474_v40 }
0x1152   :  { %1886 = vmatprep.subr.bf16.mxu0 %v3483_v19 }
0x1155   :  { %1887 = vmatpush1.bf16.msra.mxu0 %v3493_v24 }
0x1156   :  { %1888 = vmatprep.subr.bf16.mxu0 %v3500_v31 }
0x1159   :  { %1889 = vmatpush1.bf16.msra.mxu0 %v3511_v52 }
0x121f   :  { %v1774_v56 = vpop.f32.mrb[40].mxu0 }
0x1220   :  { %v1782_v58 = vadd.f32 %v1774_v56, %v1352_v38  ;;  %1790 = vrot.lane.b32.xlu0 %v1774_v56, %s2975_s4  ;;  %v1776_v59 = vpop.f32.mrb[41].mxu0 }
0x1221   :  { %v1778_v60 = vpop.f32.mrb[42].mxu0  ;;  %v1781_v63 = vadd.f32 %v3578_v17, %v1776_v59 }
0x1222   :  { %v2545_v61 = vmul.f32 -1.442695, %v1782_v58  ;;  %v1779_v62 = vpop.f32.mrb[43].mxu0 }
0x1224   :  { %2899 = vpow2.f32 %v2545_v61  ;;  %1361 = vrot.lane.b32.xlu0 %v3544_v33, %s2976_s1 }
0x1228   :  { %1371 = vrot.lane.b32.xlu0 %v3560_v57, %s2976_s1 }
0x122c   :  { %1375 = vrot.lane.b32.xlu0 %v3560_v57, %s2975_s4 }
0x122e   :  { %v2900_v35 = vpop.eup %2899 }
0x122f   :  { %v1786_v48 = vadd.f32 1.0, %v2900_v35 }
0x1230   :  { %1383 = vrot.lane.b32.xlu0 %v3546_v36, %s2974_s2 }
0x1231   :  { %2901 = vrcp.f32 %v1786_v48 }
0x123b   :  { %v2902_v0 = vpop.eup %2901 }
0x123c   :  { %v1800_v2 = vmul.f32 %v2902_v0, %v1781_v63 }
0x1292   :  { %v1791_v5 = vpop.permute.xlu0 %1790 }
0x1293   :  { %v1793_v7 = vadd.f32 %v1791_v5, %v1357_v3 }
0x1295   :  { %v2546_v28 = vmul.f32 -1.442695, %v1793_v7 }
0x1296   :  { %v1362_v6 = vpop.permute.xlu0 %1361 }
0x1297   :  { %2903 = vpow2.f32 %v2546_v28  ;;  %v1364_v13 = vsel %vm108_vm0, %v1359_v10, %v1362_v6 }
0x1298   :  { %v1801_v21 = vadd.f32 %v1800_v2, %v1364_v13 }
0x129a   :  { %v1372_v46 = vpop.permute.xlu0 %1371 }
0x129b   :  { %v1374_v29 = vsel %vm108_vm0, %v1372_v46, %v3538_v11 }
0x129e   :  { %v1376_v44 = vpop.permute.xlu0 %1375 }
0x12a1   :  { %v2904_v54 = vpop.eup %2903 }
0x12a2   :  { %v1797_v47 = vadd.f32 1.0, %v2904_v54  ;;  %v1384_v62 = vpop.permute.xlu0 %1383 }
0x12a3   :  { %v1386_v35 = vsel %vm108_vm0, %v3550_v41, %v1384_v62 }
0x12a4   :  { %2905 = vrcp.f32 %v1797_v47 }
0x12a5   :  { %2907 = vtanh.f32 %v1801_v21 }
0x12ae   :  { %v2906_v30 = vpop.eup %2905 }
0x12af   :  { %v1803_v20 = vsub.f32 1.0, %v2906_v30  ;;  %v2908_v22 = vpop.eup %2907  ;;  %v1805_v8 = vmul.f32 %v2906_v30, %v3671_v51 }
0x12b1   :  { %v1804_v25 = vmul.f32 %v2908_v22, %v1803_v20 }
0x12b3   :  { %v3700_v33 = vadd.f32 %v1805_v8, %v1804_v25 }
0x12b5   :  { %v1807_v9 = vpack.c.bf16 %v3700_v33, %v3700_v33 }
0x12b7   :  { %2547 = vmatmul.mubr.msk.bf16.vlgmr.msra.gmra.mrb[40].mxu1 %vm465_vm1, %v1807_v9 }
0x12b8   :  { %1954 = vmatpush1.bf16.msra.mxu1 %v3457_v18  ;;  %1985 = vmatprep.mubr.bf16.mxu1 %v2973_v1 }
0x12b9   :  { %1955 = vmatprep.subr.bf16.mxu1 %v3464_v23 }
0x12bc   :  { %1956 = vmatpush1.bf16.msra.mxu1 %v3474_v40 }
0x12bd   :  { %1957 = vmatprep.subr.bf16.mxu1 %v3483_v19 }
0x12c0   :  { %1958 = vmatpush1.bf16.msra.mxu1 %v3493_v24 }
0x12c1   :  { %1959 = vmatprep.subr.bf16.mxu1 %v3500_v31 }
0x12c4   :  { %1960 = vmatpush1.bf16.msra.mxu1 %v3511_v52 }
0x138a   :  { %v1845_v14 = vpop.f32.mrb[40].mxu1 }
0x138b   :  { %v1853_v18 = vadd.f32 %v1845_v14, %v1369_v12  ;;  %1861 = vrot.lane.b32.xlu1 %v1845_v14, %s2975_s4  ;;  %v1847_v1 = vpop.f32.mrb[41].mxu1 }
0x138c   :  { %v1849_v23 = vpop.f32.mrb[42].mxu1  ;;  %v1852_v31 = vadd.f32 %v3578_v17, %v1847_v1 }
0x138d   :  { %v2548_v15 = vmul.f32 -1.442695, %v1853_v18  ;;  %v1850_v40 = vpop.f32.mrb[43].mxu1 }
0x138f   :  { %2909 = vpow2.f32 %v2548_v15  ;;  %1378 = vrot.lane.b32.xlu1 %v3538_v11, %s2976_s1 }
0x1393   :  { %1388 = vrot.lane.b32.xlu1 %v3550_v41, %s2976_s1 }
0x1397   :  { %1392 = vrot.lane.b32.xlu1 %v3550_v41, %s2975_s4 }
0x1399   :  { %v2910_v19 = vpop.eup %2909 }
0x139a   :  { %v1857_v24 = vadd.f32 1.0, %v2910_v19 }
0x139b   :  { %1400 = vrot.lane.b32.xlu1 %v3540_v16, %s2974_s2 }
0x139c   :  { %2911 = vrcp.f32 %v1857_v24 }
0x13a6   :  { %v2912_v52 = vpop.eup %2911 }
0x13a7   :  { %v1871_v57 = vmul.f32 %v2912_v52, %v1852_v31 }
0x13fd   :  { %v1862_v27 = vpop.permute.xlu1 %1861 }
0x13fe   :  { %v1864_v34 = vadd.f32 %v1862_v27, %v1374_v29  ;;  %v2769_v29 = vld [vmem:[%s3875_s13] sm:$0xff]  }
0x13ff   :  { %2679 = vmatprep.subr.bf16.mxu0 %v2769_v29 }
0x1400   :  { %v2549_v37 = vmul.f32 -1.442695, %v1864_v34 }
0x1401   :  { %v1379_v39 = vpop.permute.xlu1 %1378 }
0x1402   :  { %2913 = vpow2.f32 %v2549_v37  ;;  %v1381_v45 = vsel %vm108_vm0, %v1376_v44, %v1379_v39  ;;  %v2771_v37 = vld [vmem:[%s3875_s13 + $0x10] sm:$0xff]   ;;  %v2772_v39 = vld [vmem:[%s3875_s13 + $0x18] sm:$0xff]  }
0x1403   :  { %v1872_v55 = vadd.f32 %v1871_v57, %v1381_v45 }
0x1405   :  { %v1389_v10 = vpop.permute.xlu1 %1388 }
0x1406   :  { %v1391_v54 = vsel %vm108_vm0, %v1389_v10, %v3546_v36 }
0x1409   :  { %v1393_v20 = vpop.permute.xlu1 %1392 }
0x140c   :  { %v2914_v50 = vpop.eup %2913 }
0x140d   :  { %v1868_v49 = vadd.f32 1.0, %v2914_v50  ;;  %v1401_v15 = vpop.permute.xlu1 %1400 }
0x140e   :  { %v1403_v40 = vsel %vm108_vm0, %v3558_v53, %v1401_v15 }
0x140f   :  { %2915 = vrcp.f32 %v1868_v49 }
0x1410   :  { %2917 = vtanh.f32 %v1872_v55 }
0x1419   :  { %v2916_v38 = vpop.eup %2915 }
0x141a   :  { %v1874_v56 = vsub.f32 1.0, %v2916_v38  ;;  %v2918_v58 = vpop.eup %2917  ;;  %v1876_v59 = vmul.f32 %v2916_v38, %v3700_v33 }
0x141c   :  { %v1875_v60 = vmul.f32 %v2918_v58, %v1874_v56 }
0x141e   :  { %v3729_v11 = vadd.f32 %v1876_v59, %v1875_v60 }
0x1420   :  { %v1878_v61 = vpack.c.bf16 %v3729_v11, %v3729_v11 }
0x1422   :  { %2550 = vmatmul.mubr.msk.bf16.vlgmr.msra.gmra.mrb[44].mxu0 %vm465_vm1, %v1878_v61 }
0x1423   :  { %2680 = vmatpush3.bf16.msra.mxu0 %v2769_v29 }
0x14f5   :  { %v1916_v48 = vpop.f32.mrb[44].mxu0 }
0x14f6   :  { %v1924_v63 = vadd.f32 %v1916_v48, %v1386_v35  ;;  %v1918_v0 = vpop.f32.mrb[45].mxu0  ;;  %1932 = vrot.lane.b32.xlu0 %v1916_v48, %s2975_s4 }
0x14f7   :  { %v1920_v2 = vpop.f32.mrb[46].mxu0  ;;  %v1923_v7 = vadd.f32 %v3578_v17, %v1918_v0 }
0x14f8   :  { %v2551_v4 = vmul.f32 -1.442695, %v1924_v63  ;;  %v1921_v3 = vpop.f32.mrb[47].mxu0 }
0x14fa   :  { %2919 = vpow2.f32 %v2551_v4  ;;  %1395 = vrot.lane.b32.xlu0 %v3546_v36, %s2976_s1 }
0x14fe   :  { %1405 = vrot.lane.b32.xlu0 %v3558_v53, %s2976_s1 }
0x1502   :  { %1409 = vrot.lane.b32.xlu0 %v3558_v53, %s2975_s4  ;;  %v2770_v53 = vld [vmem:[%s3875_s13 + $0x8] sm:$0xff]  }
0x1503   :  { %2681 = vmatprep.subr.bf16.mxu0 %v2770_v53 }
0x1504   :  { %v2920_v5 = vpop.eup %2919  ;;  %2682 = vmatpush3.bf16.msra.mxu0 %v2770_v53 }
0x1505   :  { %v1928_v41 = vadd.f32 1.0, %v2920_v5  ;;  %2683 = vmatprep.subr.bf16.mxu0 %v2771_v37 }
0x1507   :  { %2921 = vrcp.f32 %v1928_v41 }
0x1508   :  { %2684 = vmatpush3.bf16.msra.mxu0 %v2771_v37 }
0x1509   :  { %2685 = vmatprep.subr.bf16.mxu0 %v2772_v39 }
0x150c   :  { %2686 = vmatpush3.bf16.msra.mxu0 %v2772_v39 }
0x1511   :  { %v2922_v28 = vpop.eup %2921 }
0x1512   :  { %v1942_v6 = vmul.f32 %v2922_v28, %v1923_v7  ;;  %v3792_v7 = vsel %vm108_vm0, %v3729_v11, %v3641_v26 }
0x1568   :  { %v1933_v13 = vpop.permute.xlu0 %1932 }
0x1569   :  { %v1935_v47 = vadd.f32 %v1933_v13, %v1391_v54  ;;  %v3806_v13 = vsel %vm108_vm0, %v3700_v33, %v3671_v51 }
0x156b   :  { %v2552_v21 = vmul.f32 -1.442695, %v1935_v47 }
0x156c   :  { %v1396_v30 = vpop.permute.xlu0 %1395 }
0x156d   :  { %2923 = vpow2.f32 %v2552_v21  ;;  %v1398_v22 = vsel %vm108_vm0, %v1393_v20, %v1396_v30 }
0x156e   :  { %v1943_v9 = vadd.f32 %v1942_v6, %v1398_v22  ;;  %v3799_v6 = vsel %vm108_vm0, %v3671_v51, %v3700_v33  ;;  %v2773_v33 = vld [vmem:[%s3876_s14] sm:$0xff]  }
0x156f   :  { %2695 = vmatprep.subr.bf16.mxu1 %v2773_v33 }
0x1570   :  { %v1406_v49 = vpop.permute.xlu0 %1405 }
0x1571   :  { %v1408_v38 = vsel %vm108_vm0, %v1406_v49, %v3540_v16 }
0x1574   :  { %v1410_v60 = vpop.permute.xlu0 %1409 }
0x1577   :  { %v2924_v8 = vpop.eup %2923 }
0x1578   :  { %v1939_v25 = vadd.f32 1.0, %v2924_v8 }
0x157a   :  { %2925 = vrcp.f32 %v1939_v25 }
0x157b   :  { %2927 = vtanh.f32 %v1943_v9 }
0x1584   :  { %v2926_v32 = vpop.eup %2925 }
0x1585   :  { %v1945_v12 = vsub.f32 1.0, %v2926_v32  ;;  %v2928_v14 = vpop.eup %2927  ;;  %v1947_v18 = vmul.f32 %v2926_v32, %v3729_v11 }
0x1587   :  { %v1946_v1 = vmul.f32 %v2928_v14, %v1945_v12 }
0x1589   :  { %v3748_v23 = vadd.f32 %v1947_v18, %v1946_v1 }
0x158b   :  { %v1949_v36 = vpack.c.bf16 %v3748_v23, %v3748_v23  ;;  %v3787_v41 = vsel %vm108_vm0, %v3611_v43, %v3748_v23  ;;  %v3820_v54 = vsel %vm108_vm0, %v3748_v23, %v3611_v43 }
0x158d   :  { %2553 = vmatmul.mubr.msk.bf16.vlgmr.msra.gmra.mrb[44].mxu1 %vm465_vm1, %v1949_v36 }
0x158e   :  { %2696 = vmatpush3.bf16.msra.mxu1 %v2773_v33 }
0x1660   :  { %v1987_v19 = vpop.f32.mrb[44].mxu1 }
0x1661   :  { %v1995_v24 = vadd.f32 %v1987_v19, %v1403_v40  ;;  %v1989_v31 = vpop.f32.mrb[45].mxu1  ;;  %2003 = vrot.lane.b32.xlu1 %v1987_v19, %s2975_s4 }
0x1662   :  { %v1991_v52 = vpop.f32.mrb[46].mxu1  ;;  %v1994_v44 = vadd.f32 %v3578_v17, %v1989_v31 }
0x1663   :  { %v2554_v57 = vmul.f32 -1.442695, %v1995_v24  ;;  %v1992_v46 = vpop.f32.mrb[47].mxu1 }
0x1665   :  { %2929 = vpow2.f32 %v2554_v57  ;;  %1412 = vrot.lane.b32.xlu1 %v3540_v16, %s2976_s1  ;;  %v3778_v16 = vsel %vm108_vm0, %v3641_v26, %v3729_v11  ;;  %v2030_v26 = vpack.c.bf16 %v3792_v7, %v3806_v13 }
0x1666   :  { %v2029_v10 = vpack.c.bf16 %v3799_v6, %v3778_v16 }
0x166f   :  { %v2930_v27 = vpop.eup %2929 }
0x1670   :  { %v1999_v34 = vadd.f32 1.0, %v2930_v27 }
0x1672   :  { %2931 = vrcp.f32 %v1999_v34 }
0x167c   :  { %v2932_v45 = vpop.eup %2931 }
0x167d   :  { %v2013_v50 = vmul.f32 %v2932_v45, %v1994_v44 }
0x16d3   :  { %v2004_v55 = vpop.permute.xlu1 %2003 }
0x16d4   :  { %v2006_v56 = vadd.f32 %v2004_v55, %v1408_v38 }
0x16d6   :  { %v2555_v58 = vmul.f32 -1.442695, %v2006_v56 }
0x16d7   :  { %v1413_v59 = vpop.permute.xlu1 %1412 }
0x16d8   :  { %2933 = vpow2.f32 %v2555_v58  ;;  %v1415_v61 = vsel %vm108_vm0, %v1410_v60, %v1413_v59 }
0x16d9   :  { %v2014_v48 = vadd.f32 %v2013_v50, %v1415_v61 }
0x16e2   :  { %v2934_v62 = vpop.eup %2933 }
0x16e3   :  { %v2010_v35 = vadd.f32 1.0, %v2934_v62 }
0x16e5   :  { %2935 = vrcp.f32 %v2010_v35 }
0x16e6   :  { %2937 = vtanh.f32 %v2014_v48 }
0x16ef   :  { %v2936_v17 = vpop.eup %2935 }
0x16f0   :  { %v2016_v63 = vsub.f32 1.0, %v2936_v17  ;;  %v2938_v0 = vpop.eup %2937  ;;  %v2018_v4 = vmul.f32 %v2936_v17, %v3748_v23 }
0x16f2   :  { %v2017_v2 = vmul.f32 %v2938_v0, %v2016_v63 }
0x16f4   :  { %v2019_v3 = vadd.f32 %v2018_v4, %v2017_v2 }
0x16f6   :  { %v3782_v5 = vsel %vm108_vm0, %v3582_v42, %v2019_v3  ;;  %v3815_v11 = vsel %vm108_vm0, %v2019_v3, %v3582_v42  ;;  %v2774_v42 = vld [vmem:[%s3876_s14 + $0x8] sm:$0xff]  }
0x16f7   :  { %v2028_v28 = vpack.c.bf16 %v3787_v41, %v3782_v5  ;;  %v2031_v51 = vpack.c.bf16 %v3815_v11, %v3820_v54  ;;  %2697 = vmatprep.subr.bf16.mxu1 %v2774_v42 }
0x16f8   :  { %2698 = vmatpush3.bf16.msra.mxu1 %v2774_v42 }
0x16f9   :  { %2687 = vmatprep.mubr.msk.bf16.mxu0 %vm465_vm1, %v2028_v28 }
0x16fa   :  { %2688 = vmatmul.mubr.msk.bf16.vlgmr.msra.gmra.mrb[48].mxu0 %vm465_vm1, %v2029_v10 }
0x16fb   :  { %2691 = vmatprep.mubr.msk.bf16.mxu0 %vm465_vm1, %v2030_v26 }
0x1702   :  { %2692 = vmatmul.mubr.msk.bf16.gmra.mrb[52].mxu0 %vm465_vm1, %v2031_v51 }
0x17cd   :  { %v2689_v47 = vpop.f32.mrb[48].mxu0 }
0x17ce   :  { %2939 = vtanh.f32 %v2689_v47  ;;  %v2110_v43 = vpop.f32.mrb[49].mxu0 }
0x17cf   :  { %2941 = vtanh.f32 %v2110_v43  ;;  %v2690_v21 = vpop.f32.mrb[50].mxu0 }
0x17d0   :  { %2943 = vtanh.f32 %v2690_v21  ;;  %v2113_v30 = vpop.f32.mrb[51].mxu0 }
0x17d1   :  { %2945 = vtanh.f32 %v2113_v30 }
0x17d5   :  { %v2693_v20 = vpop.f32.mrb[52].mxu0 }
0x17d6   :  { %2947 = vtanh.f32 %v2693_v20  ;;  %v2126_v22 = vpop.f32.mrb[53].mxu0 }
0x17d7   :  { %2949 = vtanh.f32 %v2126_v22  ;;  %v2694_v8 = vpop.f32.mrb[54].mxu0 }
0x17d8   :  { %v2940_v25 = vpop.eup %2939  ;;  %2951 = vtanh.f32 %v2694_v8  ;;  %v2129_v9 = vpop.f32.mrb[55].mxu0 }
0x17d9   :  { %v2942_v32 = vpop.eup %2941  ;;  %2953 = vtanh.f32 %v2129_v9 }
0x17da   :  { %v2944_v12 = vpop.eup %2943 }
0x17db   :  { %v2946_v14 = vpop.eup %2945  ;;  %v2150_v18 = vpack.c.bf16 %v2944_v12, %v2940_v25 }
0x17dc   :  { %v2149_v1 = vpack.c.bf16 %v2946_v14, %v2942_v32 }
0x17de   :  { %2699 = vmatprep.mubr.msk.bf16.mxu1 %vm108_vm0, %v2149_v1 }
0x17df   :  { %2700 = vmatmul.mubr.msk.bf16.vlgmr.msra.gmra.mrb[48].mxu1 %vm108_vm0, %v2150_v18 }
0x17e0   :  { %v2948_v23 = vpop.eup %2947 }
0x17e1   :  { %v2950_v36 = vpop.eup %2949 }
0x17e2   :  { %v2952_v15 = vpop.eup %2951 }
0x17e3   :  { %v2954_v40 = vpop.eup %2953  ;;  %v2152_v19 = vpack.c.bf16 %v2952_v15, %v2948_v23 }
0x17e4   :  { %v2151_v24 = vpack.c.bf16 %v2954_v40, %v2950_v36 }
0x17e6   :  { %2703 = vmatprep.mubr.msk.bf16.mxu1 %vm108_vm0, %v2151_v24 }
0x17e7   :  { %2704 = vmatmul.mubr.msk.bf16.gmra.mrb[52].mxu1 %vm108_vm0, %v2152_v19 }
0x18b2   :  { %v2701_v31 = vpop.f32.mrb[48].mxu1 }
0x18b3   :  { %v2215_v52 = vpop.f32.mrb[49].mxu1  ;;  %v2249_v53 = vsel %vm2246_vm2, %v2701_v31, -inf }
0x18b4   :  { %v2702_v57 = vpop.f32.mrb[50].mxu1  ;;  %v2247_v37 = vsel %vm2246_vm2, %v2215_v52, -inf }
0x18b5   :  { %v2218_v46 = vpop.f32.mrb[51].mxu1  ;;  %v2250_v50 = vsel %vm2246_vm2, %v2702_v57, -inf }
0x18b6   :  { %v2248_v56 = vsel %vm2246_vm2, %v2218_v46, -inf }
0x18ba   :  { %v2705_v29 = vpop.f32.mrb[52].mxu1 }
0x18bb   :  { %v2255_v27 = vsel %vm2246_vm2, %v2705_v29, -inf  ;;  %v2231_v34 = vpop.f32.mrb[53].mxu1 }
0x18bc   :  { %v2256_v39 = vmax.f32 %v2249_v53, %v2255_v27  ;;  %v2251_v44 = vsel %vm2246_vm2, %v2231_v34, -inf  ;;  %v2706_v45 = vpop.f32.mrb[54].mxu1  ;;  %v2977_v27 = vmov 0.0  }
0x18bd   :  { %v2252_v49 = vmax.f32 %v2247_v37, %v2251_v44  ;;  %v2257_v55 = vsel %vm2246_vm2, %v2706_v45, -inf  ;;  %v2234_v38 = vpop.f32.mrb[55].mxu1  ;;  %2707 = vmatprep.subr.bf16.mxu1 %v2977_v27  ;;  %v2777_v44 = vld [vmem:[%s3877_s15 + $0x10] sm:$0xff]   ;;  %2715 = vmatprep.mubr.msk.bf16.mxu1 %vm2978_vm3, %v2977_v27 }
0x18be   :  { %v2258_v58 = vmax.f32 %v2250_v50, %v2257_v55  ;;  %v2253_v59 = vsel %vm2246_vm2, %v2234_v38, -inf }
0x18bf   :  { %v2254_v60 = vmax.f32 %v2248_v56, %v2253_v59 }
0x18c0   :  { %v2260_v61 = vmax.f32 %v2256_v39, %v2258_v58  ;;  %v2776_v39 = vld [vmem:[%s3877_s15 + $0x8] sm:$0xff]  }
0x18c1   :  { %v2259_v62 = vmax.f32 %v2252_v49, %v2254_v60 }
0x18c3   :  { %v2261_v35 = vmax.f32 %v2259_v62, %v2260_v61 }
0x18c5   :  { %2262 = vmax.xlane.f32.xlu0 %v2261_v35 }
0x1952   :  { %v2263_v48 = vpop.xlane.xlu0 %2262 }
0x1953   :  { %v2264_v17 = vrot.slane %v2263_v48, 4 }
0x1955   :  { %v2265_v63 = vmax.f32 %v2263_v48, %v2264_v17 }
0x1957   :  { %v2266_v0 = vrot.slane %v2265_v63, 2 }
0x1959   :  { %v2267_v2 = vmax.f32 %v2265_v63, %v2266_v0 }
0x195b   :  { %v2268_v4 = vrot.slane %v2267_v2, 1 }
0x195d   :  { %v2269_v3 = vmax.f32 %v2267_v2, %v2268_v4 }
0x195f   :  { %2719 = vpush %v2269_v3 }
0x1990   :  { %s2720_s14 = spop %2719 }
0x1991   :  { %v2271_v28 = vstv %s2720_s14 }
0x1992   :  { %v2272_v10 = vsub.f32 %v2215_v52, %v2271_v28  ;;  %v2273_v26 = vsub.f32 %v2218_v46, %v2271_v28  ;;  %v2274_v51 = vsub.f32 %v2701_v31, %v2271_v28  ;;  %v2275_v33 = vsub.f32 %v2702_v57, %v2271_v28 }
0x1993   :  { %v2276_v43 = vsub.f32 %v2231_v34, %v2271_v28  ;;  %v2277_v30 = vsub.f32 %v2234_v38, %v2271_v28  ;;  %v2278_v22 = vsub.f32 %v2705_v29, %v2271_v28  ;;  %v2279_v25 = vsub.f32 %v2706_v45, %v2271_v28  ;;  %v2775_v34 = vld [vmem:[%s3877_s15] sm:$0xff]   ;;  %v2778_v45 = vld [vmem:[%s3877_s15 + $0x18] sm:$0xff]  }
0x1994   :  { %v2280_v42 = vmul.f32 1.442695, %v2272_v10  ;;  %v2282_v47 = vmul.f32 1.442695, %v2273_v26  ;;  %v2284_v21 = vmul.f32 1.442695, %v2274_v51  ;;  %2708 = vmatpush3.bf16.msra.mxu1 %v2775_v34 }
0x1995   :  { %v2286_v20 = vmul.f32 1.442695, %v2275_v33  ;;  %v2288_v8 = vmul.f32 1.442695, %v2276_v43  ;;  %v2290_v9 = vmul.f32 1.442695, %v2277_v30  ;;  %2709 = vmatprep.subr.bf16.mxu1 %v2977_v27 }
0x1996   :  { %2955 = vpow2.f32 %v2280_v42  ;;  %v2292_v32 = vmul.f32 1.442695, %v2278_v22  ;;  %v2294_v12 = vmul.f32 1.442695, %v2279_v25 }
0x1997   :  { %2957 = vpow2.f32 %v2282_v47 }
0x1998   :  { %2959 = vpow2.f32 %v2284_v21  ;;  %2710 = vmatpush3.bf16.msra.mxu1 %v2776_v39 }
0x1999   :  { %2961 = vpow2.f32 %v2286_v20  ;;  %2711 = vmatprep.subr.bf16.mxu1 %v2977_v27 }
0x199a   :  { %2963 = vpow2.f32 %v2288_v8 }
0x199b   :  { %2965 = vpow2.f32 %v2290_v9 }
0x199c   :  { %2967 = vpow2.f32 %v2292_v32  ;;  %2712 = vmatpush3.bf16.msra.mxu1 %v2777_v44 }
0x199d   :  { %2969 = vpow2.f32 %v2294_v12  ;;  %2713 = vmatprep.subr.bf16.mxu1 %v2977_v27 }
0x19a0   :  { %v2956_v14 = vpop.eup %2955  ;;  %2714 = vmatpush3.bf16.msra.mxu1 %v2778_v45 }
0x19a1   :  { %v2958_v18 = vpop.eup %2957  ;;  %2298 = vperm.xlu1 %2727, %v2956_v14  }
0x19a2   :  { %v2347_v1 = vadd.f32 %v2958_v18, %v2956_v14  ;;  %v2960_v23 = vpop.eup %2959 }
0x19a3   :  { %v2962_v15 = vpop.eup %2961 }
0x19a4   :  { %v2349_v36 = vadd.f32 %v2960_v23, %v2347_v1  ;;  %v2964_v19 = vpop.eup %2963 }
0x19a5   :  { %2303 = vperm.xlu1 %2727, %v2958_v18   ;;  %v2966_v31 = vpop.eup %2965 }
0x19a6   :  { %v2351_v40 = vadd.f32 %v2962_v15, %v2349_v36  ;;  %v2968_v57 = vpop.eup %2967 }
0x19a7   :  { %v2970_v29 = vpop.eup %2969 }
0x19a8   :  { %v2353_v24 = vadd.f32 %v2964_v19, %v2351_v40 }
0x19a9   :  { %2308 = vperm.xlu1 %2727, %v2960_v23  }
0x19aa   :  { %v2355_v52 = vadd.f32 %v2966_v31, %v2353_v24 }
0x19ac   :  { %v2357_v46 = vadd.f32 %v2968_v57, %v2355_v52 }
0x19ad   :  { %2313 = vperm.xlu1 %2727, %v2962_v15  }
0x19ae   :  { %v2359_v53 = vadd.f32 %v2970_v29, %v2357_v46 }
0x19b0   :  { %2971 = vrcp.f32 %v2359_v53 }
0x19b1   :  { %2318 = vperm.xlu1 %2727, %v2964_v19  }
0x19b5   :  { %2323 = vperm.xlu1 %2727, %v2966_v31  }
0x19b9   :  { %2328 = vperm.xlu1 %2727, %v2968_v57  }
0x19ba   :  { %v2972_v37 = vpop.eup %2971 }
0x19bb   :  { %2363 = vperm.xlu0 %2728, %v2972_v37  }
0x19bd   :  { %2333 = vperm.xlu1 %2727, %v2970_v29  }
0x1a20   :  { %v2299_v50 = vpop.permute.xlu1 %2298 }
0x1a21   :  { %v2336_v59 = vmul.f32 %v2299_v50, %v3782_v5 }
0x1a24   :  { %v2304_v49 = vpop.permute.xlu1 %2303 }
0x1a25   :  { %v2337_v56 = vmul.f32 %v2304_v49, %v3787_v41 }
0x1a27   :  { %v2346_v61 = vadd.f32 %v2337_v56, %v2336_v59 }
0x1a28   :  { %v2309_v55 = vpop.permute.xlu1 %2308 }
0x1a29   :  { %v2338_v60 = vmul.f32 %v2309_v55, %v3778_v16 }
0x1a2b   :  { %v2348_v48 = vadd.f32 %v2346_v61, %v2338_v60 }
0x1a2c   :  { %v2314_v38 = vpop.permute.xlu1 %2313 }
0x1a2d   :  { %v2339_v62 = vmul.f32 %v2314_v38, %v3799_v6 }
0x1a2f   :  { %v2350_v63 = vadd.f32 %v2348_v48, %v2339_v62 }
0x1a30   :  { %v2319_v58 = vpop.permute.xlu1 %2318 }
0x1a31   :  { %v2340_v17 = vmul.f32 %v2319_v58, %v3806_v13  ;;  %v2570_v13 = vld [vmem:[%s3878_s16] ss:$0 sm:$0xff] }
0x1a33   :  { %v2352_v4 = vadd.f32 %v2350_v63, %v2340_v17 }
0x1a34   :  { %v2324_v35 = vpop.permute.xlu1 %2323 }
0x1a35   :  { %v2341_v0 = vmul.f32 %v2324_v35, %v3792_v7 }
0x1a37   :  { %v2354_v41 = vadd.f32 %v2352_v4, %v2341_v0 }
0x1a38   :  { %v2329_v2 = vpop.permute.xlu1 %2328 }
0x1a39   :  { %v2342_v3 = vmul.f32 %v2329_v2, %v3820_v54 }
0x1a3a   :  { %v2364_v26 = vpop.permute.xlu0 %2363 }
0x1a3b   :  { %v2356_v10 = vadd.f32 %v2354_v41, %v2342_v3 }
0x1a3c   :  { %v2334_v28 = vpop.permute.xlu1 %2333 }
0x1a3d   :  { %v2343_v5 = vmul.f32 %v2334_v28, %v3815_v11 }
0x1a3f   :  { %v2358_v16 = vadd.f32 %v2356_v10, %v2343_v5 }
0x1a41   :  { %v2366_v51 = vmul.f32 %v2364_v26, %v2358_v16 }
0x1a43   :  { %v2367_v6 = vpack.c.bf16 %v2366_v51, %v2366_v51 }
0x1a45   :  { %2716 = vmatmul.mubr.msk.bf16.vlgmr.msra.gmra.mrb[56].mxu1 %vm465_vm1, %v2367_v6 }
0x1b18   :  { %v2444_v7 = vpop.f32.mrb[56].mxu1 }
0x1b19   :  { %v2445_v33 = vadd.f32 %v2570_v13, %v2444_v7  ;;  %v2717_v42 = vpop.f32.mrb[57].mxu1 }
0x1b1a   :  { %v2447_v54 = vpop.f32.mrb[58].mxu1 }
0x1b1b   :  { %2451 = vst.msk [vmem:[%s3879_s17] sm:$0xff] %vm2450_vm4, %v2445_v33  ;;  %v2718_v11 = vpop.f32.mrb[59].mxu1 }

</bundles_post_ra>
